<compile_context>
chip_gen: v7x
topology: tpu7x:2x2x1
jax: 0.10.0
libtpu: 0.0.40
codegen_flags: <defaults>
</compile_context>

<pallas_src>
import functools

import jax
import jax.numpy as jnp
from jax.experimental import pallas as pl
from jax.experimental.pallas import tpu as pltpu

EPS = 1e-5  # nn.LayerNorm default eps


# ----------------------------- in-kernel helpers -----------------------------

def _layernorm(x, gamma, beta):
    # x: (n, e) f32, gamma/beta: (1, e) f32 — single-pass statistics.
    m1 = jnp.mean(x, axis=-1, keepdims=True)
    m2 = jnp.mean(x * x, axis=-1, keepdims=True)
    var = m2 - m1 * m1
    return (x - m1) * jax.lax.rsqrt(var + EPS) * gamma + beta


def _attend(q2d, k3, v3, wo_hd, bo, *, batch, heads):
    # q2d: (b*t, e) f32, k3/v3: (b, s, e) f32, wo_hd: (heads, dh, e) bf16, bo: (1, e) f32
    bt, e = q2d.shape
    dh = e // heads
    t = bt // batch
    scale = 1.0 / float(dh) ** 0.5

    q3 = q2d.reshape(batch, t, e).astype(jnp.bfloat16)
    k3 = k3.astype(jnp.bfloat16)
    v3 = v3.astype(jnp.bfloat16)

    acc = jnp.zeros((bt, e), jnp.float32)
    for hd in range(heads):  # static unroll; each step is a batched (over b) contraction
        qh = q3[:, :, hd * dh:(hd + 1) * dh]
        kh = k3[:, :, hd * dh:(hd + 1) * dh]
        vh = v3[:, :, hd * dh:(hd + 1) * dh]
        sc = jnp.einsum('btd,bsd->bts', qh, kh,
                        preferred_element_type=jnp.float32) * scale
        sc = sc - jnp.max(sc, axis=-1, keepdims=True)
        p = jnp.exp(sc)
        p = p * pl.reciprocal(jnp.sum(p, axis=-1, keepdims=True), approx=True)
        ctx = jnp.einsum('bts,bsd->btd', p.astype(jnp.bfloat16), vh,
                         preferred_element_type=jnp.float32)      # (b, t, dh) f32
        # fold the head into the output projection: sum_h ctx_h @ Wo[h]  == concat(ctx) @ Wo
        acc = acc + jnp.dot(ctx.reshape(bt, dh).astype(jnp.bfloat16), wo_hd[hd],
                            preferred_element_type=jnp.float32)
    return acc + bo


# --------------------------------- fused kernel --------------------------------

def decoder_kernel(tok_ref, enc_ref,
                   wqkv_ref, wo_ref, bo_ref, ln1g_ref, ln1b_ref,
                   cwq_ref, cwkv_ref, cwo_ref, cbo_ref, ln3g_ref, ln3b_ref,
                   w1_ref, b1_ref, w2_ref, b2_ref, ln2g_ref, ln2b_ref,
                   wp_ref, bp_ref, out_ref, *, batch, heads):
    bt, e = tok_ref.shape
    b = batch
    t = bt // b
    s = enc_ref.shape[0] // b
    depth = wqkv_ref.shape[0]

    x = tok_ref[...]                               # (b*t, e) f32, stays in VMEM throughout
    enc_bf = enc_ref[...].astype(jnp.bfloat16)     # (b*s, e)

    for d in range(depth):                         # static unroll over depth (small)
        # ----- self-attention (fused QKV) + residual + LN1 -----
        x_bf = x.astype(jnp.bfloat16)
        qkv = jnp.dot(x_bf, wqkv_ref[d], preferred_element_type=jnp.float32)  # (b*t, 3e)
        q2d = qkv[:, :e]
        k3 = qkv[:, e:2 * e].reshape(b, t, e)
        v3 = qkv[:, 2 * e:].reshape(b, t, e)
        att = _attend(q2d, k3, v3, wo_ref[d], bo_ref[d], batch=b, heads=heads)
        x = _layernorm(att + x, ln1g_ref[d], ln1b_ref[d])

        # ----- cross-attention over encoder output + residual + LN3 -----
        x_bf = x.astype(jnp.bfloat16)
        qc = jnp.dot(x_bf, cwq_ref[d], preferred_element_type=jnp.float32)    # (b*t, e)
        kvc = jnp.dot(enc_bf, cwkv_ref[d], preferred_element_type=jnp.float32)  # (b*s, 2e)
        kc3 = kvc[:, :e].reshape(b, s, e)
        vc3 = kvc[:, e:].reshape(b, s, e)
        catt = _attend(qc, kc3, vc3, cwo_ref[d], cbo_ref[d], batch=b, heads=heads)
        x = _layernorm(catt + x, ln3g_ref[d], ln3b_ref[d])

        # ----- feed-forward (Linear -> ReLU -> Linear) + residual + LN2 -----
        x_bf = x.astype(jnp.bfloat16)
        h1 = jnp.dot(x_bf, w1_ref[d], preferred_element_type=jnp.float32) + b1_ref[d]
        h1 = jnp.maximum(h1, 0.0)
        ff = jnp.dot(h1.astype(jnp.bfloat16), w2_ref[d],
                     preferred_element_type=jnp.float32) + b2_ref[d]
        x = _layernorm(ff + x, ln2g_ref[d], ln2b_ref[d])

    # ----- final output projection (lane-padded to a multiple of 128 lanes) -----
    out_ref[...] = (jnp.dot(x.astype(jnp.bfloat16), wp_ref[...],
                            preferred_element_type=jnp.float32) + bp_ref[...])


# --------------------------------- wrapper -------------------------------------

def _full_spec(a):
    n = a.ndim
    return pl.BlockSpec(a.shape, lambda i, n=n: (0,) * n)


def transformer_decoder_forward(params, x, enc, h, mask):
    # tokens = torch.cat((x, h), dim=1)
    tokens = jnp.concatenate([x, h], axis=1)
    b, t, e = tokens.shape
    s = enc.shape[1]
    out_dim = params["output_dim"]
    out_pad = params["wp"].shape[1]

    tok2d = tokens.reshape(b * t, e)
    enc2d = enc.reshape(b * s, e)

    args = [tok2d, enc2d,
            params["wqkv"], params["wo"], params["bo"], params["ln1g"], params["ln1b"],
            params["cwq"], params["cwkv"], params["cwo"], params["cbo"],
            params["ln3g"], params["ln3b"],
            params["w1"], params["b1"], params["w2"], params["b2"],
            params["ln2g"], params["ln2b"],
            params["wp"], params["bp"]]

    kernel = functools.partial(decoder_kernel, batch=b, heads=params["heads"])
    out2d = pl.pallas_call(
        kernel,
        out_shape=jax.ShapeDtypeStruct((b * t, out_pad), jnp.float32),
        grid=(1,),
        in_specs=[_full_spec(a) for a in args],
        out_specs=pl.BlockSpec((b * t, out_pad), lambda i: (0, 0)),
        compiler_params=pltpu.CompilerParams(dimension_semantics=("arbitrary",)),
    )(*args)

    out = out2d.reshape(b, t, out_pad)[:, :, :out_dim]
    return out, tokens


# ------------------------------ parameter init ----------------------------------

def _linear_init(key, fan_in, fan_out, bias=True):
    # matches nn.Linear default: U(-1/sqrt(fan_in), 1/sqrt(fan_in))
    k1, k2 = jax.random.split(key)
    bound = 1.0 / float(fan_in) ** 0.5
    w = jax.random.uniform(k1, (fan_in, fan_out), jnp.float32, -bound, bound)
    if not bias:
        return w
    bvec = jax.random.uniform(k2, (1, fan_out), jnp.float32, -bound, bound)
    return w, bvec


def init_params(key, emb, heads, depth, output_dim, ff_mult=4):
    dh = emb // heads
    names = ["wqkv", "wo", "bo", "ln1g", "ln1b", "cwq", "cwkv", "cwo", "cbo",
             "ln3g", "ln3b", "w1", "b1", "w2", "b2", "ln2g", "ln2b"]
    acc = {k: [] for k in names}

    for _ in range(depth):
        key, *ks = jax.random.split(key, 12)
        wq = _linear_init(ks[0], emb, emb, bias=False)
        wk = _linear_init(ks[1], emb, emb, bias=False)
        wv = _linear_init(ks[2], emb, emb, bias=False)
        wo, bo = _linear_init(ks[3], emb, emb)
        cwq = _linear_init(ks[4], emb, emb, bias=False)
        cwk = _linear_init(ks[5], emb, emb, bias=False)
        cwv = _linear_init(ks[6], emb, emb, bias=False)
        cwo, cbo = _linear_init(ks[7], emb, emb)
        w1, b1 = _linear_init(ks[8], emb, ff_mult * emb)
        w2, b2 = _linear_init(ks[9], ff_mult * emb, emb)

        acc["wqkv"].append(jnp.concatenate([wq, wk, wv], axis=1))        # (e, 3e)
        acc["wo"].append(wo.reshape(heads, dh, emb))                     # per-head row blocks
        acc["bo"].append(bo)
        acc["ln1g"].append(jnp.ones((1, emb), jnp.float32))
        acc["ln1b"].append(jnp.zeros((1, emb), jnp.float32))
        acc["cwq"].append(cwq)
        acc["cwkv"].append(jnp.concatenate([cwk, cwv], axis=1))          # (e, 2e)
        acc["cwo"].append(cwo.reshape(heads, dh, emb))
        acc["cbo"].append(cbo)
        acc["ln3g"].append(jnp.ones((1, emb), jnp.float32))
        acc["ln3b"].append(jnp.zeros((1, emb), jnp.float32))
        acc["w1"].append(w1)
        acc["b1"].append(b1)
        acc["w2"].append(w2)
        acc["b2"].append(b2)
        acc["ln2g"].append(jnp.ones((1, emb), jnp.float32))
        acc["ln2b"].append(jnp.zeros((1, emb), jnp.float32))

    p = {k: jnp.stack(v, axis=0) for k, v in acc.items()}
    # bf16 operands for the MXU; biases / LayerNorm params stay f32 (f32 accumulation).
    for k in ["wqkv", "wo", "cwq", "cwkv", "cwo", "w1", "w2"]:
        p[k] = p[k].astype(jnp.bfloat16)

    # Output projection, lane-padded to a multiple of 128 for a lane-dense store.
    wp, bp = _linear_init(jax.random.fold_in(key, 99), emb, output_dim)
    out_pad = ((output_dim + 127) // 128) * 128
    wp_p = jnp.zeros((emb, out_pad), jnp.float32).at[:, :output_dim].set(wp)
    bp_p = jnp.zeros((1, out_pad), jnp.float32).at[:, :output_dim].set(bp)
    p.update(wp=wp_p.astype(jnp.bfloat16), bp=bp_p,
             heads=heads, output_dim=output_dim)
    return p


# ----------------------------------- main ----------------------------------------

if __name__ == "__main__":
    batch, seq_x, seq_h, seq_enc = 2, 4, 4, 8
    emb, heads, depth, output_dim = 32, 4, 2, 16

    root = jax.random.PRNGKey(0)
    kp, kx, kh, ke = jax.random.split(root, 4)

    params = init_params(kp, emb, heads, depth, output_dim)

    x = jax.random.normal(kx, (batch, seq_x, emb), jnp.float32)
    h = jax.random.normal(kh, (batch, seq_h, emb), jnp.float32)
    enc = jax.random.normal(ke, (batch, seq_enc, emb), jnp.float32)
    mask = None  # blocks are built with mask=False; mask is threaded, not applied

    out, tokens = transformer_decoder_forward(params, x, enc, h, mask)
    jax.block_until_ready((out, tokens))

    assert out.shape == (batch, seq_x + seq_h, output_dim)
    assert tokens.shape == (batch, seq_x + seq_h, emb)
    print("KERNEL_OK")
</pallas_src>

<mosaic_0001>
module attributes {stable_mosaic.version = 11 : i64} {
  func.func @decoder_kernel(%arg0: i32, %arg1: memref<16x32xf32, #tpu.memory_space<vmem>>, %arg2: memref<16x32xf32, #tpu.memory_space<vmem>>, %arg3: memref<2x32x96xbf16, #tpu.memory_space<vmem>>, %arg4: memref<2x4x8x32xbf16, #tpu.memory_space<vmem>>, %arg5: memref<2x1x32xf32, #tpu.memory_space<vmem>>, %arg6: memref<2x1x32xf32, #tpu.memory_space<vmem>>, %arg7: memref<2x1x32xf32, #tpu.memory_space<vmem>>, %arg8: memref<2x32x32xbf16, #tpu.memory_space<vmem>>, %arg9: memref<2x32x64xbf16, #tpu.memory_space<vmem>>, %arg10: memref<2x4x8x32xbf16, #tpu.memory_space<vmem>>, %arg11: memref<2x1x32xf32, #tpu.memory_space<vmem>>, %arg12: memref<2x1x32xf32, #tpu.memory_space<vmem>>, %arg13: memref<2x1x32xf32, #tpu.memory_space<vmem>>, %arg14: memref<2x32x128xbf16, #tpu.memory_space<vmem>>, %arg15: memref<2x1x128xf32, #tpu.memory_space<vmem>>, %arg16: memref<2x128x32xbf16, #tpu.memory_space<vmem>>, %arg17: memref<2x1x32xf32, #tpu.memory_space<vmem>>, %arg18: memref<2x1x32xf32, #tpu.memory_space<vmem>>, %arg19: memref<2x1x32xf32, #tpu.memory_space<vmem>>, %arg20: memref<32x128xbf16, #tpu.memory_space<vmem>>, %arg21: memref<1x128xf32, #tpu.memory_space<vmem>>, %arg22: memref<16x128xf32, #tpu.memory_space<vmem>>) attributes {dimension_semantics = [#tpu.dimension_semantics<arbitrary>], iteration_bounds = array<i64: 1>, scalar_prefetch = 0 : i64, scratch_operands = 0 : i64, tpu.core_type = #tpu.core_type<tc>, window_params = [{pipeline_mode = #tpu.pipeline_mode<synchronous>, transform_indices = @transform_0, window_bounds = array<i64: 16, 32>}, {pipeline_mode = #tpu.pipeline_mode<synchronous>, transform_indices = @transform_1, window_bounds = array<i64: 16, 32>}, {pipeline_mode = #tpu.pipeline_mode<synchronous>, transform_indices = @transform_2, window_bounds = array<i64: 2, 32, 96>}, {pipeline_mode = #tpu.pipeline_mode<synchronous>, transform_indices = @transform_3, window_bounds = array<i64: 2, 4, 8, 32>}, {pipeline_mode = #tpu.pipeline_mode<synchronous>, transform_indices = @transform_4, window_bounds = array<i64: 2, 1, 32>}, {pipeline_mode = #tpu.pipeline_mode<synchronous>, transform_indices = @transform_5, window_bounds = array<i64: 2, 1, 32>}, {pipeline_mode = #tpu.pipeline_mode<synchronous>, transform_indices = @transform_6, window_bounds = array<i64: 2, 1, 32>}, {pipeline_mode = #tpu.pipeline_mode<synchronous>, transform_indices = @transform_7, window_bounds = array<i64: 2, 32, 32>}, {pipeline_mode = #tpu.pipeline_mode<synchronous>, transform_indices = @transform_8, window_bounds = array<i64: 2, 32, 64>}, {pipeline_mode = #tpu.pipeline_mode<synchronous>, transform_indices = @transform_9, window_bounds = array<i64: 2, 4, 8, 32>}, {pipeline_mode = #tpu.pipeline_mode<synchronous>, transform_indices = @transform_10, window_bounds = array<i64: 2, 1, 32>}, {pipeline_mode = #tpu.pipeline_mode<synchronous>, transform_indices = @transform_11, window_bounds = array<i64: 2, 1, 32>}, {pipeline_mode = #tpu.pipeline_mode<synchronous>, transform_indices = @transform_12, window_bounds = array<i64: 2, 1, 32>}, {pipeline_mode = #tpu.pipeline_mode<synchronous>, transform_indices = @transform_13, window_bounds = array<i64: 2, 32, 128>}, {pipeline_mode = #tpu.pipeline_mode<synchronous>, transform_indices = @transform_14, window_bounds = array<i64: 2, 1, 128>}, {pipeline_mode = #tpu.pipeline_mode<synchronous>, transform_indices = @transform_15, window_bounds = array<i64: 2, 128, 32>}, {pipeline_mode = #tpu.pipeline_mode<synchronous>, transform_indices = @transform_16, window_bounds = array<i64: 2, 1, 32>}, {pipeline_mode = #tpu.pipeline_mode<synchronous>, transform_indices = @transform_17, window_bounds = array<i64: 2, 1, 32>}, {pipeline_mode = #tpu.pipeline_mode<synchronous>, transform_indices = @transform_18, window_bounds = array<i64: 2, 1, 32>}, {pipeline_mode = #tpu.pipeline_mode<synchronous>, transform_indices = @transform_19, window_bounds = array<i64: 32, 128>}, {pipeline_mode = #tpu.pipeline_mode<synchronous>, transform_indices = @transform_20, window_bounds = array<i64: 1, 128>}, {pipeline_mode = #tpu.pipeline_mode<synchronous>, transform_indices = @transform_21, window_bounds = array<i64: 16, 128>}]} {
    %c0 = arith.constant 0 : index
    %c0_0 = arith.constant 0 : index
    %0 = vector.load %arg1[%c0, %c0_0] : memref<16x32xf32, #tpu.memory_space<vmem>>, vector<16x32xf32>
    %c0_1 = arith.constant 0 : index
    %c0_2 = arith.constant 0 : index
    %1 = vector.load %arg2[%c0_1, %c0_2] : memref<16x32xf32, #tpu.memory_space<vmem>>, vector<16x32xf32>
    %2 = arith.truncf %1 : vector<16x32xf32> to vector<16x32xbf16>
    %3 = arith.truncf %0 : vector<16x32xf32> to vector<16x32xbf16>
    %c0_3 = arith.constant 0 : index
    %c0_4 = arith.constant 0 : index
    %c0_5 = arith.constant 0 : index
    %4 = vector.load %arg3[%c0_3, %c0_4, %c0_5] : memref<2x32x96xbf16, #tpu.memory_space<vmem>>, vector<1x32x96xbf16>
    %5 = vector.shape_cast %4 : vector<1x32x96xbf16> to vector<32x96xbf16>
    %cst = arith.constant dense<0.000000e+00> : vector<16x96xf32>
    %6 = tpu.matmul %3, %5, %cst {dimension_numbers = #tpu.dot_dimension_numbers<[1], [0], [0], [1], [0, 0, 1, 1], [], []>} : vector<16x32xbf16>, vector<32x96xbf16>, vector<16x96xf32> -> vector<16x96xf32>
    %7 = vector.extract_strided_slice %6 {offsets = [0, 0], sizes = [16, 32], strides = [1, 1]} : vector<16x96xf32> to vector<16x32xf32>
    %8 = vector.extract_strided_slice %6 {offsets = [0, 32], sizes = [16, 32], strides = [1, 1]} : vector<16x96xf32> to vector<16x32xf32>
    %9 = vector.shape_cast %8 : vector<16x32xf32> to vector<2x8x32xf32>
    %10 = vector.extract_strided_slice %6 {offsets = [0, 64], sizes = [16, 32], strides = [1, 1]} : vector<16x96xf32> to vector<16x32xf32>
    %11 = vector.shape_cast %10 : vector<16x32xf32> to vector<2x8x32xf32>
    %c0_6 = arith.constant 0 : index
    %c0_7 = arith.constant 0 : index
    %c0_8 = arith.constant 0 : index
    %c0_9 = arith.constant 0 : index
    %12 = vector.load %arg4[%c0_6, %c0_7, %c0_8, %c0_9] : memref<2x4x8x32xbf16, #tpu.memory_space<vmem>>, vector<1x4x8x32xbf16>
    %13 = vector.shape_cast %12 : vector<1x4x8x32xbf16> to vector<4x8x32xbf16>
    %c0_10 = arith.constant 0 : index
    %c0_11 = arith.constant 0 : index
    %c0_12 = arith.constant 0 : index
    %14 = vector.load %arg5[%c0_10, %c0_11, %c0_12] : memref<2x1x32xf32, #tpu.memory_space<vmem>>, vector<1x1x32xf32>
    %15 = vector.shape_cast %14 : vector<1x1x32xf32> to vector<1x32xf32>
    %16 = vector.shape_cast %7 : vector<16x32xf32> to vector<2x8x32xf32>
    %17 = arith.truncf %16 : vector<2x8x32xf32> to vector<2x8x32xbf16>
    %18 = arith.truncf %9 : vector<2x8x32xf32> to vector<2x8x32xbf16>
    %19 = arith.truncf %11 : vector<2x8x32xf32> to vector<2x8x32xbf16>
    %cst_13 = arith.constant 0.000000e+00 : f32
    %20 = vector.broadcast %cst_13 : f32 to vector<16x32xf32>
    %21 = vector.extract_strided_slice %17 {offsets = [0, 0, 0], sizes = [2, 8, 8], strides = [1, 1, 1]} : vector<2x8x32xbf16> to vector<2x8x8xbf16>
    %22 = vector.extract_strided_slice %18 {offsets = [0, 0, 0], sizes = [2, 8, 8], strides = [1, 1, 1]} : vector<2x8x32xbf16> to vector<2x8x8xbf16>
    %23 = vector.extract_strided_slice %19 {offsets = [0, 0, 0], sizes = [2, 8, 8], strides = [1, 1, 1]} : vector<2x8x32xbf16> to vector<2x8x8xbf16>
    "tpu.trace_start"() <{level = 10 : i32, message = "btd,bsd->bts"}> : () -> ()
    %cst_14 = arith.constant dense<0.000000e+00> : vector<2x8x8xf32>
    %24 = tpu.matmul %21, %22, %cst_14 {dimension_numbers = #tpu.dot_dimension_numbers<[2], [2], [1], [1], [0, 0, 0, 1, 1, 1], [0], [0]>} : vector<2x8x8xbf16>, vector<2x8x8xbf16>, vector<2x8x8xf32> -> vector<2x8x8xf32>
    "tpu.trace_stop"() : () -> ()
    %cst_15 = arith.constant 0.353553385 : f32
    %25 = vector.broadcast %cst_15 : f32 to vector<2x8x8xf32>
    %26 = arith.mulf %24, %25 : vector<2x8x8xf32>
    %cst_16 = arith.constant dense<0xFF800000> : vector<2x8xf32>
    %27 = vector.multi_reduction <maximumf>, %26, %cst_16 [2] : vector<2x8x8xf32> to vector<2x8xf32>
    %28 = vector.shape_cast %27 : vector<2x8xf32> to vector<2x8x1xf32>
    %29 = vector.broadcast %28 : vector<2x8x1xf32> to vector<2x8x8xf32>
    %30 = arith.subf %26, %29 : vector<2x8x8xf32>
    %31 = math.exp %30 : vector<2x8x8xf32>
    %cst_17 = arith.constant dense<0.000000e+00> : vector<2x8xf32>
    %32 = vector.multi_reduction <add>, %31, %cst_17 [2] : vector<2x8x8xf32> to vector<2x8xf32>
    %33 = vector.shape_cast %32 : vector<2x8xf32> to vector<2x8x1xf32>
    %34 = tpu.reciprocal %33 {approx = true} : vector<2x8x1xf32> -> vector<2x8x1xf32>
    %35 = vector.broadcast %34 : vector<2x8x1xf32> to vector<2x8x8xf32>
    %36 = arith.mulf %31, %35 : vector<2x8x8xf32>
    %37 = arith.truncf %36 : vector<2x8x8xf32> to vector<2x8x8xbf16>
    "tpu.trace_start"() <{level = 10 : i32, message = "bts,bsd->btd"}> : () -> ()
    %cst_18 = arith.constant dense<0.000000e+00> : vector<2x8x8xf32>
    %38 = tpu.matmul %37, %23, %cst_18 {dimension_numbers = #tpu.dot_dimension_numbers<[2], [1], [1], [2], [0, 0, 0, 1, 1, 2], [0], [0]>} : vector<2x8x8xbf16>, vector<2x8x8xbf16>, vector<2x8x8xf32> -> vector<2x8x8xf32>
    "tpu.trace_stop"() : () -> ()
    %39 = vector.shape_cast %38 : vector<2x8x8xf32> to vector<16x8xf32>
    %40 = arith.truncf %39 : vector<16x8xf32> to vector<16x8xbf16>
    %41 = vector.extract_strided_slice %13 {offsets = [0, 0, 0], sizes = [1, 8, 32], strides = [1, 1, 1]} : vector<4x8x32xbf16> to vector<1x8x32xbf16>
    %42 = vector.shape_cast %41 : vector<1x8x32xbf16> to vector<8x32xbf16>
    %cst_19 = arith.constant dense<0.000000e+00> : vector<16x32xf32>
    %43 = tpu.matmul %40, %42, %cst_19 {dimension_numbers = #tpu.dot_dimension_numbers<[1], [0], [0], [1], [0, 0, 1, 1], [], []>} : vector<16x8xbf16>, vector<8x32xbf16>, vector<16x32xf32> -> vector<16x32xf32>
    %44 = arith.addf %20, %43 : vector<16x32xf32>
    %45 = vector.extract_strided_slice %17 {offsets = [0, 0, 8], sizes = [2, 8, 8], strides = [1, 1, 1]} : vector<2x8x32xbf16> to vector<2x8x8xbf16>
    %46 = vector.extract_strided_slice %18 {offsets = [0, 0, 8], sizes = [2, 8, 8], strides = [1, 1, 1]} : vector<2x8x32xbf16> to vector<2x8x8xbf16>
    %47 = vector.extract_strided_slice %19 {offsets = [0, 0, 8], sizes = [2, 8, 8], strides = [1, 1, 1]} : vector<2x8x32xbf16> to vector<2x8x8xbf16>
    "tpu.trace_start"() <{level = 10 : i32, message = "btd,bsd->bts"}> : () -> ()
    %cst_20 = arith.constant dense<0.000000e+00> : vector<2x8x8xf32>
    %48 = tpu.matmul %45, %46, %cst_20 {dimension_numbers = #tpu.dot_dimension_numbers<[2], [2], [1], [1], [0, 0, 0, 1, 1, 1], [0], [0]>} : vector<2x8x8xbf16>, vector<2x8x8xbf16>, vector<2x8x8xf32> -> vector<2x8x8xf32>
    "tpu.trace_stop"() : () -> ()
    %cst_21 = arith.constant 0.353553385 : f32
    %49 = vector.broadcast %cst_21 : f32 to vector<2x8x8xf32>
    %50 = arith.mulf %48, %49 : vector<2x8x8xf32>
    %cst_22 = arith.constant dense<0xFF800000> : vector<2x8xf32>
    %51 = vector.multi_reduction <maximumf>, %50, %cst_22 [2] : vector<2x8x8xf32> to vector<2x8xf32>
    %52 = vector.shape_cast %51 : vector<2x8xf32> to vector<2x8x1xf32>
    %53 = vector.broadcast %52 : vector<2x8x1xf32> to vector<2x8x8xf32>
    %54 = arith.subf %50, %53 : vector<2x8x8xf32>
    %55 = math.exp %54 : vector<2x8x8xf32>
    %cst_23 = arith.constant dense<0.000000e+00> : vector<2x8xf32>
    %56 = vector.multi_reduction <add>, %55, %cst_23 [2] : vector<2x8x8xf32> to vector<2x8xf32>
    %57 = vector.shape_cast %56 : vector<2x8xf32> to vector<2x8x1xf32>
    %58 = tpu.reciprocal %57 {approx = true} : vector<2x8x1xf32> -> vector<2x8x1xf32>
    %59 = vector.broadcast %58 : vector<2x8x1xf32> to vector<2x8x8xf32>
    %60 = arith.mulf %55, %59 : vector<2x8x8xf32>
    %61 = arith.truncf %60 : vector<2x8x8xf32> to vector<2x8x8xbf16>
    "tpu.trace_start"() <{level = 10 : i32, message = "bts,bsd->btd"}> : () -> ()
    %cst_24 = arith.constant dense<0.000000e+00> : vector<2x8x8xf32>
    %62 = tpu.matmul %61, %47, %cst_24 {dimension_numbers = #tpu.dot_dimension_numbers<[2], [1], [1], [2], [0, 0, 0, 1, 1, 2], [0], [0]>} : vector<2x8x8xbf16>, vector<2x8x8xbf16>, vector<2x8x8xf32> -> vector<2x8x8xf32>
    "tpu.trace_stop"() : () -> ()
    %63 = vector.shape_cast %62 : vector<2x8x8xf32> to vector<16x8xf32>
    %64 = arith.truncf %63 : vector<16x8xf32> to vector<16x8xbf16>
    %65 = vector.extract_strided_slice %13 {offsets = [1, 0, 0], sizes = [1, 8, 32], strides = [1, 1, 1]} : vector<4x8x32xbf16> to vector<1x8x32xbf16>
    %66 = vector.shape_cast %65 : vector<1x8x32xbf16> to vector<8x32xbf16>
    %cst_25 = arith.constant dense<0.000000e+00> : vector<16x32xf32>
    %67 = tpu.matmul %64, %66, %cst_25 {dimension_numbers = #tpu.dot_dimension_numbers<[1], [0], [0], [1], [0, 0, 1, 1], [], []>} : vector<16x8xbf16>, vector<8x32xbf16>, vector<16x32xf32> -> vector<16x32xf32>
    %68 = arith.addf %44, %67 : vector<16x32xf32>
    %69 = vector.extract_strided_slice %17 {offsets = [0, 0, 16], sizes = [2, 8, 8], strides = [1, 1, 1]} : vector<2x8x32xbf16> to vector<2x8x8xbf16>
    %70 = vector.extract_strided_slice %18 {offsets = [0, 0, 16], sizes = [2, 8, 8], strides = [1, 1, 1]} : vector<2x8x32xbf16> to vector<2x8x8xbf16>
    %71 = vector.extract_strided_slice %19 {offsets = [0, 0, 16], sizes = [2, 8, 8], strides = [1, 1, 1]} : vector<2x8x32xbf16> to vector<2x8x8xbf16>
    "tpu.trace_start"() <{level = 10 : i32, message = "btd,bsd->bts"}> : () -> ()
    %cst_26 = arith.constant dense<0.000000e+00> : vector<2x8x8xf32>
    %72 = tpu.matmul %69, %70, %cst_26 {dimension_numbers = #tpu.dot_dimension_numbers<[2], [2], [1], [1], [0, 0, 0, 1, 1, 1], [0], [0]>} : vector<2x8x8xbf16>, vector<2x8x8xbf16>, vector<2x8x8xf32> -> vector<2x8x8xf32>
    "tpu.trace_stop"() : () -> ()
    %cst_27 = arith.constant 0.353553385 : f32
    %73 = vector.broadcast %cst_27 : f32 to vector<2x8x8xf32>
    %74 = arith.mulf %72, %73 : vector<2x8x8xf32>
    %cst_28 = arith.constant dense<0xFF800000> : vector<2x8xf32>
    %75 = vector.multi_reduction <maximumf>, %74, %cst_28 [2] : vector<2x8x8xf32> to vector<2x8xf32>
    %76 = vector.shape_cast %75 : vector<2x8xf32> to vector<2x8x1xf32>
    %77 = vector.broadcast %76 : vector<2x8x1xf32> to vector<2x8x8xf32>
    %78 = arith.subf %74, %77 : vector<2x8x8xf32>
    %79 = math.exp %78 : vector<2x8x8xf32>
    %cst_29 = arith.constant dense<0.000000e+00> : vector<2x8xf32>
    %80 = vector.multi_reduction <add>, %79, %cst_29 [2] : vector<2x8x8xf32> to vector<2x8xf32>
    %81 = vector.shape_cast %80 : vector<2x8xf32> to vector<2x8x1xf32>
    %82 = tpu.reciprocal %81 {approx = true} : vector<2x8x1xf32> -> vector<2x8x1xf32>
    %83 = vector.broadcast %82 : vector<2x8x1xf32> to vector<2x8x8xf32>
    %84 = arith.mulf %79, %83 : vector<2x8x8xf32>
    %85 = arith.truncf %84 : vector<2x8x8xf32> to vector<2x8x8xbf16>
    "tpu.trace_start"() <{level = 10 : i32, message = "bts,bsd->btd"}> : () -> ()
    %cst_30 = arith.constant dense<0.000000e+00> : vector<2x8x8xf32>
    %86 = tpu.matmul %85, %71, %cst_30 {dimension_numbers = #tpu.dot_dimension_numbers<[2], [1], [1], [2], [0, 0, 0, 1, 1, 2], [0], [0]>} : vector<2x8x8xbf16>, vector<2x8x8xbf16>, vector<2x8x8xf32> -> vector<2x8x8xf32>
    "tpu.trace_stop"() : () -> ()
    %87 = vector.shape_cast %86 : vector<2x8x8xf32> to vector<16x8xf32>
    %88 = arith.truncf %87 : vector<16x8xf32> to vector<16x8xbf16>
    %89 = vector.extract_strided_slice %13 {offsets = [2, 0, 0], sizes = [1, 8, 32], strides = [1, 1, 1]} : vector<4x8x32xbf16> to vector<1x8x32xbf16>
    %90 = vector.shape_cast %89 : vector<1x8x32xbf16> to vector<8x32xbf16>
    %cst_31 = arith.constant dense<0.000000e+00> : vector<16x32xf32>
    %91 = tpu.matmul %88, %90, %cst_31 {dimension_numbers = #tpu.dot_dimension_numbers<[1], [0], [0], [1], [0, 0, 1, 1], [], []>} : vector<16x8xbf16>, vector<8x32xbf16>, vector<16x32xf32> -> vector<16x32xf32>
    %92 = arith.addf %68, %91 : vector<16x32xf32>
    %93 = vector.extract_strided_slice %17 {offsets = [0, 0, 24], sizes = [2, 8, 8], strides = [1, 1, 1]} : vector<2x8x32xbf16> to vector<2x8x8xbf16>
    %94 = vector.extract_strided_slice %18 {offsets = [0, 0, 24], sizes = [2, 8, 8], strides = [1, 1, 1]} : vector<2x8x32xbf16> to vector<2x8x8xbf16>
    %95 = vector.extract_strided_slice %19 {offsets = [0, 0, 24], sizes = [2, 8, 8], strides = [1, 1, 1]} : vector<2x8x32xbf16> to vector<2x8x8xbf16>
    "tpu.trace_start"() <{level = 10 : i32, message = "btd,bsd->bts"}> : () -> ()
    %cst_32 = arith.constant dense<0.000000e+00> : vector<2x8x8xf32>
    %96 = tpu.matmul %93, %94, %cst_32 {dimension_numbers = #tpu.dot_dimension_numbers<[2], [2], [1], [1], [0, 0, 0, 1, 1, 1], [0], [0]>} : vector<2x8x8xbf16>, vector<2x8x8xbf16>, vector<2x8x8xf32> -> vector<2x8x8xf32>
    "tpu.trace_stop"() : () -> ()
    %cst_33 = arith.constant 0.353553385 : f32
    %97 = vector.broadcast %cst_33 : f32 to vector<2x8x8xf32>
    %98 = arith.mulf %96, %97 : vector<2x8x8xf32>
    %cst_34 = arith.constant dense<0xFF800000> : vector<2x8xf32>
    %99 = vector.multi_reduction <maximumf>, %98, %cst_34 [2] : vector<2x8x8xf32> to vector<2x8xf32>
    %100 = vector.shape_cast %99 : vector<2x8xf32> to vector<2x8x1xf32>
    %101 = vector.broadcast %100 : vector<2x8x1xf32> to vector<2x8x8xf32>
    %102 = arith.subf %98, %101 : vector<2x8x8xf32>
    %103 = math.exp %102 : vector<2x8x8xf32>
    %cst_35 = arith.constant dense<0.000000e+00> : vector<2x8xf32>
    %104 = vector.multi_reduction <add>, %103, %cst_35 [2] : vector<2x8x8xf32> to vector<2x8xf32>
    %105 = vector.shape_cast %104 : vector<2x8xf32> to vector<2x8x1xf32>
    %106 = tpu.reciprocal %105 {approx = true} : vector<2x8x1xf32> -> vector<2x8x1xf32>
    %107 = vector.broadcast %106 : vector<2x8x1xf32> to vector<2x8x8xf32>
    %108 = arith.mulf %103, %107 : vector<2x8x8xf32>
    %109 = arith.truncf %108 : vector<2x8x8xf32> to vector<2x8x8xbf16>
    "tpu.trace_start"() <{level = 10 : i32, message = "bts,bsd->btd"}> : () -> ()
    %cst_36 = arith.constant dense<0.000000e+00> : vector<2x8x8xf32>
    %110 = tpu.matmul %109, %95, %cst_36 {dimension_numbers = #tpu.dot_dimension_numbers<[2], [1], [1], [2], [0, 0, 0, 1, 1, 2], [0], [0]>} : vector<2x8x8xbf16>, vector<2x8x8xbf16>, vector<2x8x8xf32> -> vector<2x8x8xf32>
    "tpu.trace_stop"() : () -> ()
    %111 = vector.shape_cast %110 : vector<2x8x8xf32> to vector<16x8xf32>
    %112 = arith.truncf %111 : vector<16x8xf32> to vector<16x8xbf16>
    %113 = vector.extract_strided_slice %13 {offsets = [3, 0, 0], sizes = [1, 8, 32], strides = [1, 1, 1]} : vector<4x8x32xbf16> to vector<1x8x32xbf16>
    %114 = vector.shape_cast %113 : vector<1x8x32xbf16> to vector<8x32xbf16>
    %cst_37 = arith.constant dense<0.000000e+00> : vector<16x32xf32>
    %115 = tpu.matmul %112, %114, %cst_37 {dimension_numbers = #tpu.dot_dimension_numbers<[1], [0], [0], [1], [0, 0, 1, 1], [], []>} : vector<16x8xbf16>, vector<8x32xbf16>, vector<16x32xf32> -> vector<16x32xf32>
    %116 = arith.addf %92, %115 : vector<16x32xf32>
    %117 = vector.broadcast %15 : vector<1x32xf32> to vector<16x32xf32>
    %118 = arith.addf %116, %117 : vector<16x32xf32>
    %119 = arith.addf %118, %0 : vector<16x32xf32>
    %c0_38 = arith.constant 0 : index
    %c0_39 = arith.constant 0 : index
    %c0_40 = arith.constant 0 : index
    %120 = vector.load %arg6[%c0_38, %c0_39, %c0_40] : memref<2x1x32xf32, #tpu.memory_space<vmem>>, vector<1x1x32xf32>
    %121 = vector.shape_cast %120 : vector<1x1x32xf32> to vector<1x32xf32>
    %c0_41 = arith.constant 0 : index
    %c0_42 = arith.constant 0 : index
    %c0_43 = arith.constant 0 : index
    %122 = vector.load %arg7[%c0_41, %c0_42, %c0_43] : memref<2x1x32xf32, #tpu.memory_space<vmem>>, vector<1x1x32xf32>
    %123 = vector.shape_cast %122 : vector<1x1x32xf32> to vector<1x32xf32>
    %cst_44 = arith.constant dense<0.000000e+00> : vector<16xf32>
    %124 = vector.multi_reduction <add>, %119, %cst_44 [1] : vector<16x32xf32> to vector<16xf32>
    %125 = vector.shape_cast %124 : vector<16xf32> to vector<16x1xf32>
    %cst_45 = arith.constant 3.200000e+01 : f32
    %126 = vector.broadcast %cst_45 : f32 to vector<16x1xf32>
    %127 = arith.divf %125, %126 : vector<16x1xf32>
    %128 = arith.mulf %119, %119 : vector<16x32xf32>
    %cst_46 = arith.constant dense<0.000000e+00> : vector<16xf32>
    %129 = vector.multi_reduction <add>, %128, %cst_46 [1] : vector<16x32xf32> to vector<16xf32>
    %130 = vector.shape_cast %129 : vector<16xf32> to vector<16x1xf32>
    %cst_47 = arith.constant 3.200000e+01 : f32
    %131 = vector.broadcast %cst_47 : f32 to vector<16x1xf32>
    %132 = arith.divf %130, %131 : vector<16x1xf32>
    %133 = arith.mulf %127, %127 : vector<16x1xf32>
    %134 = arith.subf %132, %133 : vector<16x1xf32>
    %135 = vector.broadcast %127 : vector<16x1xf32> to vector<16x32xf32>
    %136 = arith.subf %119, %135 : vector<16x32xf32>
    %cst_48 = arith.constant 9.99999974E-6 : f32
    %137 = vector.broadcast %cst_48 : f32 to vector<16x1xf32>
    %138 = arith.addf %134, %137 : vector<16x1xf32>
    %139 = math.rsqrt %138 : vector<16x1xf32>
    %140 = vector.broadcast %139 : vector<16x1xf32> to vector<16x32xf32>
    %141 = arith.mulf %136, %140 : vector<16x32xf32>
    %142 = vector.broadcast %121 : vector<1x32xf32> to vector<16x32xf32>
    %143 = arith.mulf %141, %142 : vector<16x32xf32>
    %144 = vector.broadcast %123 : vector<1x32xf32> to vector<16x32xf32>
    %145 = arith.addf %143, %144 : vector<16x32xf32>
    %146 = arith.truncf %145 : vector<16x32xf32> to vector<16x32xbf16>
    %c0_49 = arith.constant 0 : index
    %c0_50 = arith.constant 0 : index
    %c0_51 = arith.constant 0 : index
    %147 = vector.load %arg8[%c0_49, %c0_50, %c0_51] : memref<2x32x32xbf16, #tpu.memory_space<vmem>>, vector<1x32x32xbf16>
    %148 = vector.shape_cast %147 : vector<1x32x32xbf16> to vector<32x32xbf16>
    %cst_52 = arith.constant dense<0.000000e+00> : vector<16x32xf32>
    %149 = tpu.matmul %146, %148, %cst_52 {dimension_numbers = #tpu.dot_dimension_numbers<[1], [0], [0], [1], [0, 0, 1, 1], [], []>} : vector<16x32xbf16>, vector<32x32xbf16>, vector<16x32xf32> -> vector<16x32xf32>
    %c0_53 = arith.constant 0 : index
    %c0_54 = arith.constant 0 : index
    %c0_55 = arith.constant 0 : index
    %150 = vector.load %arg9[%c0_53, %c0_54, %c0_55] : memref<2x32x64xbf16, #tpu.memory_space<vmem>>, vector<1x32x64xbf16>
    %151 = vector.shape_cast %150 : vector<1x32x64xbf16> to vector<32x64xbf16>
    %cst_56 = arith.constant dense<0.000000e+00> : vector<16x64xf32>
    %152 = tpu.matmul %2, %151, %cst_56 {dimension_numbers = #tpu.dot_dimension_numbers<[1], [0], [0], [1], [0, 0, 1, 1], [], []>} : vector<16x32xbf16>, vector<32x64xbf16>, vector<16x64xf32> -> vector<16x64xf32>
    %153 = vector.extract_strided_slice %152 {offsets = [0, 0], sizes = [16, 32], strides = [1, 1]} : vector<16x64xf32> to vector<16x32xf32>
    %154 = vector.shape_cast %153 : vector<16x32xf32> to vector<2x8x32xf32>
    %155 = vector.extract_strided_slice %152 {offsets = [0, 32], sizes = [16, 32], strides = [1, 1]} : vector<16x64xf32> to vector<16x32xf32>
    %156 = vector.shape_cast %155 : vector<16x32xf32> to vector<2x8x32xf32>
    %c0_57 = arith.constant 0 : index
    %c0_58 = arith.constant 0 : index
    %c0_59 = arith.constant 0 : index
    %c0_60 = arith.constant 0 : index
    %157 = vector.load %arg10[%c0_57, %c0_58, %c0_59, %c0_60] : memref<2x4x8x32xbf16, #tpu.memory_space<vmem>>, vector<1x4x8x32xbf16>
    %158 = vector.shape_cast %157 : vector<1x4x8x32xbf16> to vector<4x8x32xbf16>
    %c0_61 = arith.constant 0 : index
    %c0_62 = arith.constant 0 : index
    %c0_63 = arith.constant 0 : index
    %159 = vector.load %arg11[%c0_61, %c0_62, %c0_63] : memref<2x1x32xf32, #tpu.memory_space<vmem>>, vector<1x1x32xf32>
    %160 = vector.shape_cast %159 : vector<1x1x32xf32> to vector<1x32xf32>
    %161 = vector.shape_cast %149 : vector<16x32xf32> to vector<2x8x32xf32>
    %162 = arith.truncf %161 : vector<2x8x32xf32> to vector<2x8x32xbf16>
    %163 = arith.truncf %154 : vector<2x8x32xf32> to vector<2x8x32xbf16>
    %164 = arith.truncf %156 : vector<2x8x32xf32> to vector<2x8x32xbf16>
    %cst_64 = arith.constant 0.000000e+00 : f32
    %165 = vector.broadcast %cst_64 : f32 to vector<16x32xf32>
    %166 = vector.extract_strided_slice %162 {offsets = [0, 0, 0], sizes = [2, 8, 8], strides = [1, 1, 1]} : vector<2x8x32xbf16> to vector<2x8x8xbf16>
    %167 = vector.extract_strided_slice %163 {offsets = [0, 0, 0], sizes = [2, 8, 8], strides = [1, 1, 1]} : vector<2x8x32xbf16> to vector<2x8x8xbf16>
    %168 = vector.extract_strided_slice %164 {offsets = [0, 0, 0], sizes = [2, 8, 8], strides = [1, 1, 1]} : vector<2x8x32xbf16> to vector<2x8x8xbf16>
    "tpu.trace_start"() <{level = 10 : i32, message = "btd,bsd->bts"}> : () -> ()
    %cst_65 = arith.constant dense<0.000000e+00> : vector<2x8x8xf32>
    %169 = tpu.matmul %166, %167, %cst_65 {dimension_numbers = #tpu.dot_dimension_numbers<[2], [2], [1], [1], [0, 0, 0, 1, 1, 1], [0], [0]>} : vector<2x8x8xbf16>, vector<2x8x8xbf16>, vector<2x8x8xf32> -> vector<2x8x8xf32>
    "tpu.trace_stop"() : () -> ()
    %cst_66 = arith.constant 0.353553385 : f32
    %170 = vector.broadcast %cst_66 : f32 to vector<2x8x8xf32>
    %171 = arith.mulf %169, %170 : vector<2x8x8xf32>
    %cst_67 = arith.constant dense<0xFF800000> : vector<2x8xf32>
    %172 = vector.multi_reduction <maximumf>, %171, %cst_67 [2] : vector<2x8x8xf32> to vector<2x8xf32>
    %173 = vector.shape_cast %172 : vector<2x8xf32> to vector<2x8x1xf32>
    %174 = vector.broadcast %173 : vector<2x8x1xf32> to vector<2x8x8xf32>
    %175 = arith.subf %171, %174 : vector<2x8x8xf32>
    %176 = math.exp %175 : vector<2x8x8xf32>
    %cst_68 = arith.constant dense<0.000000e+00> : vector<2x8xf32>
    %177 = vector.multi_reduction <add>, %176, %cst_68 [2] : vector<2x8x8xf32> to vector<2x8xf32>
    %178 = vector.shape_cast %177 : vector<2x8xf32> to vector<2x8x1xf32>
    %179 = tpu.reciprocal %178 {approx = true} : vector<2x8x1xf32> -> vector<2x8x1xf32>
    %180 = vector.broadcast %179 : vector<2x8x1xf32> to vector<2x8x8xf32>
    %181 = arith.mulf %176, %180 : vector<2x8x8xf32>
    %182 = arith.truncf %181 : vector<2x8x8xf32> to vector<2x8x8xbf16>
    "tpu.trace_start"() <{level = 10 : i32, message = "bts,bsd->btd"}> : () -> ()
    %cst_69 = arith.constant dense<0.000000e+00> : vector<2x8x8xf32>
    %183 = tpu.matmul %182, %168, %cst_69 {dimension_numbers = #tpu.dot_dimension_numbers<[2], [1], [1], [2], [0, 0, 0, 1, 1, 2], [0], [0]>} : vector<2x8x8xbf16>, vector<2x8x8xbf16>, vector<2x8x8xf32> -> vector<2x8x8xf32>
    "tpu.trace_stop"() : () -> ()
    %184 = vector.shape_cast %183 : vector<2x8x8xf32> to vector<16x8xf32>
    %185 = arith.truncf %184 : vector<16x8xf32> to vector<16x8xbf16>
    %186 = vector.extract_strided_slice %158 {offsets = [0, 0, 0], sizes = [1, 8, 32], strides = [1, 1, 1]} : vector<4x8x32xbf16> to vector<1x8x32xbf16>
    %187 = vector.shape_cast %186 : vector<1x8x32xbf16> to vector<8x32xbf16>
    %cst_70 = arith.constant dense<0.000000e+00> : vector<16x32xf32>
    %188 = tpu.matmul %185, %187, %cst_70 {dimension_numbers = #tpu.dot_dimension_numbers<[1], [0], [0], [1], [0, 0, 1, 1], [], []>} : vector<16x8xbf16>, vector<8x32xbf16>, vector<16x32xf32> -> vector<16x32xf32>
    %189 = arith.addf %165, %188 : vector<16x32xf32>
    %190 = vector.extract_strided_slice %162 {offsets = [0, 0, 8], sizes = [2, 8, 8], strides = [1, 1, 1]} : vector<2x8x32xbf16> to vector<2x8x8xbf16>
    %191 = vector.extract_strided_slice %163 {offsets = [0, 0, 8], sizes = [2, 8, 8], strides = [1, 1, 1]} : vector<2x8x32xbf16> to vector<2x8x8xbf16>
    %192 = vector.extract_strided_slice %164 {offsets = [0, 0, 8], sizes = [2, 8, 8], strides = [1, 1, 1]} : vector<2x8x32xbf16> to vector<2x8x8xbf16>
    "tpu.trace_start"() <{level = 10 : i32, message = "btd,bsd->bts"}> : () -> ()
    %cst_71 = arith.constant dense<0.000000e+00> : vector<2x8x8xf32>
    %193 = tpu.matmul %190, %191, %cst_71 {dimension_numbers = #tpu.dot_dimension_numbers<[2], [2], [1], [1], [0, 0, 0, 1, 1, 1], [0], [0]>} : vector<2x8x8xbf16>, vector<2x8x8xbf16>, vector<2x8x8xf32> -> vector<2x8x8xf32>
    "tpu.trace_stop"() : () -> ()
    %cst_72 = arith.constant 0.353553385 : f32
    %194 = vector.broadcast %cst_72 : f32 to vector<2x8x8xf32>
    %195 = arith.mulf %193, %194 : vector<2x8x8xf32>
    %cst_73 = arith.constant dense<0xFF800000> : vector<2x8xf32>
    %196 = vector.multi_reduction <maximumf>, %195, %cst_73 [2] : vector<2x8x8xf32> to vector<2x8xf32>
    %197 = vector.shape_cast %196 : vector<2x8xf32> to vector<2x8x1xf32>
    %198 = vector.broadcast %197 : vector<2x8x1xf32> to vector<2x8x8xf32>
    %199 = arith.subf %195, %198 : vector<2x8x8xf32>
    %200 = math.exp %199 : vector<2x8x8xf32>
    %cst_74 = arith.constant dense<0.000000e+00> : vector<2x8xf32>
    %201 = vector.multi_reduction <add>, %200, %cst_74 [2] : vector<2x8x8xf32> to vector<2x8xf32>
    %202 = vector.shape_cast %201 : vector<2x8xf32> to vector<2x8x1xf32>
    %203 = tpu.reciprocal %202 {approx = true} : vector<2x8x1xf32> -> vector<2x8x1xf32>
    %204 = vector.broadcast %203 : vector<2x8x1xf32> to vector<2x8x8xf32>
    %205 = arith.mulf %200, %204 : vector<2x8x8xf32>
    %206 = arith.truncf %205 : vector<2x8x8xf32> to vector<2x8x8xbf16>
    "tpu.trace_start"() <{level = 10 : i32, message = "bts,bsd->btd"}> : () -> ()
    %cst_75 = arith.constant dense<0.000000e+00> : vector<2x8x8xf32>
    %207 = tpu.matmul %206, %192, %cst_75 {dimension_numbers = #tpu.dot_dimension_numbers<[2], [1], [1], [2], [0, 0, 0, 1, 1, 2], [0], [0]>} : vector<2x8x8xbf16>, vector<2x8x8xbf16>, vector<2x8x8xf32> -> vector<2x8x8xf32>
    "tpu.trace_stop"() : () -> ()
    %208 = vector.shape_cast %207 : vector<2x8x8xf32> to vector<16x8xf32>
    %209 = arith.truncf %208 : vector<16x8xf32> to vector<16x8xbf16>
    %210 = vector.extract_strided_slice %158 {offsets = [1, 0, 0], sizes = [1, 8, 32], strides = [1, 1, 1]} : vector<4x8x32xbf16> to vector<1x8x32xbf16>
    %211 = vector.shape_cast %210 : vector<1x8x32xbf16> to vector<8x32xbf16>
    %cst_76 = arith.constant dense<0.000000e+00> : vector<16x32xf32>
    %212 = tpu.matmul %209, %211, %cst_76 {dimension_numbers = #tpu.dot_dimension_numbers<[1], [0], [0], [1], [0, 0, 1, 1], [], []>} : vector<16x8xbf16>, vector<8x32xbf16>, vector<16x32xf32> -> vector<16x32xf32>
    %213 = arith.addf %189, %212 : vector<16x32xf32>
    %214 = vector.extract_strided_slice %162 {offsets = [0, 0, 16], sizes = [2, 8, 8], strides = [1, 1, 1]} : vector<2x8x32xbf16> to vector<2x8x8xbf16>
    %215 = vector.extract_strided_slice %163 {offsets = [0, 0, 16], sizes = [2, 8, 8], strides = [1, 1, 1]} : vector<2x8x32xbf16> to vector<2x8x8xbf16>
    %216 = vector.extract_strided_slice %164 {offsets = [0, 0, 16], sizes = [2, 8, 8], strides = [1, 1, 1]} : vector<2x8x32xbf16> to vector<2x8x8xbf16>
    "tpu.trace_start"() <{level = 10 : i32, message = "btd,bsd->bts"}> : () -> ()
    %cst_77 = arith.constant dense<0.000000e+00> : vector<2x8x8xf32>
    %217 = tpu.matmul %214, %215, %cst_77 {dimension_numbers = #tpu.dot_dimension_numbers<[2], [2], [1], [1], [0, 0, 0, 1, 1, 1], [0], [0]>} : vector<2x8x8xbf16>, vector<2x8x8xbf16>, vector<2x8x8xf32> -> vector<2x8x8xf32>
    "tpu.trace_stop"() : () -> ()
    %cst_78 = arith.constant 0.353553385 : f32
    %218 = vector.broadcast %cst_78 : f32 to vector<2x8x8xf32>
    %219 = arith.mulf %217, %218 : vector<2x8x8xf32>
    %cst_79 = arith.constant dense<0xFF800000> : vector<2x8xf32>
    %220 = vector.multi_reduction <maximumf>, %219, %cst_79 [2] : vector<2x8x8xf32> to vector<2x8xf32>
    %221 = vector.shape_cast %220 : vector<2x8xf32> to vector<2x8x1xf32>
    %222 = vector.broadcast %221 : vector<2x8x1xf32> to vector<2x8x8xf32>
    %223 = arith.subf %219, %222 : vector<2x8x8xf32>
    %224 = math.exp %223 : vector<2x8x8xf32>
    %cst_80 = arith.constant dense<0.000000e+00> : vector<2x8xf32>
    %225 = vector.multi_reduction <add>, %224, %cst_80 [2] : vector<2x8x8xf32> to vector<2x8xf32>
    %226 = vector.shape_cast %225 : vector<2x8xf32> to vector<2x8x1xf32>
    %227 = tpu.reciprocal %226 {approx = true} : vector<2x8x1xf32> -> vector<2x8x1xf32>
    %228 = vector.broadcast %227 : vector<2x8x1xf32> to vector<2x8x8xf32>
    %229 = arith.mulf %224, %228 : vector<2x8x8xf32>
    %230 = arith.truncf %229 : vector<2x8x8xf32> to vector<2x8x8xbf16>
    "tpu.trace_start"() <{level = 10 : i32, message = "bts,bsd->btd"}> : () -> ()
    %cst_81 = arith.constant dense<0.000000e+00> : vector<2x8x8xf32>
    %231 = tpu.matmul %230, %216, %cst_81 {dimension_numbers = #tpu.dot_dimension_numbers<[2], [1], [1], [2], [0, 0, 0, 1, 1, 2], [0], [0]>} : vector<2x8x8xbf16>, vector<2x8x8xbf16>, vector<2x8x8xf32> -> vector<2x8x8xf32>
    "tpu.trace_stop"() : () -> ()
    %232 = vector.shape_cast %231 : vector<2x8x8xf32> to vector<16x8xf32>
    %233 = arith.truncf %232 : vector<16x8xf32> to vector<16x8xbf16>
    %234 = vector.extract_strided_slice %158 {offsets = [2, 0, 0], sizes = [1, 8, 32], strides = [1, 1, 1]} : vector<4x8x32xbf16> to vector<1x8x32xbf16>
    %235 = vector.shape_cast %234 : vector<1x8x32xbf16> to vector<8x32xbf16>
    %cst_82 = arith.constant dense<0.000000e+00> : vector<16x32xf32>
    %236 = tpu.matmul %233, %235, %cst_82 {dimension_numbers = #tpu.dot_dimension_numbers<[1], [0], [0], [1], [0, 0, 1, 1], [], []>} : vector<16x8xbf16>, vector<8x32xbf16>, vector<16x32xf32> -> vector<16x32xf32>
    %237 = arith.addf %213, %236 : vector<16x32xf32>
    %238 = vector.extract_strided_slice %162 {offsets = [0, 0, 24], sizes = [2, 8, 8], strides = [1, 1, 1]} : vector<2x8x32xbf16> to vector<2x8x8xbf16>
    %239 = vector.extract_strided_slice %163 {offsets = [0, 0, 24], sizes = [2, 8, 8], strides = [1, 1, 1]} : vector<2x8x32xbf16> to vector<2x8x8xbf16>
    %240 = vector.extract_strided_slice %164 {offsets = [0, 0, 24], sizes = [2, 8, 8], strides = [1, 1, 1]} : vector<2x8x32xbf16> to vector<2x8x8xbf16>
    "tpu.trace_start"() <{level = 10 : i32, message = "btd,bsd->bts"}> : () -> ()
    %cst_83 = arith.constant dense<0.000000e+00> : vector<2x8x8xf32>
    %241 = tpu.matmul %238, %239, %cst_83 {dimension_numbers = #tpu.dot_dimension_numbers<[2], [2], [1], [1], [0, 0, 0, 1, 1, 1], [0], [0]>} : vector<2x8x8xbf16>, vector<2x8x8xbf16>, vector<2x8x8xf32> -> vector<2x8x8xf32>
    "tpu.trace_stop"() : () -> ()
    %cst_84 = arith.constant 0.353553385 : f32
    %242 = vector.broadcast %cst_84 : f32 to vector<2x8x8xf32>
    %243 = arith.mulf %241, %242 : vector<2x8x8xf32>
    %cst_85 = arith.constant dense<0xFF800000> : vector<2x8xf32>
    %244 = vector.multi_reduction <maximumf>, %243, %cst_85 [2] : vector<2x8x8xf32> to vector<2x8xf32>
    %245 = vector.shape_cast %244 : vector<2x8xf32> to vector<2x8x1xf32>
    %246 = vector.broadcast %245 : vector<2x8x1xf32> to vector<2x8x8xf32>
    %247 = arith.subf %243, %246 : vector<2x8x8xf32>
    %248 = math.exp %247 : vector<2x8x8xf32>
    %cst_86 = arith.constant dense<0.000000e+00> : vector<2x8xf32>
    %249 = vector.multi_reduction <add>, %248, %cst_86 [2] : vector<2x8x8xf32> to vector<2x8xf32>
    %250 = vector.shape_cast %249 : vector<2x8xf32> to vector<2x8x1xf32>
    %251 = tpu.reciprocal %250 {approx = true} : vector<2x8x1xf32> -> vector<2x8x1xf32>
    %252 = vector.broadcast %251 : vector<2x8x1xf32> to vector<2x8x8xf32>
    %253 = arith.mulf %248, %252 : vector<2x8x8xf32>
    %254 = arith.truncf %253 : vector<2x8x8xf32> to vector<2x8x8xbf16>
    "tpu.trace_start"() <{level = 10 : i32, message = "bts,bsd->btd"}> : () -> ()
    %cst_87 = arith.constant dense<0.000000e+00> : vector<2x8x8xf32>
    %255 = tpu.matmul %254, %240, %cst_87 {dimension_numbers = #tpu.dot_dimension_numbers<[2], [1], [1], [2], [0, 0, 0, 1, 1, 2], [0], [0]>} : vector<2x8x8xbf16>, vector<2x8x8xbf16>, vector<2x8x8xf32> -> vector<2x8x8xf32>
    "tpu.trace_stop"() : () -> ()
    %256 = vector.shape_cast %255 : vector<2x8x8xf32> to vector<16x8xf32>
    %257 = arith.truncf %256 : vector<16x8xf32> to vector<16x8xbf16>
    %258 = vector.extract_strided_slice %158 {offsets = [3, 0, 0], sizes = [1, 8, 32], strides = [1, 1, 1]} : vector<4x8x32xbf16> to vector<1x8x32xbf16>
    %259 = vector.shape_cast %258 : vector<1x8x32xbf16> to vector<8x32xbf16>
    %cst_88 = arith.constant dense<0.000000e+00> : vector<16x32xf32>
    %260 = tpu.matmul %257, %259, %cst_88 {dimension_numbers = #tpu.dot_dimension_numbers<[1], [0], [0], [1], [0, 0, 1, 1], [], []>} : vector<16x8xbf16>, vector<8x32xbf16>, vector<16x32xf32> -> vector<16x32xf32>
    %261 = arith.addf %237, %260 : vector<16x32xf32>
    %262 = vector.broadcast %160 : vector<1x32xf32> to vector<16x32xf32>
    %263 = arith.addf %261, %262 : vector<16x32xf32>
    %264 = arith.addf %263, %145 : vector<16x32xf32>
    %c0_89 = arith.constant 0 : index
    %c0_90 = arith.constant 0 : index
    %c0_91 = arith.constant 0 : index
    %265 = vector.load %arg12[%c0_89, %c0_90, %c0_91] : memref<2x1x32xf32, #tpu.memory_space<vmem>>, vector<1x1x32xf32>
    %266 = vector.shape_cast %265 : vector<1x1x32xf32> to vector<1x32xf32>
    %c0_92 = arith.constant 0 : index
    %c0_93 = arith.constant 0 : index
    %c0_94 = arith.constant 0 : index
    %267 = vector.load %arg13[%c0_92, %c0_93, %c0_94] : memref<2x1x32xf32, #tpu.memory_space<vmem>>, vector<1x1x32xf32>
    %268 = vector.shape_cast %267 : vector<1x1x32xf32> to vector<1x32xf32>
    %cst_95 = arith.constant dense<0.000000e+00> : vector<16xf32>
    %269 = vector.multi_reduction <add>, %264, %cst_95 [1] : vector<16x32xf32> to vector<16xf32>
    %270 = vector.shape_cast %269 : vector<16xf32> to vector<16x1xf32>
    %cst_96 = arith.constant 3.200000e+01 : f32
    %271 = vector.broadcast %cst_96 : f32 to vector<16x1xf32>
    %272 = arith.divf %270, %271 : vector<16x1xf32>
    %273 = arith.mulf %264, %264 : vector<16x32xf32>
    %cst_97 = arith.constant dense<0.000000e+00> : vector<16xf32>
    %274 = vector.multi_reduction <add>, %273, %cst_97 [1] : vector<16x32xf32> to vector<16xf32>
    %275 = vector.shape_cast %274 : vector<16xf32> to vector<16x1xf32>
    %cst_98 = arith.constant 3.200000e+01 : f32
    %276 = vector.broadcast %cst_98 : f32 to vector<16x1xf32>
    %277 = arith.divf %275, %276 : vector<16x1xf32>
    %278 = arith.mulf %272, %272 : vector<16x1xf32>
    %279 = arith.subf %277, %278 : vector<16x1xf32>
    %280 = vector.broadcast %272 : vector<16x1xf32> to vector<16x32xf32>
    %281 = arith.subf %264, %280 : vector<16x32xf32>
    %cst_99 = arith.constant 9.99999974E-6 : f32
    %282 = vector.broadcast %cst_99 : f32 to vector<16x1xf32>
    %283 = arith.addf %279, %282 : vector<16x1xf32>
    %284 = math.rsqrt %283 : vector<16x1xf32>
    %285 = vector.broadcast %284 : vector<16x1xf32> to vector<16x32xf32>
    %286 = arith.mulf %281, %285 : vector<16x32xf32>
    %287 = vector.broadcast %266 : vector<1x32xf32> to vector<16x32xf32>
    %288 = arith.mulf %286, %287 : vector<16x32xf32>
    %289 = vector.broadcast %268 : vector<1x32xf32> to vector<16x32xf32>
    %290 = arith.addf %288, %289 : vector<16x32xf32>
    %291 = arith.truncf %290 : vector<16x32xf32> to vector<16x32xbf16>
    %c0_100 = arith.constant 0 : index
    %c0_101 = arith.constant 0 : index
    %c0_102 = arith.constant 0 : index
    %292 = vector.load %arg14[%c0_100, %c0_101, %c0_102] : memref<2x32x128xbf16, #tpu.memory_space<vmem>>, vector<1x32x128xbf16>
    %293 = vector.shape_cast %292 : vector<1x32x128xbf16> to vector<32x128xbf16>
    %cst_103 = arith.constant dense<0.000000e+00> : vector<16x128xf32>
    %294 = tpu.matmul %291, %293, %cst_103 {dimension_numbers = #tpu.dot_dimension_numbers<[1], [0], [0], [1], [0, 0, 1, 1], [], []>} : vector<16x32xbf16>, vector<32x128xbf16>, vector<16x128xf32> -> vector<16x128xf32>
    %c0_104 = arith.constant 0 : index
    %c0_105 = arith.constant 0 : index
    %c0_106 = arith.constant 0 : index
    %295 = vector.load %arg15[%c0_104, %c0_105, %c0_106] : memref<2x1x128xf32, #tpu.memory_space<vmem>>, vector<1x1x128xf32>
    %296 = vector.shape_cast %295 : vector<1x1x128xf32> to vector<1x128xf32>
    %297 = vector.broadcast %296 : vector<1x128xf32> to vector<16x128xf32>
    %298 = arith.addf %294, %297 : vector<16x128xf32>
    %cst_107 = arith.constant 0.000000e+00 : f32
    %299 = vector.broadcast %cst_107 : f32 to vector<16x128xf32>
    %300 = arith.maximumf %298, %299 : vector<16x128xf32>
    %301 = arith.truncf %300 : vector<16x128xf32> to vector<16x128xbf16>
    %c0_108 = arith.constant 0 : index
    %c0_109 = arith.constant 0 : index
    %c0_110 = arith.constant 0 : index
    %302 = vector.load %arg16[%c0_108, %c0_109, %c0_110] : memref<2x128x32xbf16, #tpu.memory_space<vmem>>, vector<1x128x32xbf16>
    %303 = vector.shape_cast %302 : vector<1x128x32xbf16> to vector<128x32xbf16>
    %cst_111 = arith.constant dense<0.000000e+00> : vector<16x32xf32>
    %304 = tpu.matmul %301, %303, %cst_111 {dimension_numbers = #tpu.dot_dimension_numbers<[1], [0], [0], [1], [0, 0, 1, 1], [], []>} : vector<16x128xbf16>, vector<128x32xbf16>, vector<16x32xf32> -> vector<16x32xf32>
    %c0_112 = arith.constant 0 : index
    %c0_113 = arith.constant 0 : index
    %c0_114 = arith.constant 0 : index
    %305 = vector.load %arg17[%c0_112, %c0_113, %c0_114] : memref<2x1x32xf32, #tpu.memory_space<vmem>>, vector<1x1x32xf32>
    %306 = vector.shape_cast %305 : vector<1x1x32xf32> to vector<1x32xf32>
    %307 = vector.broadcast %306 : vector<1x32xf32> to vector<16x32xf32>
    %308 = arith.addf %304, %307 : vector<16x32xf32>
    %309 = arith.addf %308, %290 : vector<16x32xf32>
    %c0_115 = arith.constant 0 : index
    %c0_116 = arith.constant 0 : index
    %c0_117 = arith.constant 0 : index
    %310 = vector.load %arg18[%c0_115, %c0_116, %c0_117] : memref<2x1x32xf32, #tpu.memory_space<vmem>>, vector<1x1x32xf32>
    %311 = vector.shape_cast %310 : vector<1x1x32xf32> to vector<1x32xf32>
    %c0_118 = arith.constant 0 : index
    %c0_119 = arith.constant 0 : index
    %c0_120 = arith.constant 0 : index
    %312 = vector.load %arg19[%c0_118, %c0_119, %c0_120] : memref<2x1x32xf32, #tpu.memory_space<vmem>>, vector<1x1x32xf32>
    %313 = vector.shape_cast %312 : vector<1x1x32xf32> to vector<1x32xf32>
    %cst_121 = arith.constant dense<0.000000e+00> : vector<16xf32>
    %314 = vector.multi_reduction <add>, %309, %cst_121 [1] : vector<16x32xf32> to vector<16xf32>
    %315 = vector.shape_cast %314 : vector<16xf32> to vector<16x1xf32>
    %cst_122 = arith.constant 3.200000e+01 : f32
    %316 = vector.broadcast %cst_122 : f32 to vector<16x1xf32>
    %317 = arith.divf %315, %316 : vector<16x1xf32>
    %318 = arith.mulf %309, %309 : vector<16x32xf32>
    %cst_123 = arith.constant dense<0.000000e+00> : vector<16xf32>
    %319 = vector.multi_reduction <add>, %318, %cst_123 [1] : vector<16x32xf32> to vector<16xf32>
    %320 = vector.shape_cast %319 : vector<16xf32> to vector<16x1xf32>
    %cst_124 = arith.constant 3.200000e+01 : f32
    %321 = vector.broadcast %cst_124 : f32 to vector<16x1xf32>
    %322 = arith.divf %320, %321 : vector<16x1xf32>
    %323 = arith.mulf %317, %317 : vector<16x1xf32>
    %324 = arith.subf %322, %323 : vector<16x1xf32>
    %325 = vector.broadcast %317 : vector<16x1xf32> to vector<16x32xf32>
    %326 = arith.subf %309, %325 : vector<16x32xf32>
    %cst_125 = arith.constant 9.99999974E-6 : f32
    %327 = vector.broadcast %cst_125 : f32 to vector<16x1xf32>
    %328 = arith.addf %324, %327 : vector<16x1xf32>
    %329 = math.rsqrt %328 : vector<16x1xf32>
    %330 = vector.broadcast %329 : vector<16x1xf32> to vector<16x32xf32>
    %331 = arith.mulf %326, %330 : vector<16x32xf32>
    %332 = vector.broadcast %311 : vector<1x32xf32> to vector<16x32xf32>
    %333 = arith.mulf %331, %332 : vector<16x32xf32>
    %334 = vector.broadcast %313 : vector<1x32xf32> to vector<16x32xf32>
    %335 = arith.addf %333, %334 : vector<16x32xf32>
    %336 = arith.truncf %335 : vector<16x32xf32> to vector<16x32xbf16>
    %c1 = arith.constant 1 : index
    %c0_126 = arith.constant 0 : index
    %c0_127 = arith.constant 0 : index
    %337 = vector.load %arg3[%c1, %c0_126, %c0_127] : memref<2x32x96xbf16, #tpu.memory_space<vmem>>, vector<1x32x96xbf16>
    %338 = vector.shape_cast %337 : vector<1x32x96xbf16> to vector<32x96xbf16>
    %cst_128 = arith.constant dense<0.000000e+00> : vector<16x96xf32>
    %339 = tpu.matmul %336, %338, %cst_128 {dimension_numbers = #tpu.dot_dimension_numbers<[1], [0], [0], [1], [0, 0, 1, 1], [], []>} : vector<16x32xbf16>, vector<32x96xbf16>, vector<16x96xf32> -> vector<16x96xf32>
    %340 = vector.extract_strided_slice %339 {offsets = [0, 0], sizes = [16, 32], strides = [1, 1]} : vector<16x96xf32> to vector<16x32xf32>
    %341 = vector.extract_strided_slice %339 {offsets = [0, 32], sizes = [16, 32], strides = [1, 1]} : vector<16x96xf32> to vector<16x32xf32>
    %342 = vector.shape_cast %341 : vector<16x32xf32> to vector<2x8x32xf32>
    %343 = vector.extract_strided_slice %339 {offsets = [0, 64], sizes = [16, 32], strides = [1, 1]} : vector<16x96xf32> to vector<16x32xf32>
    %344 = vector.shape_cast %343 : vector<16x32xf32> to vector<2x8x32xf32>
    %c1_129 = arith.constant 1 : index
    %c0_130 = arith.constant 0 : index
    %c0_131 = arith.constant 0 : index
    %c0_132 = arith.constant 0 : index
    %345 = vector.load %arg4[%c1_129, %c0_130, %c0_131, %c0_132] : memref<2x4x8x32xbf16, #tpu.memory_space<vmem>>, vector<1x4x8x32xbf16>
    %346 = vector.shape_cast %345 : vector<1x4x8x32xbf16> to vector<4x8x32xbf16>
    %c1_133 = arith.constant 1 : index
    %c0_134 = arith.constant 0 : index
    %c0_135 = arith.constant 0 : index
    %347 = vector.load %arg5[%c1_133, %c0_134, %c0_135] : memref<2x1x32xf32, #tpu.memory_space<vmem>>, vector<1x1x32xf32>
    %348 = vector.shape_cast %347 : vector<1x1x32xf32> to vector<1x32xf32>
    %349 = vector.shape_cast %340 : vector<16x32xf32> to vector<2x8x32xf32>
    %350 = arith.truncf %349 : vector<2x8x32xf32> to vector<2x8x32xbf16>
    %351 = arith.truncf %342 : vector<2x8x32xf32> to vector<2x8x32xbf16>
    %352 = arith.truncf %344 : vector<2x8x32xf32> to vector<2x8x32xbf16>
    %cst_136 = arith.constant 0.000000e+00 : f32
    %353 = vector.broadcast %cst_136 : f32 to vector<16x32xf32>
    %354 = vector.extract_strided_slice %350 {offsets = [0, 0, 0], sizes = [2, 8, 8], strides = [1, 1, 1]} : vector<2x8x32xbf16> to vector<2x8x8xbf16>
    %355 = vector.extract_strided_slice %351 {offsets = [0, 0, 0], sizes = [2, 8, 8], strides = [1, 1, 1]} : vector<2x8x32xbf16> to vector<2x8x8xbf16>
    %356 = vector.extract_strided_slice %352 {offsets = [0, 0, 0], sizes = [2, 8, 8], strides = [1, 1, 1]} : vector<2x8x32xbf16> to vector<2x8x8xbf16>
    "tpu.trace_start"() <{level = 10 : i32, message = "btd,bsd->bts"}> : () -> ()
    %cst_137 = arith.constant dense<0.000000e+00> : vector<2x8x8xf32>
    %357 = tpu.matmul %354, %355, %cst_137 {dimension_numbers = #tpu.dot_dimension_numbers<[2], [2], [1], [1], [0, 0, 0, 1, 1, 1], [0], [0]>} : vector<2x8x8xbf16>, vector<2x8x8xbf16>, vector<2x8x8xf32> -> vector<2x8x8xf32>
    "tpu.trace_stop"() : () -> ()
    %cst_138 = arith.constant 0.353553385 : f32
    %358 = vector.broadcast %cst_138 : f32 to vector<2x8x8xf32>
    %359 = arith.mulf %357, %358 : vector<2x8x8xf32>
    %cst_139 = arith.constant dense<0xFF800000> : vector<2x8xf32>
    %360 = vector.multi_reduction <maximumf>, %359, %cst_139 [2] : vector<2x8x8xf32> to vector<2x8xf32>
    %361 = vector.shape_cast %360 : vector<2x8xf32> to vector<2x8x1xf32>
    %362 = vector.broadcast %361 : vector<2x8x1xf32> to vector<2x8x8xf32>
    %363 = arith.subf %359, %362 : vector<2x8x8xf32>
    %364 = math.exp %363 : vector<2x8x8xf32>
    %cst_140 = arith.constant dense<0.000000e+00> : vector<2x8xf32>
    %365 = vector.multi_reduction <add>, %364, %cst_140 [2] : vector<2x8x8xf32> to vector<2x8xf32>
    %366 = vector.shape_cast %365 : vector<2x8xf32> to vector<2x8x1xf32>
    %367 = tpu.reciprocal %366 {approx = true} : vector<2x8x1xf32> -> vector<2x8x1xf32>
    %368 = vector.broadcast %367 : vector<2x8x1xf32> to vector<2x8x8xf32>
    %369 = arith.mulf %364, %368 : vector<2x8x8xf32>
    %370 = arith.truncf %369 : vector<2x8x8xf32> to vector<2x8x8xbf16>
    "tpu.trace_start"() <{level = 10 : i32, message = "bts,bsd->btd"}> : () -> ()
    %cst_141 = arith.constant dense<0.000000e+00> : vector<2x8x8xf32>
    %371 = tpu.matmul %370, %356, %cst_141 {dimension_numbers = #tpu.dot_dimension_numbers<[2], [1], [1], [2], [0, 0, 0, 1, 1, 2], [0], [0]>} : vector<2x8x8xbf16>, vector<2x8x8xbf16>, vector<2x8x8xf32> -> vector<2x8x8xf32>
    "tpu.trace_stop"() : () -> ()
    %372 = vector.shape_cast %371 : vector<2x8x8xf32> to vector<16x8xf32>
    %373 = arith.truncf %372 : vector<16x8xf32> to vector<16x8xbf16>
    %374 = vector.extract_strided_slice %346 {offsets = [0, 0, 0], sizes = [1, 8, 32], strides = [1, 1, 1]} : vector<4x8x32xbf16> to vector<1x8x32xbf16>
    %375 = vector.shape_cast %374 : vector<1x8x32xbf16> to vector<8x32xbf16>
    %cst_142 = arith.constant dense<0.000000e+00> : vector<16x32xf32>
    %376 = tpu.matmul %373, %375, %cst_142 {dimension_numbers = #tpu.dot_dimension_numbers<[1], [0], [0], [1], [0, 0, 1, 1], [], []>} : vector<16x8xbf16>, vector<8x32xbf16>, vector<16x32xf32> -> vector<16x32xf32>
    %377 = arith.addf %353, %376 : vector<16x32xf32>
    %378 = vector.extract_strided_slice %350 {offsets = [0, 0, 8], sizes = [2, 8, 8], strides = [1, 1, 1]} : vector<2x8x32xbf16> to vector<2x8x8xbf16>
    %379 = vector.extract_strided_slice %351 {offsets = [0, 0, 8], sizes = [2, 8, 8], strides = [1, 1, 1]} : vector<2x8x32xbf16> to vector<2x8x8xbf16>
    %380 = vector.extract_strided_slice %352 {offsets = [0, 0, 8], sizes = [2, 8, 8], strides = [1, 1, 1]} : vector<2x8x32xbf16> to vector<2x8x8xbf16>
    "tpu.trace_start"() <{level = 10 : i32, message = "btd,bsd->bts"}> : () -> ()
    %cst_143 = arith.constant dense<0.000000e+00> : vector<2x8x8xf32>
    %381 = tpu.matmul %378, %379, %cst_143 {dimension_numbers = #tpu.dot_dimension_numbers<[2], [2], [1], [1], [0, 0, 0, 1, 1, 1], [0], [0]>} : vector<2x8x8xbf16>, vector<2x8x8xbf16>, vector<2x8x8xf32> -> vector<2x8x8xf32>
    "tpu.trace_stop"() : () -> ()
    %cst_144 = arith.constant 0.353553385 : f32
    %382 = vector.broadcast %cst_144 : f32 to vector<2x8x8xf32>
    %383 = arith.mulf %381, %382 : vector<2x8x8xf32>
    %cst_145 = arith.constant dense<0xFF800000> : vector<2x8xf32>
    %384 = vector.multi_reduction <maximumf>, %383, %cst_145 [2] : vector<2x8x8xf32> to vector<2x8xf32>
    %385 = vector.shape_cast %384 : vector<2x8xf32> to vector<2x8x1xf32>
    %386 = vector.broadcast %385 : vector<2x8x1xf32> to vector<2x8x8xf32>
    %387 = arith.subf %383, %386 : vector<2x8x8xf32>
    %388 = math.exp %387 : vector<2x8x8xf32>
    %cst_146 = arith.constant dense<0.000000e+00> : vector<2x8xf32>
    %389 = vector.multi_reduction <add>, %388, %cst_146 [2] : vector<2x8x8xf32> to vector<2x8xf32>
    %390 = vector.shape_cast %389 : vector<2x8xf32> to vector<2x8x1xf32>
    %391 = tpu.reciprocal %390 {approx = true} : vector<2x8x1xf32> -> vector<2x8x1xf32>
    %392 = vector.broadcast %391 : vector<2x8x1xf32> to vector<2x8x8xf32>
    %393 = arith.mulf %388, %392 : vector<2x8x8xf32>
    %394 = arith.truncf %393 : vector<2x8x8xf32> to vector<2x8x8xbf16>
    "tpu.trace_start"() <{level = 10 : i32, message = "bts,bsd->btd"}> : () -> ()
    %cst_147 = arith.constant dense<0.000000e+00> : vector<2x8x8xf32>
    %395 = tpu.matmul %394, %380, %cst_147 {dimension_numbers = #tpu.dot_dimension_numbers<[2], [1], [1], [2], [0, 0, 0, 1, 1, 2], [0], [0]>} : vector<2x8x8xbf16>, vector<2x8x8xbf16>, vector<2x8x8xf32> -> vector<2x8x8xf32>
    "tpu.trace_stop"() : () -> ()
    %396 = vector.shape_cast %395 : vector<2x8x8xf32> to vector<16x8xf32>
    %397 = arith.truncf %396 : vector<16x8xf32> to vector<16x8xbf16>
    %398 = vector.extract_strided_slice %346 {offsets = [1, 0, 0], sizes = [1, 8, 32], strides = [1, 1, 1]} : vector<4x8x32xbf16> to vector<1x8x32xbf16>
    %399 = vector.shape_cast %398 : vector<1x8x32xbf16> to vector<8x32xbf16>
    %cst_148 = arith.constant dense<0.000000e+00> : vector<16x32xf32>
    %400 = tpu.matmul %397, %399, %cst_148 {dimension_numbers = #tpu.dot_dimension_numbers<[1], [0], [0], [1], [0, 0, 1, 1], [], []>} : vector<16x8xbf16>, vector<8x32xbf16>, vector<16x32xf32> -> vector<16x32xf32>
    %401 = arith.addf %377, %400 : vector<16x32xf32>
    %402 = vector.extract_strided_slice %350 {offsets = [0, 0, 16], sizes = [2, 8, 8], strides = [1, 1, 1]} : vector<2x8x32xbf16> to vector<2x8x8xbf16>
    %403 = vector.extract_strided_slice %351 {offsets = [0, 0, 16], sizes = [2, 8, 8], strides = [1, 1, 1]} : vector<2x8x32xbf16> to vector<2x8x8xbf16>
    %404 = vector.extract_strided_slice %352 {offsets = [0, 0, 16], sizes = [2, 8, 8], strides = [1, 1, 1]} : vector<2x8x32xbf16> to vector<2x8x8xbf16>
    "tpu.trace_start"() <{level = 10 : i32, message = "btd,bsd->bts"}> : () -> ()
    %cst_149 = arith.constant dense<0.000000e+00> : vector<2x8x8xf32>
    %405 = tpu.matmul %402, %403, %cst_149 {dimension_numbers = #tpu.dot_dimension_numbers<[2], [2], [1], [1], [0, 0, 0, 1, 1, 1], [0], [0]>} : vector<2x8x8xbf16>, vector<2x8x8xbf16>, vector<2x8x8xf32> -> vector<2x8x8xf32>
    "tpu.trace_stop"() : () -> ()
    %cst_150 = arith.constant 0.353553385 : f32
    %406 = vector.broadcast %cst_150 : f32 to vector<2x8x8xf32>
    %407 = arith.mulf %405, %406 : vector<2x8x8xf32>
    %cst_151 = arith.constant dense<0xFF800000> : vector<2x8xf32>
    %408 = vector.multi_reduction <maximumf>, %407, %cst_151 [2] : vector<2x8x8xf32> to vector<2x8xf32>
    %409 = vector.shape_cast %408 : vector<2x8xf32> to vector<2x8x1xf32>
    %410 = vector.broadcast %409 : vector<2x8x1xf32> to vector<2x8x8xf32>
    %411 = arith.subf %407, %410 : vector<2x8x8xf32>
    %412 = math.exp %411 : vector<2x8x8xf32>
    %cst_152 = arith.constant dense<0.000000e+00> : vector<2x8xf32>
    %413 = vector.multi_reduction <add>, %412, %cst_152 [2] : vector<2x8x8xf32> to vector<2x8xf32>
    %414 = vector.shape_cast %413 : vector<2x8xf32> to vector<2x8x1xf32>
    %415 = tpu.reciprocal %414 {approx = true} : vector<2x8x1xf32> -> vector<2x8x1xf32>
    %416 = vector.broadcast %415 : vector<2x8x1xf32> to vector<2x8x8xf32>
    %417 = arith.mulf %412, %416 : vector<2x8x8xf32>
    %418 = arith.truncf %417 : vector<2x8x8xf32> to vector<2x8x8xbf16>
    "tpu.trace_start"() <{level = 10 : i32, message = "bts,bsd->btd"}> : () -> ()
    %cst_153 = arith.constant dense<0.000000e+00> : vector<2x8x8xf32>
    %419 = tpu.matmul %418, %404, %cst_153 {dimension_numbers = #tpu.dot_dimension_numbers<[2], [1], [1], [2], [0, 0, 0, 1, 1, 2], [0], [0]>} : vector<2x8x8xbf16>, vector<2x8x8xbf16>, vector<2x8x8xf32> -> vector<2x8x8xf32>
    "tpu.trace_stop"() : () -> ()
    %420 = vector.shape_cast %419 : vector<2x8x8xf32> to vector<16x8xf32>
    %421 = arith.truncf %420 : vector<16x8xf32> to vector<16x8xbf16>
    %422 = vector.extract_strided_slice %346 {offsets = [2, 0, 0], sizes = [1, 8, 32], strides = [1, 1, 1]} : vector<4x8x32xbf16> to vector<1x8x32xbf16>
    %423 = vector.shape_cast %422 : vector<1x8x32xbf16> to vector<8x32xbf16>
    %cst_154 = arith.constant dense<0.000000e+00> : vector<16x32xf32>
    %424 = tpu.matmul %421, %423, %cst_154 {dimension_numbers = #tpu.dot_dimension_numbers<[1], [0], [0], [1], [0, 0, 1, 1], [], []>} : vector<16x8xbf16>, vector<8x32xbf16>, vector<16x32xf32> -> vector<16x32xf32>
    %425 = arith.addf %401, %424 : vector<16x32xf32>
    %426 = vector.extract_strided_slice %350 {offsets = [0, 0, 24], sizes = [2, 8, 8], strides = [1, 1, 1]} : vector<2x8x32xbf16> to vector<2x8x8xbf16>
    %427 = vector.extract_strided_slice %351 {offsets = [0, 0, 24], sizes = [2, 8, 8], strides = [1, 1, 1]} : vector<2x8x32xbf16> to vector<2x8x8xbf16>
    %428 = vector.extract_strided_slice %352 {offsets = [0, 0, 24], sizes = [2, 8, 8], strides = [1, 1, 1]} : vector<2x8x32xbf16> to vector<2x8x8xbf16>
    "tpu.trace_start"() <{level = 10 : i32, message = "btd,bsd->bts"}> : () -> ()
    %cst_155 = arith.constant dense<0.000000e+00> : vector<2x8x8xf32>
    %429 = tpu.matmul %426, %427, %cst_155 {dimension_numbers = #tpu.dot_dimension_numbers<[2], [2], [1], [1], [0, 0, 0, 1, 1, 1], [0], [0]>} : vector<2x8x8xbf16>, vector<2x8x8xbf16>, vector<2x8x8xf32> -> vector<2x8x8xf32>
    "tpu.trace_stop"() : () -> ()
    %cst_156 = arith.constant 0.353553385 : f32
    %430 = vector.broadcast %cst_156 : f32 to vector<2x8x8xf32>
    %431 = arith.mulf %429, %430 : vector<2x8x8xf32>
    %cst_157 = arith.constant dense<0xFF800000> : vector<2x8xf32>
    %432 = vector.multi_reduction <maximumf>, %431, %cst_157 [2] : vector<2x8x8xf32> to vector<2x8xf32>
    %433 = vector.shape_cast %432 : vector<2x8xf32> to vector<2x8x1xf32>
    %434 = vector.broadcast %433 : vector<2x8x1xf32> to vector<2x8x8xf32>
    %435 = arith.subf %431, %434 : vector<2x8x8xf32>
    %436 = math.exp %435 : vector<2x8x8xf32>
    %cst_158 = arith.constant dense<0.000000e+00> : vector<2x8xf32>
    %437 = vector.multi_reduction <add>, %436, %cst_158 [2] : vector<2x8x8xf32> to vector<2x8xf32>
    %438 = vector.shape_cast %437 : vector<2x8xf32> to vector<2x8x1xf32>
    %439 = tpu.reciprocal %438 {approx = true} : vector<2x8x1xf32> -> vector<2x8x1xf32>
    %440 = vector.broadcast %439 : vector<2x8x1xf32> to vector<2x8x8xf32>
    %441 = arith.mulf %436, %440 : vector<2x8x8xf32>
    %442 = arith.truncf %441 : vector<2x8x8xf32> to vector<2x8x8xbf16>
    "tpu.trace_start"() <{level = 10 : i32, message = "bts,bsd->btd"}> : () -> ()
    %cst_159 = arith.constant dense<0.000000e+00> : vector<2x8x8xf32>
    %443 = tpu.matmul %442, %428, %cst_159 {dimension_numbers = #tpu.dot_dimension_numbers<[2], [1], [1], [2], [0, 0, 0, 1, 1, 2], [0], [0]>} : vector<2x8x8xbf16>, vector<2x8x8xbf16>, vector<2x8x8xf32> -> vector<2x8x8xf32>
    "tpu.trace_stop"() : () -> ()
    %444 = vector.shape_cast %443 : vector<2x8x8xf32> to vector<16x8xf32>
    %445 = arith.truncf %444 : vector<16x8xf32> to vector<16x8xbf16>
    %446 = vector.extract_strided_slice %346 {offsets = [3, 0, 0], sizes = [1, 8, 32], strides = [1, 1, 1]} : vector<4x8x32xbf16> to vector<1x8x32xbf16>
    %447 = vector.shape_cast %446 : vector<1x8x32xbf16> to vector<8x32xbf16>
    %cst_160 = arith.constant dense<0.000000e+00> : vector<16x32xf32>
    %448 = tpu.matmul %445, %447, %cst_160 {dimension_numbers = #tpu.dot_dimension_numbers<[1], [0], [0], [1], [0, 0, 1, 1], [], []>} : vector<16x8xbf16>, vector<8x32xbf16>, vector<16x32xf32> -> vector<16x32xf32>
    %449 = arith.addf %425, %448 : vector<16x32xf32>
    %450 = vector.broadcast %348 : vector<1x32xf32> to vector<16x32xf32>
    %451 = arith.addf %449, %450 : vector<16x32xf32>
    %452 = arith.addf %451, %335 : vector<16x32xf32>
    %c1_161 = arith.constant 1 : index
    %c0_162 = arith.constant 0 : index
    %c0_163 = arith.constant 0 : index
    %453 = vector.load %arg6[%c1_161, %c0_162, %c0_163] : memref<2x1x32xf32, #tpu.memory_space<vmem>>, vector<1x1x32xf32>
    %454 = vector.shape_cast %453 : vector<1x1x32xf32> to vector<1x32xf32>
    %c1_164 = arith.constant 1 : index
    %c0_165 = arith.constant 0 : index
    %c0_166 = arith.constant 0 : index
    %455 = vector.load %arg7[%c1_164, %c0_165, %c0_166] : memref<2x1x32xf32, #tpu.memory_space<vmem>>, vector<1x1x32xf32>
    %456 = vector.shape_cast %455 : vector<1x1x32xf32> to vector<1x32xf32>
    %cst_167 = arith.constant dense<0.000000e+00> : vector<16xf32>
    %457 = vector.multi_reduction <add>, %452, %cst_167 [1] : vector<16x32xf32> to vector<16xf32>
    %458 = vector.shape_cast %457 : vector<16xf32> to vector<16x1xf32>
    %cst_168 = arith.constant 3.200000e+01 : f32
    %459 = vector.broadcast %cst_168 : f32 to vector<16x1xf32>
    %460 = arith.divf %458, %459 : vector<16x1xf32>
    %461 = arith.mulf %452, %452 : vector<16x32xf32>
    %cst_169 = arith.constant dense<0.000000e+00> : vector<16xf32>
    %462 = vector.multi_reduction <add>, %461, %cst_169 [1] : vector<16x32xf32> to vector<16xf32>
    %463 = vector.shape_cast %462 : vector<16xf32> to vector<16x1xf32>
    %cst_170 = arith.constant 3.200000e+01 : f32
    %464 = vector.broadcast %cst_170 : f32 to vector<16x1xf32>
    %465 = arith.divf %463, %464 : vector<16x1xf32>
    %466 = arith.mulf %460, %460 : vector<16x1xf32>
    %467 = arith.subf %465, %466 : vector<16x1xf32>
    %468 = vector.broadcast %460 : vector<16x1xf32> to vector<16x32xf32>
    %469 = arith.subf %452, %468 : vector<16x32xf32>
    %cst_171 = arith.constant 9.99999974E-6 : f32
    %470 = vector.broadcast %cst_171 : f32 to vector<16x1xf32>
    %471 = arith.addf %467, %470 : vector<16x1xf32>
    %472 = math.rsqrt %471 : vector<16x1xf32>
    %473 = vector.broadcast %472 : vector<16x1xf32> to vector<16x32xf32>
    %474 = arith.mulf %469, %473 : vector<16x32xf32>
    %475 = vector.broadcast %454 : vector<1x32xf32> to vector<16x32xf32>
    %476 = arith.mulf %474, %475 : vector<16x32xf32>
    %477 = vector.broadcast %456 : vector<1x32xf32> to vector<16x32xf32>
    %478 = arith.addf %476, %477 : vector<16x32xf32>
    %479 = arith.truncf %478 : vector<16x32xf32> to vector<16x32xbf16>
    %c1_172 = arith.constant 1 : index
    %c0_173 = arith.constant 0 : index
    %c0_174 = arith.constant 0 : index
    %480 = vector.load %arg8[%c1_172, %c0_173, %c0_174] : memref<2x32x32xbf16, #tpu.memory_space<vmem>>, vector<1x32x32xbf16>
    %481 = vector.shape_cast %480 : vector<1x32x32xbf16> to vector<32x32xbf16>
    %cst_175 = arith.constant dense<0.000000e+00> : vector<16x32xf32>
    %482 = tpu.matmul %479, %481, %cst_175 {dimension_numbers = #tpu.dot_dimension_numbers<[1], [0], [0], [1], [0, 0, 1, 1], [], []>} : vector<16x32xbf16>, vector<32x32xbf16>, vector<16x32xf32> -> vector<16x32xf32>
    %c1_176 = arith.constant 1 : index
    %c0_177 = arith.constant 0 : index
    %c0_178 = arith.constant 0 : index
    %483 = vector.load %arg9[%c1_176, %c0_177, %c0_178] : memref<2x32x64xbf16, #tpu.memory_space<vmem>>, vector<1x32x64xbf16>
    %484 = vector.shape_cast %483 : vector<1x32x64xbf16> to vector<32x64xbf16>
    %cst_179 = arith.constant dense<0.000000e+00> : vector<16x64xf32>
    %485 = tpu.matmul %2, %484, %cst_179 {dimension_numbers = #tpu.dot_dimension_numbers<[1], [0], [0], [1], [0, 0, 1, 1], [], []>} : vector<16x32xbf16>, vector<32x64xbf16>, vector<16x64xf32> -> vector<16x64xf32>
    %486 = vector.extract_strided_slice %485 {offsets = [0, 0], sizes = [16, 32], strides = [1, 1]} : vector<16x64xf32> to vector<16x32xf32>
    %487 = vector.shape_cast %486 : vector<16x32xf32> to vector<2x8x32xf32>
    %488 = vector.extract_strided_slice %485 {offsets = [0, 32], sizes = [16, 32], strides = [1, 1]} : vector<16x64xf32> to vector<16x32xf32>
    %489 = vector.shape_cast %488 : vector<16x32xf32> to vector<2x8x32xf32>
    %c1_180 = arith.constant 1 : index
    %c0_181 = arith.constant 0 : index
    %c0_182 = arith.constant 0 : index
    %c0_183 = arith.constant 0 : index
    %490 = vector.load %arg10[%c1_180, %c0_181, %c0_182, %c0_183] : memref<2x4x8x32xbf16, #tpu.memory_space<vmem>>, vector<1x4x8x32xbf16>
    %491 = vector.shape_cast %490 : vector<1x4x8x32xbf16> to vector<4x8x32xbf16>
    %c1_184 = arith.constant 1 : index
    %c0_185 = arith.constant 0 : index
    %c0_186 = arith.constant 0 : index
    %492 = vector.load %arg11[%c1_184, %c0_185, %c0_186] : memref<2x1x32xf32, #tpu.memory_space<vmem>>, vector<1x1x32xf32>
    %493 = vector.shape_cast %492 : vector<1x1x32xf32> to vector<1x32xf32>
    %494 = vector.shape_cast %482 : vector<16x32xf32> to vector<2x8x32xf32>
    %495 = arith.truncf %494 : vector<2x8x32xf32> to vector<2x8x32xbf16>
    %496 = arith.truncf %487 : vector<2x8x32xf32> to vector<2x8x32xbf16>
    %497 = arith.truncf %489 : vector<2x8x32xf32> to vector<2x8x32xbf16>
    %cst_187 = arith.constant 0.000000e+00 : f32
    %498 = vector.broadcast %cst_187 : f32 to vector<16x32xf32>
    %499 = vector.extract_strided_slice %495 {offsets = [0, 0, 0], sizes = [2, 8, 8], strides = [1, 1, 1]} : vector<2x8x32xbf16> to vector<2x8x8xbf16>
    %500 = vector.extract_strided_slice %496 {offsets = [0, 0, 0], sizes = [2, 8, 8], strides = [1, 1, 1]} : vector<2x8x32xbf16> to vector<2x8x8xbf16>
    %501 = vector.extract_strided_slice %497 {offsets = [0, 0, 0], sizes = [2, 8, 8], strides = [1, 1, 1]} : vector<2x8x32xbf16> to vector<2x8x8xbf16>
    "tpu.trace_start"() <{level = 10 : i32, message = "btd,bsd->bts"}> : () -> ()
    %cst_188 = arith.constant dense<0.000000e+00> : vector<2x8x8xf32>
    %502 = tpu.matmul %499, %500, %cst_188 {dimension_numbers = #tpu.dot_dimension_numbers<[2], [2], [1], [1], [0, 0, 0, 1, 1, 1], [0], [0]>} : vector<2x8x8xbf16>, vector<2x8x8xbf16>, vector<2x8x8xf32> -> vector<2x8x8xf32>
    "tpu.trace_stop"() : () -> ()
    %cst_189 = arith.constant 0.353553385 : f32
    %503 = vector.broadcast %cst_189 : f32 to vector<2x8x8xf32>
    %504 = arith.mulf %502, %503 : vector<2x8x8xf32>
    %cst_190 = arith.constant dense<0xFF800000> : vector<2x8xf32>
    %505 = vector.multi_reduction <maximumf>, %504, %cst_190 [2] : vector<2x8x8xf32> to vector<2x8xf32>
    %506 = vector.shape_cast %505 : vector<2x8xf32> to vector<2x8x1xf32>
    %507 = vector.broadcast %506 : vector<2x8x1xf32> to vector<2x8x8xf32>
    %508 = arith.subf %504, %507 : vector<2x8x8xf32>
    %509 = math.exp %508 : vector<2x8x8xf32>
    %cst_191 = arith.constant dense<0.000000e+00> : vector<2x8xf32>
    %510 = vector.multi_reduction <add>, %509, %cst_191 [2] : vector<2x8x8xf32> to vector<2x8xf32>
    %511 = vector.shape_cast %510 : vector<2x8xf32> to vector<2x8x1xf32>
    %512 = tpu.reciprocal %511 {approx = true} : vector<2x8x1xf32> -> vector<2x8x1xf32>
    %513 = vector.broadcast %512 : vector<2x8x1xf32> to vector<2x8x8xf32>
    %514 = arith.mulf %509, %513 : vector<2x8x8xf32>
    %515 = arith.truncf %514 : vector<2x8x8xf32> to vector<2x8x8xbf16>
    "tpu.trace_start"() <{level = 10 : i32, message = "bts,bsd->btd"}> : () -> ()
    %cst_192 = arith.constant dense<0.000000e+00> : vector<2x8x8xf32>
    %516 = tpu.matmul %515, %501, %cst_192 {dimension_numbers = #tpu.dot_dimension_numbers<[2], [1], [1], [2], [0, 0, 0, 1, 1, 2], [0], [0]>} : vector<2x8x8xbf16>, vector<2x8x8xbf16>, vector<2x8x8xf32> -> vector<2x8x8xf32>
    "tpu.trace_stop"() : () -> ()
    %517 = vector.shape_cast %516 : vector<2x8x8xf32> to vector<16x8xf32>
    %518 = arith.truncf %517 : vector<16x8xf32> to vector<16x8xbf16>
    %519 = vector.extract_strided_slice %491 {offsets = [0, 0, 0], sizes = [1, 8, 32], strides = [1, 1, 1]} : vector<4x8x32xbf16> to vector<1x8x32xbf16>
    %520 = vector.shape_cast %519 : vector<1x8x32xbf16> to vector<8x32xbf16>
    %cst_193 = arith.constant dense<0.000000e+00> : vector<16x32xf32>
    %521 = tpu.matmul %518, %520, %cst_193 {dimension_numbers = #tpu.dot_dimension_numbers<[1], [0], [0], [1], [0, 0, 1, 1], [], []>} : vector<16x8xbf16>, vector<8x32xbf16>, vector<16x32xf32> -> vector<16x32xf32>
    %522 = arith.addf %498, %521 : vector<16x32xf32>
    %523 = vector.extract_strided_slice %495 {offsets = [0, 0, 8], sizes = [2, 8, 8], strides = [1, 1, 1]} : vector<2x8x32xbf16> to vector<2x8x8xbf16>
    %524 = vector.extract_strided_slice %496 {offsets = [0, 0, 8], sizes = [2, 8, 8], strides = [1, 1, 1]} : vector<2x8x32xbf16> to vector<2x8x8xbf16>
    %525 = vector.extract_strided_slice %497 {offsets = [0, 0, 8], sizes = [2, 8, 8], strides = [1, 1, 1]} : vector<2x8x32xbf16> to vector<2x8x8xbf16>
    "tpu.trace_start"() <{level = 10 : i32, message = "btd,bsd->bts"}> : () -> ()
    %cst_194 = arith.constant dense<0.000000e+00> : vector<2x8x8xf32>
    %526 = tpu.matmul %523, %524, %cst_194 {dimension_numbers = #tpu.dot_dimension_numbers<[2], [2], [1], [1], [0, 0, 0, 1, 1, 1], [0], [0]>} : vector<2x8x8xbf16>, vector<2x8x8xbf16>, vector<2x8x8xf32> -> vector<2x8x8xf32>
    "tpu.trace_stop"() : () -> ()
    %cst_195 = arith.constant 0.353553385 : f32
    %527 = vector.broadcast %cst_195 : f32 to vector<2x8x8xf32>
    %528 = arith.mulf %526, %527 : vector<2x8x8xf32>
    %cst_196 = arith.constant dense<0xFF800000> : vector<2x8xf32>
    %529 = vector.multi_reduction <maximumf>, %528, %cst_196 [2] : vector<2x8x8xf32> to vector<2x8xf32>
    %530 = vector.shape_cast %529 : vector<2x8xf32> to vector<2x8x1xf32>
    %531 = vector.broadcast %530 : vector<2x8x1xf32> to vector<2x8x8xf32>
    %532 = arith.subf %528, %531 : vector<2x8x8xf32>
    %533 = math.exp %532 : vector<2x8x8xf32>
    %cst_197 = arith.constant dense<0.000000e+00> : vector<2x8xf32>
    %534 = vector.multi_reduction <add>, %533, %cst_197 [2] : vector<2x8x8xf32> to vector<2x8xf32>
    %535 = vector.shape_cast %534 : vector<2x8xf32> to vector<2x8x1xf32>
    %536 = tpu.reciprocal %535 {approx = true} : vector<2x8x1xf32> -> vector<2x8x1xf32>
    %537 = vector.broadcast %536 : vector<2x8x1xf32> to vector<2x8x8xf32>
    %538 = arith.mulf %533, %537 : vector<2x8x8xf32>
    %539 = arith.truncf %538 : vector<2x8x8xf32> to vector<2x8x8xbf16>
    "tpu.trace_start"() <{level = 10 : i32, message = "bts,bsd->btd"}> : () -> ()
    %cst_198 = arith.constant dense<0.000000e+00> : vector<2x8x8xf32>
    %540 = tpu.matmul %539, %525, %cst_198 {dimension_numbers = #tpu.dot_dimension_numbers<[2], [1], [1], [2], [0, 0, 0, 1, 1, 2], [0], [0]>} : vector<2x8x8xbf16>, vector<2x8x8xbf16>, vector<2x8x8xf32> -> vector<2x8x8xf32>
    "tpu.trace_stop"() : () -> ()
    %541 = vector.shape_cast %540 : vector<2x8x8xf32> to vector<16x8xf32>
    %542 = arith.truncf %541 : vector<16x8xf32> to vector<16x8xbf16>
    %543 = vector.extract_strided_slice %491 {offsets = [1, 0, 0], sizes = [1, 8, 32], strides = [1, 1, 1]} : vector<4x8x32xbf16> to vector<1x8x32xbf16>
    %544 = vector.shape_cast %543 : vector<1x8x32xbf16> to vector<8x32xbf16>
    %cst_199 = arith.constant dense<0.000000e+00> : vector<16x32xf32>
    %545 = tpu.matmul %542, %544, %cst_199 {dimension_numbers = #tpu.dot_dimension_numbers<[1], [0], [0], [1], [0, 0, 1, 1], [], []>} : vector<16x8xbf16>, vector<8x32xbf16>, vector<16x32xf32> -> vector<16x32xf32>
    %546 = arith.addf %522, %545 : vector<16x32xf32>
    %547 = vector.extract_strided_slice %495 {offsets = [0, 0, 16], sizes = [2, 8, 8], strides = [1, 1, 1]} : vector<2x8x32xbf16> to vector<2x8x8xbf16>
    %548 = vector.extract_strided_slice %496 {offsets = [0, 0, 16], sizes = [2, 8, 8], strides = [1, 1, 1]} : vector<2x8x32xbf16> to vector<2x8x8xbf16>
    %549 = vector.extract_strided_slice %497 {offsets = [0, 0, 16], sizes = [2, 8, 8], strides = [1, 1, 1]} : vector<2x8x32xbf16> to vector<2x8x8xbf16>
    "tpu.trace_start"() <{level = 10 : i32, message = "btd,bsd->bts"}> : () -> ()
    %cst_200 = arith.constant dense<0.000000e+00> : vector<2x8x8xf32>
    %550 = tpu.matmul %547, %548, %cst_200 {dimension_numbers = #tpu.dot_dimension_numbers<[2], [2], [1], [1], [0, 0, 0, 1, 1, 1], [0], [0]>} : vector<2x8x8xbf16>, vector<2x8x8xbf16>, vector<2x8x8xf32> -> vector<2x8x8xf32>
    "tpu.trace_stop"() : () -> ()
    %cst_201 = arith.constant 0.353553385 : f32
    %551 = vector.broadcast %cst_201 : f32 to vector<2x8x8xf32>
    %552 = arith.mulf %550, %551 : vector<2x8x8xf32>
    %cst_202 = arith.constant dense<0xFF800000> : vector<2x8xf32>
    %553 = vector.multi_reduction <maximumf>, %552, %cst_202 [2] : vector<2x8x8xf32> to vector<2x8xf32>
    %554 = vector.shape_cast %553 : vector<2x8xf32> to vector<2x8x1xf32>
    %555 = vector.broadcast %554 : vector<2x8x1xf32> to vector<2x8x8xf32>
    %556 = arith.subf %552, %555 : vector<2x8x8xf32>
    %557 = math.exp %556 : vector<2x8x8xf32>
    %cst_203 = arith.constant dense<0.000000e+00> : vector<2x8xf32>
    %558 = vector.multi_reduction <add>, %557, %cst_203 [2] : vector<2x8x8xf32> to vector<2x8xf32>
    %559 = vector.shape_cast %558 : vector<2x8xf32> to vector<2x8x1xf32>
    %560 = tpu.reciprocal %559 {approx = true} : vector<2x8x1xf32> -> vector<2x8x1xf32>
    %561 = vector.broadcast %560 : vector<2x8x1xf32> to vector<2x8x8xf32>
    %562 = arith.mulf %557, %561 : vector<2x8x8xf32>
    %563 = arith.truncf %562 : vector<2x8x8xf32> to vector<2x8x8xbf16>
    "tpu.trace_start"() <{level = 10 : i32, message = "bts,bsd->btd"}> : () -> ()
    %cst_204 = arith.constant dense<0.000000e+00> : vector<2x8x8xf32>
    %564 = tpu.matmul %563, %549, %cst_204 {dimension_numbers = #tpu.dot_dimension_numbers<[2], [1], [1], [2], [0, 0, 0, 1, 1, 2], [0], [0]>} : vector<2x8x8xbf16>, vector<2x8x8xbf16>, vector<2x8x8xf32> -> vector<2x8x8xf32>
    "tpu.trace_stop"() : () -> ()
    %565 = vector.shape_cast %564 : vector<2x8x8xf32> to vector<16x8xf32>
    %566 = arith.truncf %565 : vector<16x8xf32> to vector<16x8xbf16>
    %567 = vector.extract_strided_slice %491 {offsets = [2, 0, 0], sizes = [1, 8, 32], strides = [1, 1, 1]} : vector<4x8x32xbf16> to vector<1x8x32xbf16>
    %568 = vector.shape_cast %567 : vector<1x8x32xbf16> to vector<8x32xbf16>
    %cst_205 = arith.constant dense<0.000000e+00> : vector<16x32xf32>
    %569 = tpu.matmul %566, %568, %cst_205 {dimension_numbers = #tpu.dot_dimension_numbers<[1], [0], [0], [1], [0, 0, 1, 1], [], []>} : vector<16x8xbf16>, vector<8x32xbf16>, vector<16x32xf32> -> vector<16x32xf32>
    %570 = arith.addf %546, %569 : vector<16x32xf32>
    %571 = vector.extract_strided_slice %495 {offsets = [0, 0, 24], sizes = [2, 8, 8], strides = [1, 1, 1]} : vector<2x8x32xbf16> to vector<2x8x8xbf16>
    %572 = vector.extract_strided_slice %496 {offsets = [0, 0, 24], sizes = [2, 8, 8], strides = [1, 1, 1]} : vector<2x8x32xbf16> to vector<2x8x8xbf16>
    %573 = vector.extract_strided_slice %497 {offsets = [0, 0, 24], sizes = [2, 8, 8], strides = [1, 1, 1]} : vector<2x8x32xbf16> to vector<2x8x8xbf16>
    "tpu.trace_start"() <{level = 10 : i32, message = "btd,bsd->bts"}> : () -> ()
    %cst_206 = arith.constant dense<0.000000e+00> : vector<2x8x8xf32>
    %574 = tpu.matmul %571, %572, %cst_206 {dimension_numbers = #tpu.dot_dimension_numbers<[2], [2], [1], [1], [0, 0, 0, 1, 1, 1], [0], [0]>} : vector<2x8x8xbf16>, vector<2x8x8xbf16>, vector<2x8x8xf32> -> vector<2x8x8xf32>
    "tpu.trace_stop"() : () -> ()
    %cst_207 = arith.constant 0.353553385 : f32
    %575 = vector.broadcast %cst_207 : f32 to vector<2x8x8xf32>
    %576 = arith.mulf %574, %575 : vector<2x8x8xf32>
    %cst_208 = arith.constant dense<0xFF800000> : vector<2x8xf32>
    %577 = vector.multi_reduction <maximumf>, %576, %cst_208 [2] : vector<2x8x8xf32> to vector<2x8xf32>
    %578 = vector.shape_cast %577 : vector<2x8xf32> to vector<2x8x1xf32>
    %579 = vector.broadcast %578 : vector<2x8x1xf32> to vector<2x8x8xf32>
    %580 = arith.subf %576, %579 : vector<2x8x8xf32>
    %581 = math.exp %580 : vector<2x8x8xf32>
    %cst_209 = arith.constant dense<0.000000e+00> : vector<2x8xf32>
    %582 = vector.multi_reduction <add>, %581, %cst_209 [2] : vector<2x8x8xf32> to vector<2x8xf32>
    %583 = vector.shape_cast %582 : vector<2x8xf32> to vector<2x8x1xf32>
    %584 = tpu.reciprocal %583 {approx = true} : vector<2x8x1xf32> -> vector<2x8x1xf32>
    %585 = vector.broadcast %584 : vector<2x8x1xf32> to vector<2x8x8xf32>
    %586 = arith.mulf %581, %585 : vector<2x8x8xf32>
    %587 = arith.truncf %586 : vector<2x8x8xf32> to vector<2x8x8xbf16>
    "tpu.trace_start"() <{level = 10 : i32, message = "bts,bsd->btd"}> : () -> ()
    %cst_210 = arith.constant dense<0.000000e+00> : vector<2x8x8xf32>
    %588 = tpu.matmul %587, %573, %cst_210 {dimension_numbers = #tpu.dot_dimension_numbers<[2], [1], [1], [2], [0, 0, 0, 1, 1, 2], [0], [0]>} : vector<2x8x8xbf16>, vector<2x8x8xbf16>, vector<2x8x8xf32> -> vector<2x8x8xf32>
    "tpu.trace_stop"() : () -> ()
    %589 = vector.shape_cast %588 : vector<2x8x8xf32> to vector<16x8xf32>
    %590 = arith.truncf %589 : vector<16x8xf32> to vector<16x8xbf16>
    %591 = vector.extract_strided_slice %491 {offsets = [3, 0, 0], sizes = [1, 8, 32], strides = [1, 1, 1]} : vector<4x8x32xbf16> to vector<1x8x32xbf16>
    %592 = vector.shape_cast %591 : vector<1x8x32xbf16> to vector<8x32xbf16>
    %cst_211 = arith.constant dense<0.000000e+00> : vector<16x32xf32>
    %593 = tpu.matmul %590, %592, %cst_211 {dimension_numbers = #tpu.dot_dimension_numbers<[1], [0], [0], [1], [0, 0, 1, 1], [], []>} : vector<16x8xbf16>, vector<8x32xbf16>, vector<16x32xf32> -> vector<16x32xf32>
    %594 = arith.addf %570, %593 : vector<16x32xf32>
    %595 = vector.broadcast %493 : vector<1x32xf32> to vector<16x32xf32>
    %596 = arith.addf %594, %595 : vector<16x32xf32>
    %597 = arith.addf %596, %478 : vector<16x32xf32>
    %c1_212 = arith.constant 1 : index
    %c0_213 = arith.constant 0 : index
    %c0_214 = arith.constant 0 : index
    %598 = vector.load %arg12[%c1_212, %c0_213, %c0_214] : memref<2x1x32xf32, #tpu.memory_space<vmem>>, vector<1x1x32xf32>
    %599 = vector.shape_cast %598 : vector<1x1x32xf32> to vector<1x32xf32>
    %c1_215 = arith.constant 1 : index
    %c0_216 = arith.constant 0 : index
    %c0_217 = arith.constant 0 : index
    %600 = vector.load %arg13[%c1_215, %c0_216, %c0_217] : memref<2x1x32xf32, #tpu.memory_space<vmem>>, vector<1x1x32xf32>
    %601 = vector.shape_cast %600 : vector<1x1x32xf32> to vector<1x32xf32>
    %cst_218 = arith.constant dense<0.000000e+00> : vector<16xf32>
    %602 = vector.multi_reduction <add>, %597, %cst_218 [1] : vector<16x32xf32> to vector<16xf32>
    %603 = vector.shape_cast %602 : vector<16xf32> to vector<16x1xf32>
    %cst_219 = arith.constant 3.200000e+01 : f32
    %604 = vector.broadcast %cst_219 : f32 to vector<16x1xf32>
    %605 = arith.divf %603, %604 : vector<16x1xf32>
    %606 = arith.mulf %597, %597 : vector<16x32xf32>
    %cst_220 = arith.constant dense<0.000000e+00> : vector<16xf32>
    %607 = vector.multi_reduction <add>, %606, %cst_220 [1] : vector<16x32xf32> to vector<16xf32>
    %608 = vector.shape_cast %607 : vector<16xf32> to vector<16x1xf32>
    %cst_221 = arith.constant 3.200000e+01 : f32
    %609 = vector.broadcast %cst_221 : f32 to vector<16x1xf32>
    %610 = arith.divf %608, %609 : vector<16x1xf32>
    %611 = arith.mulf %605, %605 : vector<16x1xf32>
    %612 = arith.subf %610, %611 : vector<16x1xf32>
    %613 = vector.broadcast %605 : vector<16x1xf32> to vector<16x32xf32>
    %614 = arith.subf %597, %613 : vector<16x32xf32>
    %cst_222 = arith.constant 9.99999974E-6 : f32
    %615 = vector.broadcast %cst_222 : f32 to vector<16x1xf32>
    %616 = arith.addf %612, %615 : vector<16x1xf32>
    %617 = math.rsqrt %616 : vector<16x1xf32>
    %618 = vector.broadcast %617 : vector<16x1xf32> to vector<16x32xf32>
    %619 = arith.mulf %614, %618 : vector<16x32xf32>
    %620 = vector.broadcast %599 : vector<1x32xf32> to vector<16x32xf32>
    %621 = arith.mulf %619, %620 : vector<16x32xf32>
    %622 = vector.broadcast %601 : vector<1x32xf32> to vector<16x32xf32>
    %623 = arith.addf %621, %622 : vector<16x32xf32>
    %624 = arith.truncf %623 : vector<16x32xf32> to vector<16x32xbf16>
    %c1_223 = arith.constant 1 : index
    %c0_224 = arith.constant 0 : index
    %c0_225 = arith.constant 0 : index
    %625 = vector.load %arg14[%c1_223, %c0_224, %c0_225] : memref<2x32x128xbf16, #tpu.memory_space<vmem>>, vector<1x32x128xbf16>
    %626 = vector.shape_cast %625 : vector<1x32x128xbf16> to vector<32x128xbf16>
    %cst_226 = arith.constant dense<0.000000e+00> : vector<16x128xf32>
    %627 = tpu.matmul %624, %626, %cst_226 {dimension_numbers = #tpu.dot_dimension_numbers<[1], [0], [0], [1], [0, 0, 1, 1], [], []>} : vector<16x32xbf16>, vector<32x128xbf16>, vector<16x128xf32> -> vector<16x128xf32>
    %c1_227 = arith.constant 1 : index
    %c0_228 = arith.constant 0 : index
    %c0_229 = arith.constant 0 : index
    %628 = vector.load %arg15[%c1_227, %c0_228, %c0_229] : memref<2x1x128xf32, #tpu.memory_space<vmem>>, vector<1x1x128xf32>
    %629 = vector.shape_cast %628 : vector<1x1x128xf32> to vector<1x128xf32>
    %630 = vector.broadcast %629 : vector<1x128xf32> to vector<16x128xf32>
    %631 = arith.addf %627, %630 : vector<16x128xf32>
    %cst_230 = arith.constant 0.000000e+00 : f32
    %632 = vector.broadcast %cst_230 : f32 to vector<16x128xf32>
    %633 = arith.maximumf %631, %632 : vector<16x128xf32>
    %634 = arith.truncf %633 : vector<16x128xf32> to vector<16x128xbf16>
    %c1_231 = arith.constant 1 : index
    %c0_232 = arith.constant 0 : index
    %c0_233 = arith.constant 0 : index
    %635 = vector.load %arg16[%c1_231, %c0_232, %c0_233] : memref<2x128x32xbf16, #tpu.memory_space<vmem>>, vector<1x128x32xbf16>
    %636 = vector.shape_cast %635 : vector<1x128x32xbf16> to vector<128x32xbf16>
    %cst_234 = arith.constant dense<0.000000e+00> : vector<16x32xf32>
    %637 = tpu.matmul %634, %636, %cst_234 {dimension_numbers = #tpu.dot_dimension_numbers<[1], [0], [0], [1], [0, 0, 1, 1], [], []>} : vector<16x128xbf16>, vector<128x32xbf16>, vector<16x32xf32> -> vector<16x32xf32>
    %c1_235 = arith.constant 1 : index
    %c0_236 = arith.constant 0 : index
    %c0_237 = arith.constant 0 : index
    %638 = vector.load %arg17[%c1_235, %c0_236, %c0_237] : memref<2x1x32xf32, #tpu.memory_space<vmem>>, vector<1x1x32xf32>
    %639 = vector.shape_cast %638 : vector<1x1x32xf32> to vector<1x32xf32>
    %640 = vector.broadcast %639 : vector<1x32xf32> to vector<16x32xf32>
    %641 = arith.addf %637, %640 : vector<16x32xf32>
    %642 = arith.addf %641, %623 : vector<16x32xf32>
    %c1_238 = arith.constant 1 : index
    %c0_239 = arith.constant 0 : index
    %c0_240 = arith.constant 0 : index
    %643 = vector.load %arg18[%c1_238, %c0_239, %c0_240] : memref<2x1x32xf32, #tpu.memory_space<vmem>>, vector<1x1x32xf32>
    %644 = vector.shape_cast %643 : vector<1x1x32xf32> to vector<1x32xf32>
    %c1_241 = arith.constant 1 : index
    %c0_242 = arith.constant 0 : index
    %c0_243 = arith.constant 0 : index
    %645 = vector.load %arg19[%c1_241, %c0_242, %c0_243] : memref<2x1x32xf32, #tpu.memory_space<vmem>>, vector<1x1x32xf32>
    %646 = vector.shape_cast %645 : vector<1x1x32xf32> to vector<1x32xf32>
    %cst_244 = arith.constant dense<0.000000e+00> : vector<16xf32>
    %647 = vector.multi_reduction <add>, %642, %cst_244 [1] : vector<16x32xf32> to vector<16xf32>
    %648 = vector.shape_cast %647 : vector<16xf32> to vector<16x1xf32>
    %cst_245 = arith.constant 3.200000e+01 : f32
    %649 = vector.broadcast %cst_245 : f32 to vector<16x1xf32>
    %650 = arith.divf %648, %649 : vector<16x1xf32>
    %651 = arith.mulf %642, %642 : vector<16x32xf32>
    %cst_246 = arith.constant dense<0.000000e+00> : vector<16xf32>
    %652 = vector.multi_reduction <add>, %651, %cst_246 [1] : vector<16x32xf32> to vector<16xf32>
    %653 = vector.shape_cast %652 : vector<16xf32> to vector<16x1xf32>
    %cst_247 = arith.constant 3.200000e+01 : f32
    %654 = vector.broadcast %cst_247 : f32 to vector<16x1xf32>
    %655 = arith.divf %653, %654 : vector<16x1xf32>
    %656 = arith.mulf %650, %650 : vector<16x1xf32>
    %657 = arith.subf %655, %656 : vector<16x1xf32>
    %658 = vector.broadcast %650 : vector<16x1xf32> to vector<16x32xf32>
    %659 = arith.subf %642, %658 : vector<16x32xf32>
    %cst_248 = arith.constant 9.99999974E-6 : f32
    %660 = vector.broadcast %cst_248 : f32 to vector<16x1xf32>
    %661 = arith.addf %657, %660 : vector<16x1xf32>
    %662 = math.rsqrt %661 : vector<16x1xf32>
    %663 = vector.broadcast %662 : vector<16x1xf32> to vector<16x32xf32>
    %664 = arith.mulf %659, %663 : vector<16x32xf32>
    %665 = vector.broadcast %644 : vector<1x32xf32> to vector<16x32xf32>
    %666 = arith.mulf %664, %665 : vector<16x32xf32>
    %667 = vector.broadcast %646 : vector<1x32xf32> to vector<16x32xf32>
    %668 = arith.addf %666, %667 : vector<16x32xf32>
    %669 = arith.truncf %668 : vector<16x32xf32> to vector<16x32xbf16>
    %c0_249 = arith.constant 0 : index
    %c0_250 = arith.constant 0 : index
    %670 = vector.load %arg20[%c0_249, %c0_250] : memref<32x128xbf16, #tpu.memory_space<vmem>>, vector<32x128xbf16>
    %cst_251 = arith.constant dense<0.000000e+00> : vector<16x128xf32>
    %671 = tpu.matmul %669, %670, %cst_251 {dimension_numbers = #tpu.dot_dimension_numbers<[1], [0], [0], [1], [0, 0, 1, 1], [], []>} : vector<16x32xbf16>, vector<32x128xbf16>, vector<16x128xf32> -> vector<16x128xf32>
    %c0_252 = arith.constant 0 : index
    %c0_253 = arith.constant 0 : index
    %672 = vector.load %arg21[%c0_252, %c0_253] : memref<1x128xf32, #tpu.memory_space<vmem>>, vector<1x128xf32>
    %673 = vector.broadcast %672 : vector<1x128xf32> to vector<16x128xf32>
    %674 = arith.addf %671, %673 : vector<16x128xf32>
    %c0_254 = arith.constant 0 : index
    %c0_255 = arith.constant 0 : index
    %675 = vector.load %arg22[%c0_254, %c0_255] : memref<16x128xf32, #tpu.memory_space<vmem>>, vector<16x128xf32>
    tpu.vector_store %arg22[%c0_254, %c0_255], %674 {strides = array<i32>} : memref<16x128xf32, #tpu.memory_space<vmem>>, vector<16x128xf32>,
    return
  }
  func.func @transform_0(%arg0: i32) -> (i32, i32) {
    %c0_i32 = arith.constant 0 : i32
    %c0_i32_0 = arith.constant 0 : i32
    %c0_i32_1 = arith.constant 0 : i32
    return %c0_i32, %c0_i32_0 : i32, i32
  }
  func.func @transform_1(%arg0: i32) -> (i32, i32) {
    %c0_i32 = arith.constant 0 : i32
    %c0_i32_0 = arith.constant 0 : i32
    %c0_i32_1 = arith.constant 0 : i32
    return %c0_i32, %c0_i32_0 : i32, i32
  }
  func.func @transform_2(%arg0: i32) -> (i32, i32, i32) {
    %c0_i32 = arith.constant 0 : i32
    %c0_i32_0 = arith.constant 0 : i32
    %c0_i32_1 = arith.constant 0 : i32
    %c0_i32_2 = arith.constant 0 : i32
    return %c0_i32, %c0_i32_0, %c0_i32_1 : i32, i32, i32
  }
  func.func @transform_3(%arg0: i32) -> (i32, i32, i32, i32) {
    %c0_i32 = arith.constant 0 : i32
    %c0_i32_0 = arith.constant 0 : i32
    %c0_i32_1 = arith.constant 0 : i32
    %c0_i32_2 = arith.constant 0 : i32
    %c0_i32_3 = arith.constant 0 : i32
    return %c0_i32, %c0_i32_0, %c0_i32_1, %c0_i32_2 : i32, i32, i32, i32
  }
  func.func @transform_4(%arg0: i32) -> (i32, i32, i32) {
    %c0_i32 = arith.constant 0 : i32
    %c0_i32_0 = arith.constant 0 : i32
    %c0_i32_1 = arith.constant 0 : i32
    %c0_i32_2 = arith.constant 0 : i32
    return %c0_i32, %c0_i32_0, %c0_i32_1 : i32, i32, i32
  }
  func.func @transform_5(%arg0: i32) -> (i32, i32, i32) {
    %c0_i32 = arith.constant 0 : i32
    %c0_i32_0 = arith.constant 0 : i32
    %c0_i32_1 = arith.constant 0 : i32
    %c0_i32_2 = arith.constant 0 : i32
    return %c0_i32, %c0_i32_0, %c0_i32_1 : i32, i32, i32
  }
  func.func @transform_6(%arg0: i32) -> (i32, i32, i32) {
    %c0_i32 = arith.constant 0 : i32
    %c0_i32_0 = arith.constant 0 : i32
    %c0_i32_1 = arith.constant 0 : i32
    %c0_i32_2 = arith.constant 0 : i32
    return %c0_i32, %c0_i32_0, %c0_i32_1 : i32, i32, i32
  }
  func.func @transform_7(%arg0: i32) -> (i32, i32, i32) {
    %c0_i32 = arith.constant 0 : i32
    %c0_i32_0 = arith.constant 0 : i32
    %c0_i32_1 = arith.constant 0 : i32
    %c0_i32_2 = arith.constant 0 : i32
    return %c0_i32, %c0_i32_0, %c0_i32_1 : i32, i32, i32
  }
  func.func @transform_8(%arg0: i32) -> (i32, i32, i32) {
    %c0_i32 = arith.constant 0 : i32
    %c0_i32_0 = arith.constant 0 : i32
    %c0_i32_1 = arith.constant 0 : i32
    %c0_i32_2 = arith.constant 0 : i32
    return %c0_i32, %c0_i32_0, %c0_i32_1 : i32, i32, i32
  }
  func.func @transform_9(%arg0: i32) -> (i32, i32, i32, i32) {
    %c0_i32 = arith.constant 0 : i32
    %c0_i32_0 = arith.constant 0 : i32
    %c0_i32_1 = arith.constant 0 : i32
    %c0_i32_2 = arith.constant 0 : i32
    %c0_i32_3 = arith.constant 0 : i32
    return %c0_i32, %c0_i32_0, %c0_i32_1, %c0_i32_2 : i32, i32, i32, i32
  }
  func.func @transform_10(%arg0: i32) -> (i32, i32, i32) {
    %c0_i32 = arith.constant 0 : i32
    %c0_i32_0 = arith.constant 0 : i32
    %c0_i32_1 = arith.constant 0 : i32
    %c0_i32_2 = arith.constant 0 : i32
    return %c0_i32, %c0_i32_0, %c0_i32_1 : i32, i32, i32
  }
  func.func @transform_11(%arg0: i32) -> (i32, i32, i32) {
    %c0_i32 = arith.constant 0 : i32
    %c0_i32_0 = arith.constant 0 : i32
    %c0_i32_1 = arith.constant 0 : i32
    %c0_i32_2 = arith.constant 0 : i32
    return %c0_i32, %c0_i32_0, %c0_i32_1 : i32, i32, i32
  }
  func.func @transform_12(%arg0: i32) -> (i32, i32, i32) {
    %c0_i32 = arith.constant 0 : i32
    %c0_i32_0 = arith.constant 0 : i32
    %c0_i32_1 = arith.constant 0 : i32
    %c0_i32_2 = arith.constant 0 : i32
    return %c0_i32, %c0_i32_0, %c0_i32_1 : i32, i32, i32
  }
  func.func @transform_13(%arg0: i32) -> (i32, i32, i32) {
    %c0_i32 = arith.constant 0 : i32
    %c0_i32_0 = arith.constant 0 : i32
    %c0_i32_1 = arith.constant 0 : i32
    %c0_i32_2 = arith.constant 0 : i32
    return %c0_i32, %c0_i32_0, %c0_i32_1 : i32, i32, i32
  }
  func.func @transform_14(%arg0: i32) -> (i32, i32, i32) {
    %c0_i32 = arith.constant 0 : i32
    %c0_i32_0 = arith.constant 0 : i32
    %c0_i32_1 = arith.constant 0 : i32
    %c0_i32_2 = arith.constant 0 : i32
    return %c0_i32, %c0_i32_0, %c0_i32_1 : i32, i32, i32
  }
  func.func @transform_15(%arg0: i32) -> (i32, i32, i32) {
    %c0_i32 = arith.constant 0 : i32
    %c0_i32_0 = arith.constant 0 : i32
    %c0_i32_1 = arith.constant 0 : i32
    %c0_i32_2 = arith.constant 0 : i32
    return %c0_i32, %c0_i32_0, %c0_i32_1 : i32, i32, i32
  }
  func.func @transform_16(%arg0: i32) -> (i32, i32, i32) {
    %c0_i32 = arith.constant 0 : i32
    %c0_i32_0 = arith.constant 0 : i32
    %c0_i32_1 = arith.constant 0 : i32
    %c0_i32_2 = arith.constant 0 : i32
    return %c0_i32, %c0_i32_0, %c0_i32_1 : i32, i32, i32
  }
  func.func @transform_17(%arg0: i32) -> (i32, i32, i32) {
    %c0_i32 = arith.constant 0 : i32
    %c0_i32_0 = arith.constant 0 : i32
    %c0_i32_1 = arith.constant 0 : i32
    %c0_i32_2 = arith.constant 0 : i32
    return %c0_i32, %c0_i32_0, %c0_i32_1 : i32, i32, i32
  }
  func.func @transform_18(%arg0: i32) -> (i32, i32, i32) {
    %c0_i32 = arith.constant 0 : i32
    %c0_i32_0 = arith.constant 0 : i32
    %c0_i32_1 = arith.constant 0 : i32
    %c0_i32_2 = arith.constant 0 : i32
    return %c0_i32, %c0_i32_0, %c0_i32_1 : i32, i32, i32
  }
  func.func @transform_19(%arg0: i32) -> (i32, i32) {
    %c0_i32 = arith.constant 0 : i32
    %c0_i32_0 = arith.constant 0 : i32
    %c0_i32_1 = arith.constant 0 : i32
    return %c0_i32, %c0_i32_0 : i32, i32
  }
  func.func @transform_20(%arg0: i32) -> (i32, i32) {
    %c0_i32 = arith.constant 0 : i32
    %c0_i32_0 = arith.constant 0 : i32
    %c0_i32_1 = arith.constant 0 : i32
    return %c0_i32, %c0_i32_0 : i32, i32
  }
  func.func @transform_21(%arg0: i32) -> (i32, i32) {
    %c0_i32 = arith.constant 0 : i32
    %c0_i32_0 = arith.constant 0 : i32
    %c0_i32_1 = arith.constant 0 : i32
    return %c0_i32, %c0_i32_0 : i32, i32
  }
}

</mosaic_0001>

<bundles_post_ra>
// kernel: tpu_custom_call.1
= control target key start
LH: loop header
LB: loop body
LE: loop exit
PB: predicated region body
PF: predicated region fallthrough
CT: control target
= control target key end

     0   :  { %s8317_s0 = inlined_call_operand.hbm [shape: f32[16,32], index: 0, kind: input, shape index: {}]   ;;  %s8318_s1 = inlined_call_operand.hbm [shape: f32[16,32], index: 1, kind: input, shape index: {}]   ;;  %s8319_s2 = inlined_call_operand.vmem [shape: bf16[2,32,96], index: 2, kind: input, shape index: {}]   ;;  %s8320_s3 = inlined_call_operand.vmem [shape: bf16[2,4,8,32], index: 3, kind: input, shape index: {}]   ;;  %s8321_s4 = inlined_call_operand.vmem [shape: f32[2,1,32], index: 4, kind: input, shape index: {}]   ;;  %s8322_s5 = inlined_call_operand.hbm [shape: f32[2,1,32], index: 5, kind: input, shape index: {}]   ;;  %s8323_s6 = inlined_call_operand.vmem [shape: f32[2,1,32], index: 6, kind: input, shape index: {}]   ;;  %s8324_s7 = inlined_call_operand.vmem [shape: bf16[2,32,32], index: 7, kind: input, shape index: {}]   ;;  %s8325_s8 = inlined_call_operand.vmem [shape: bf16[2,32,64], index: 8, kind: input, shape index: {}]   ;;  %s8326_s9 = inlined_call_operand.vmem [shape: bf16[2,4,8,32], index: 9, kind: input, shape index: {}]   ;;  %s8327_s10 = inlined_call_operand.vmem [shape: f32[2,1,32], index: 10, kind: input, shape index: {}]   ;;  %s8328_s11 = inlined_call_operand.vmem [shape: f32[2,1,32], index: 11, kind: input, shape index: {}]   ;;  %s8329_s12 = inlined_call_operand.hbm [shape: f32[2,1,32], index: 12, kind: input, shape index: {}]   ;;  %s8330_s13 = inlined_call_operand.hbm [shape: bf16[2,32,128], index: 13, kind: input, shape index: {}]   ;;  %s8331_s14 = inlined_call_operand.hbm [shape: f32[2,1,128], index: 14, kind: input, shape index: {}]   ;;  %s8332_s15 = inlined_call_operand.vmem [shape: bf16[2,128,32], index: 15, kind: input, shape index: {}]   ;;  %s8333_s16 = inlined_call_operand.vmem [shape: f32[2,1,32], index: 16, kind: input, shape index: {}]   ;;  %s8334_s17 = inlined_call_operand.vmem [shape: f32[2,1,32], index: 17, kind: input, shape index: {}]   ;;  %s8335_s18 = inlined_call_operand.vmem [shape: f32[2,1,32], index: 18, kind: input, shape index: {}]   ;;  %s8336_s19 = inlined_call_operand.vmem [shape: bf16[32,128], index: 19, kind: input, shape index: {}]   ;;  %s8337_s20 = inlined_call_operand.vmem [shape: f32[1,128], index: 20, kind: input, shape index: {}]   ;;  %s8338_s21 = inlined_call_operand.hbm [shape: f32[16,128], index: 21, kind: output, shape index: {}]  }
   0x1   :  { %8356 = sst [smem:[#allocation19_spill]] %s8317_s0 }
   0x2   :  { %8357 = sst [smem:[#allocation20_spill]] %s8318_s1 }
   0x3   :  { %8358 = sst [smem:[#allocation21_spill]] %s8319_s2 }
   0x4   :  { %8359 = sst [smem:[#allocation22_spill]] %s8320_s3 }
   0x5   :  { %8360 = sst [smem:[#allocation23_spill]] %s8321_s4 }
   0x6   :  { %8361 = sst [smem:[#allocation24_spill]] %s8322_s5 }
   0x7   :  { %8362 = sst [smem:[#allocation25_spill]] %s8337_s20 }
   0x8   :  { %8363 = sst [smem:[#allocation26_spill]] %s8338_s21 }
   0x9   :  { %26 = vsyncpa [#allocation3], 0 }
   0xa   :  { %27 = vsyncpa [#allocation6], 0 }
   0xb   :  { %28 = vsyncpa [#allocation9], 0 }
   0xc   :  { %29 = vsyncpa [#allocation12], 0 }
   0xd   :  { %30 = vsyncpa [#allocation4], 0  ;;  %s7042_s2 = smov [#allocation5]   ;;  %s8364_s3 = sld [smem:[#allocation20_spill]] }
   0xe   :  { %s48_s25 = sshll.u32 %s7042_s2, 4  ;;  %s49_s25 = int_to_ptr.vmem [resolvable:$true] %s48_s25 }
  0x13   :  { %s6878_s28 = scalar_lea.hbm %s8364_s3, 256 }
  0x14   :  { %p6879_p0 = scmp.ne.s32.totalorder %s8364_s3, %s6878_s28  ;;  %p6882_p1 = scmp.lt.u32.totalorder %s6878_s28, %s8364_s3 }
  0x16   :  { %p6884_p2 = pnand %p6882_p1, %p6879_p0 }
  0x18   :  { %6887 = shalt.err (!%p6884_p2)
}
  0x19   :  { %s6888_s5 = scalar_lea.vmem %s49_s25, 256  ;;  %p6893_p4 = scmp.lt.s32.totalorder %s49_s25, %s49_s25 }
  0x1a   :  { %p6889_p3 = scmp.ne.s32.totalorder %s49_s25, %s6888_s5  ;;  %p6894_p5 = scmp.lt.s32.totalorder %s6888_s5, %s6888_s5 }
  0x1c   :  { %p6895_p6 = por %p6894_p5, %p6893_p4 }
  0x1e   :  { %p6896_p7 = pnand %p6895_p6, %p6889_p3 }
  0x20   :  { %6899 = shalt.err (!%p6896_p7)
}
  0x21   :  { %s8350_s22 = smov 128   ;;  %s8351_s23 = smov 8  }
  0x22   :  { %54 = dma.hbm_to_vmem [thread:$0]  %s8364_s3, 256, %s49_s25, [#allocation6], %s8350_s22, %s8350_s22, %s8351_s23  }
  0x23   :  { %s7045_s2 = smov [#allocation8]   ;;  %s7046_s27 = smov [#allocation2]  }
  0x24   :  { %s90_s26 = sshll.u32 %s7045_s2, 4  ;;  %s36_s28 = sshll.u32 %s7046_s27, 4  ;;  %s91_s26 = int_to_ptr.vmem [resolvable:$true] %s90_s26  ;;  %s37_s28 = int_to_ptr.vmem [resolvable:$true] %s36_s28 }
  0x25   :  { %s6900_s4 = scalar_lea.hbm %s8329_s12, 32 }
  0x26   :  { %p6901_p8 = scmp.ne.s32.totalorder %s8329_s12, %s6900_s4  ;;  %p6904_p9 = scmp.lt.u32.totalorder %s6900_s4, %s8329_s12 }
  0x28   :  { %p6906_p10 = pnand %p6904_p9, %p6901_p8 }
  0x2a   :  { %6909 = shalt.err (!%p6906_p10)
}
  0x2b   :  { %s6910_s25 = scalar_lea.vmem %s91_s26, 32  ;;  %p6915_p12 = scmp.lt.s32.totalorder %s91_s26, %s91_s26 }
  0x2c   :  { %p6911_p11 = scmp.ne.s32.totalorder %s91_s26, %s6910_s25  ;;  %p6916_p13 = scmp.lt.s32.totalorder %s6910_s25, %s6910_s25 }
  0x2e   :  { %p6917_p0 = por %p6916_p13, %p6915_p12 }
  0x30   :  { %p6918_p1 = pnand %p6917_p0, %p6911_p11 }
  0x32   :  { %6921 = shalt.err (!%p6918_p1)
}
  0x33   :  { %s8346_s3 = smov 16   ;;  %s8348_s1 = smov 1  }
  0x34   :  { %96 = dma.hbm_to_vmem [thread:$0]  %s8329_s12, 32, %s91_s26, [#allocation9], %s8346_s3, %s8346_s3, %s8348_s1  }
  0x35   :  { %s8365_s27 = sld [smem:[#allocation19_spill]] }
  0x3b   :  { %s6922_s29 = scalar_lea.hbm %s8365_s27, 256 }
  0x3c   :  { %p6923_p2 = scmp.ne.s32.totalorder %s8365_s27, %s6922_s29  ;;  %p6926_p3 = scmp.lt.u32.totalorder %s6922_s29, %s8365_s27 }
  0x3e   :  { %p6928_p4 = pnand %p6926_p3, %p6923_p2 }
  0x40   :  { %6931 = shalt.err (!%p6928_p4)
}
  0x41   :  { %s6932_s25 = scalar_lea.vmem %s37_s28, 256  ;;  %p6937_p6 = scmp.lt.s32.totalorder %s37_s28, %s37_s28 }
  0x42   :  { %p6933_p5 = scmp.ne.s32.totalorder %s37_s28, %s6932_s25  ;;  %p6938_p7 = scmp.lt.s32.totalorder %s6932_s25, %s6932_s25 }
  0x44   :  { %p6939_p8 = por %p6938_p7, %p6937_p6 }
  0x46   :  { %p6940_p9 = pnand %p6939_p8, %p6933_p5 }
  0x48   :  { %6943 = shalt.err (!%p6940_p9)
}
  0x49   :  { %42 = dma.hbm_to_vmem [thread:$0]  %s8365_s27, 256, %s37_s28, [#allocation3], %s8350_s22, %s8350_s22, %s8351_s23  }
  0x4a   :  { %s7049_s24 = smov [#allocation7]   ;;  %s7050_s20 = smov [#allocation10]  }
  0x4b   :  { %s66_s2 = sshll.u32 %s7049_s24, 4  ;;  %s102_s21 = sshll.u32 %s7050_s20, 4  ;;  %s67_s2 = int_to_ptr.vmem [resolvable:$true] %s66_s2  ;;  %s103_s21 = int_to_ptr.vmem [resolvable:$true] %s102_s21 }
  0x4c   :  { %s8366_s4 = sld [smem:[#allocation24_spill]] }
  0x52   :  { %s6944_s30 = scalar_lea.hbm %s8366_s4, 32 }
  0x53   :  { %p6945_p10 = scmp.ne.s32.totalorder %s8366_s4, %s6944_s30  ;;  %p6948_p11 = scmp.lt.u32.totalorder %s6944_s30, %s8366_s4 }
  0x55   :  { %p6950_p12 = pnand %p6948_p11, %p6945_p10 }
  0x57   :  { %6953 = shalt.err (!%p6950_p12)
}
  0x58   :  { %s6954_s28 = scalar_lea.vmem %s67_s2, 32  ;;  %p6959_p0 = scmp.lt.s32.totalorder %s67_s2, %s67_s2 }
  0x59   :  { %p6955_p13 = scmp.ne.s32.totalorder %s67_s2, %s6954_s28  ;;  %p6960_p1 = scmp.lt.s32.totalorder %s6954_s28, %s6954_s28 }
  0x5b   :  { %p6961_p2 = por %p6960_p1, %p6959_p0 }
  0x5d   :  { %p6962_p3 = pnand %p6961_p2, %p6955_p13 }
  0x5f   :  { %6965 = shalt.err (!%p6962_p3)
}
  0x60   :  { %s8367_s27 = smov 1   ;;  %s8368_s12 = smov 16  }
  0x61   :  { %72 = dma.hbm_to_vmem [thread:$0]  %s8366_s4, 32, %s67_s2, [#allocation6], %s8368_s12, %s8368_s12, %s8367_s27  }
  0x62   :  { %s6966_s1 = scalar_lea.hbm %s8330_s13, 512 }
  0x63   :  { %p6967_p4 = scmp.ne.s32.totalorder %s8330_s13, %s6966_s1  ;;  %p6970_p5 = scmp.lt.u32.totalorder %s6966_s1, %s8330_s13 }
  0x65   :  { %p6972_p6 = pnand %p6970_p5, %p6967_p4 }
  0x67   :  { %6975 = shalt.err (!%p6972_p6)
}
  0x68   :  { %s6976_s25 = scalar_lea.vmem %s103_s21, 512  ;;  %p6981_p8 = scmp.lt.s32.totalorder %s103_s21, %s103_s21 }
  0x69   :  { %p6977_p7 = scmp.ne.s32.totalorder %s103_s21, %s6976_s25  ;;  %p6982_p9 = scmp.lt.s32.totalorder %s6976_s25, %s6976_s25 }
  0x6b   :  { %p6983_p10 = por %p6982_p9, %p6981_p8 }
  0x6d   :  { %p6984_p11 = pnand %p6983_p10, %p6977_p7 }
  0x6f   :  { %6987 = shalt.err (!%p6984_p11)
}
  0x70   :  { %s7051_s2 = smov 64   ;;  %s7052_s4 = smov 4  }
  0x71   :  { %108 = dma.hbm_to_vmem [thread:$0]  %s8330_s13, 512, %s103_s21, [#allocation9], %s7051_s2, %s7051_s2, %s7052_s4  }
  0x72   :  { %s7053_s24 = smov [#allocation11]   ;;  %s6988_s29 = scalar_lea.hbm %s8331_s14, 32 }
  0x73   :  { %s114_s20 = sshll.u32 %s7053_s24, 4  ;;  %p6989_p12 = scmp.ne.s32.totalorder %s8331_s14, %s6988_s29  ;;  %s115_s20 = int_to_ptr.vmem [resolvable:$true] %s114_s20 }
  0x74   :  { %p6992_p13 = scmp.lt.u32.totalorder %s6988_s29, %s8331_s14 }
  0x76   :  { %p6994_p0 = pnand %p6992_p13, %p6989_p12 }
  0x78   :  { %6997 = shalt.err (!%p6994_p0)
}
  0x79   :  { %s6998_s22 = scalar_lea.vmem %s115_s20, 32  ;;  %p7003_p2 = scmp.lt.s32.totalorder %s115_s20, %s115_s20 }
  0x7a   :  { %p6999_p1 = scmp.ne.s32.totalorder %s115_s20, %s6998_s22  ;;  %p7004_p3 = scmp.lt.s32.totalorder %s6998_s22, %s6998_s22 }
  0x7c   :  { %p7005_p4 = por %p7004_p3, %p7003_p2 }
  0x7e   :  { %p7006_p5 = pnand %p7005_p4, %p6999_p1 }
  0x80   :  { %7009 = shalt.err (!%p7006_p5)
}
  0x81   :  { %120 = dma.hbm_to_vmem [thread:$0]  %s8331_s14, 32, %s115_s20, [#allocation12], %s8368_s12, %s8368_s12, %s8367_s27  }
  0x82   :  { %7032 = dma.done.wait [#allocation3], 256  }
  0x83   :  { %7033 = vsyncadd [#allocation3], 4294967040 }
  0x84   :  { %7034 = dma.done.wait [#allocation6], 288  }
  0x85   :  { %7035 = vsyncadd [#allocation6], 4294967008 }
  0x86   :  { %7036 = dma.done.wait [#allocation9], 544  }
  0x87   :  { %7037 = vsyncadd [#allocation9], 4294966752 }
  0x88   :  { %7038 = dma.done.wait [#allocation12], 32  }
  0x89   :  { %7039 = vsyncadd [#allocation12], 4294967264  ;;  %v7054_v0 = vmov 0.0   ;;  %vm7055_vm0 = vmmov 0   ;;  %s8369_s27 = sld [smem:[#allocation21_spill]]  ;;  %v7278_v3 = vld [vmem:[#allocation2] sm:$0xff] }
  0x8a   :  { %6075 = vmatprep.subr.bf16.mxu1 %v7054_v0  ;;  %6079 = vmatprep.mubr.msk.bf16.mxu1 %vm7055_vm0, %v7054_v0  ;;  %v7280_v4 = vld [vmem:[#allocation2 + $0x8] sm:$0xff]  ;;  %vm174_vm1 = vcmask 261120   ;;  %s7056_s28 = smov 96   ;;  %vm229_vm2 = vcmask 64512   ;;  %s7057_s26 = smov 88   ;;  %vm356_vm3 = vcmask 1043456  }
  0x8b   :  { %6089 = vmatprep.subr.bf16.mxu0 %v7054_v0  ;;  %6091 = vmatprep.mubr.msk.bf16.mxu0 %vm7055_vm0, %v7054_v0  ;;  %v157_v5 = vpack.c.bf16 %v7280_v4, %v7278_v3  ;;  %s7058_s24 = smov 120   ;;  %s7059_s20 = smov 56  }
  0x8c   :  { %s7060_s3 = smov 112   ;;  %s7061_s1 = smov 80  }
  0x8d   :  { %s8370_s30 = sld [smem:[#allocation22_spill]]  ;;  %s7062_s13 = smov 48  }
  0x8e   :  { %s7063_s21 = smov 72   ;;  %s8354_s14 = smov 104  }
  0x8f   :  { %v6692_v1 = vld [vmem:[%s8369_s27] sm:$0xff]   ;;  %v6693_v2 = vld [vmem:[%s8369_s27 + $0x8] sm:$0xff]   ;;  %s8352_s4 = smov 40   ;;  %s8371_s22 = sld [smem:[#allocation23_spill]] }
  0x90   :  { %6076 = vmatpush3.bf16.msra.mxu1 %v6692_v1  ;;  %s8373_s25 = smov 40  }
  0x91   :  { %6077 = vmatprep.subr.bf16.mxu1 %v7054_v0 }
  0x94   :  { %6078 = vmatpush3.bf16.msra.mxu1 %v6693_v2 }
  0x95   :  { %6083 = vmatprep.subr.bf16.mxu1 %v7054_v0 }
  0x97   :  { %6080 = vmatmul.mubr.msk.bf16.vlgmr.msra.gmra.mrb[0].mxu1 %vm174_vm1, %v157_v5 }
  0x98   :  { %6085 = vmatprep.mubr.msk.bf16.mxu1 %vm7055_vm0, %v7054_v0 }
 0x16a   :  { %v212_v6 = vpop.f32.mrb[0].mxu1 }
 0x16b   :  { %v7289_v7 = vpack.c.bf16 %v212_v6, %v212_v6  ;;  %v6081_v8 = vpop.f32.mrb[1].mxu1 }
 0x16c   :  { %v215_v9 = vpop.f32.mrb[2].mxu1 }
 0x16d   :  { %227 = vrot.lane.b32.xlu0 %v7289_v7, %s7056_s28  ;;  %v6082_v10 = vpop.f32.mrb[3].mxu1  ;;  %v7293_v11 = vpack.c.bf16 %v215_v9, %v215_v9 }
 0x171   :  { %277 = vrot.lane.b32.xlu0 %v7293_v11, %s7056_s28 }
 0x1df   :  { %v228_v12 = vpop.permute.xlu0 %227 }
 0x1e0   :  { %v234_v13 = vsel %vm229_vm2, %v228_v12, 0 }
 0x1e1   :  { %6084 = vmatpush3.bf16.xpose.msra.mxu1 %v234_v13 }
 0x1e2   :  { %6095 = vmatprep.subr.bf16.mxu1 %v7054_v0 }
 0x1e3   :  { %v278_v14 = vpop.permute.xlu0 %277 }
 0x1e4   :  { %v283_v15 = vsel %vm229_vm2, %v278_v14, 0 }
 0x1e5   :  { %6090 = vmatpush3.bf16.xpose.msra.mxu0 %v283_v15 }
 0x1e6   :  { %6101 = vmatprep.subr.bf16.mxu0 %v7054_v0 }
 0x1e8   :  { %6086 = vmatmul.mubr.msk.bf16.vlgmr.msra.gmra.mrb[4].mxu1 %vm229_vm2, %v7289_v7 }
 0x1e9   :  { %6097 = vmatprep.mubr.msk.bf16.mxu1 %vm7055_vm0, %v7054_v0 }
 0x1ec   :  { %6092 = vmatmul.mubr.msk.bf16.vlgmr.msra.gmra.mrb[0].mxu0 %vm229_vm2, %v7293_v11 }
 0x1ed   :  { %6103 = vmatprep.mubr.msk.bf16.mxu0 %vm7055_vm0, %v7054_v0 }
 0x2bb   :  { %v270_v16 = vpop.f32.mrb[4].mxu1 }
 0x2bc   :  { %v325_v17 = vmul.f32 0.35355338, %v270_v16  ;;  %v6087_v18 = vpop.f32.mrb[5].mxu1 }
 0x2bd   :  { %v273_v19 = vpop.f32.mrb[6].mxu1 }
 0x2be   :  { %v6088_v20 = vpop.f32.mrb[7].mxu1  ;;  %v327_v21 = vsel %vm229_vm2, %v325_v17, -inf }
 0x2bf   :  { %v319_v22 = vpop.f32.mrb[0].mxu0  ;;  %328 = vmax.xlane.f32.xlu1 %v327_v21 }
 0x2c0   :  { %v326_v23 = vmul.f32 0.35355338, %v319_v22  ;;  %v6093_v24 = vpop.f32.mrb[1].mxu0 }
 0x2c1   :  { %v322_v25 = vpop.f32.mrb[2].mxu0 }
 0x2c2   :  { %v6094_v26 = vpop.f32.mrb[3].mxu0  ;;  %v330_v27 = vsel %vm229_vm2, %v326_v23, -inf }
 0x2c3   :  { %331 = vmax.xlane.f32.xlu1 %v330_v27 }
 0x2d4   :  { %351 = vrot.lane.b32.xlu1 %v7289_v7, %s7051_s2 }
 0x2d8   :  { %400 = vrot.lane.b32.xlu1 %v7293_v11, %s7051_s2 }
 0x2dc   :  { %451 = vrot.lane.b32.xlu1 %v7289_v7, %s7057_s26 }
 0x34c   :  { %v329_v28 = vpop.xlane.xlu1 %328 }
 0x34d   :  { %v333_v29 = vsub.f32 %v325_v17, %v329_v28 }
 0x34f   :  { %v335_v30 = vmul.f32 1.442695, %v333_v29 }
 0x350   :  { %v332_v31 = vpop.xlane.xlu1 %331 }
 0x351   :  { %6726 = vpow2.f32 %v335_v30  ;;  %v334_v32 = vsub.f32 %v326_v23, %v332_v31 }
 0x353   :  { %v337_v33 = vmul.f32 1.442695, %v334_v32 }
 0x354   :  { %v352_v34 = vpop.permute.xlu1 %351 }
 0x355   :  { %6728 = vpow2.f32 %v337_v33  ;;  %v358_v35 = vsel %vm356_vm3, %v352_v34, 0 }
 0x356   :  { %6096 = vmatpush3.bf16.msra.mxu1 %v358_v35  ;;  %v220_v35 = vld [vmem:[%s8370_s30 + $0x4] sm:$0xf] }
 0x357   :  { %6107 = vmatprep.subr.bf16.mxu1 %v7054_v0 }
 0x358   :  { %v401_v36 = vpop.permute.xlu1 %400 }
 0x359   :  { %v406_v37 = vsel %vm356_vm3, %v401_v36, 0 }
 0x35a   :  { %6102 = vmatpush3.bf16.msra.mxu0 %v406_v37 }
 0x35b   :  { %v6727_v38 = vpop.eup %6726  ;;  %6113 = vmatprep.subr.bf16.mxu0 %v7054_v0 }
 0x35c   :  { %v339_v39 = vsel %vm229_vm2, %v6727_v38, 0.0  ;;  %v452_v42 = vpop.permute.xlu1 %451 }
 0x35d   :  { %340 = vadd.xlane.f32.xlu0 %v339_v39  ;;  %v457_v49 = vsel %vm229_vm2, %v452_v42, 0 }
 0x35f   :  { %v6729_v40 = vpop.eup %6728 }
 0x360   :  { %v342_v41 = vsel %vm229_vm2, %v6729_v40, 0.0 }
 0x361   :  { %343 = vadd.xlane.f32.xlu1 %v342_v41 }
 0x372   :  { %501 = vrot.lane.b32.xlu1 %v7293_v11, %s7057_s26 }
 0x373   :  { %449 = vrot.lane.b32.xlu0 %v7289_v7, %s7058_s24 }
 0x376   :  { %499 = vrot.lane.b32.xlu1 %v7293_v11, %s7058_s24 }
 0x3ea   :  { %v341_v43 = vpop.xlane.xlu0 %340 }
 0x3eb   :  { %6730 = vrcp.f32 %v341_v43 }
 0x3ee   :  { %v344_v44 = vpop.xlane.xlu1 %343  ;;  %v450_v54 = vpop.permute.xlu0 %449 }
 0x3ef   :  { %6732 = vrcp.f32 %v344_v44 }
 0x3f2   :  { %v502_v51 = vpop.permute.xlu1 %501 }
 0x3f3   :  { %v507_v53 = vsel %vm229_vm2, %v502_v51, 0 }
 0x3f5   :  { %v6731_v45 = vpop.eup %6730 }
 0x3f6   :  { %v347_v46 = vmul.f32 %v6731_v45, %v6727_v38  ;;  %v500_v55 = vpop.permute.xlu1 %499  ;;  %v676_v38 = vsel %vm356_vm3, %v220_v35, 0 }
 0x3f8   :  { %v349_v47 = vpack.c.bf16 %v347_v46, %v347_v46 }
 0x3f9   :  { %v6733_v48 = vpop.eup %6732 }
 0x3fa   :  { %6098 = vmatmul.mubr.msk.bf16.vlgmr.msra.gmra.mrb[8].mxu1 %vm229_vm2, %v349_v47  ;;  %v348_v50 = vmul.f32 %v6733_v48, %v6729_v40  ;;  %v219_v40 = vld [vmem:[%s8370_s30] sm:$0xf] }
 0x3fb   :  { %6108 = vmatpush3.bf16.xpose.msra.mxu1 %v457_v49  ;;  %6109 = vmatprep.mubr.msk.bf16.mxu1 %vm7055_vm0, %v7054_v0  ;;  %v723_v43 = vsel %vm356_vm3, %v219_v40, 0 }
 0x3fc   :  { %v350_v52 = vpack.c.bf16 %v348_v50, %v348_v50  ;;  %6119 = vmatprep.subr.bf16.mxu1 %v7054_v0 }
 0x3fe   :  { %6104 = vmatmul.mubr.msk.bf16.vlgmr.msra.gmra.mrb[4].mxu0 %vm229_vm2, %v350_v52 }
 0x3ff   :  { %6114 = vmatpush3.bf16.xpose.msra.mxu0 %v507_v53  ;;  %6115 = vmatprep.mubr.msk.bf16.mxu0 %vm7055_vm0, %v7054_v0 }
 0x400   :  { %6125 = vmatprep.subr.bf16.mxu0 %v7054_v0 }
 0x402   :  { %6110 = vmatmul.mubr.msk.bf16.vlgmr.msra.gmra.mrb[12].mxu1 %vm229_vm2, %v450_v54 }
 0x403   :  { %6121 = vmatprep.mubr.msk.bf16.mxu1 %vm7055_vm0, %v7054_v0 }
 0x406   :  { %6116 = vmatmul.mubr.msk.bf16.vlgmr.msra.gmra.mrb[8].mxu0 %vm229_vm2, %v500_v55 }
 0x407   :  { %6127 = vmatprep.mubr.msk.bf16.mxu0 %vm7055_vm0, %v7054_v0 }
 0x4cd   :  { %v7345_v56 = vpop.f32.mrb[8].mxu1 }
 0x4ce   :  { %v6099_v57 = vpop.f32.mrb[9].mxu1 }
 0x4cf   :  { %v397_v58 = vpop.f32.mrb[10].mxu1 }
 0x4d0   :  { %v6100_v59 = vpop.f32.mrb[11].mxu1 }
 0x4d1   :  { %v7347_v60 = vpop.f32.mrb[4].mxu0 }
 0x4d2   :  { %v448_v61 = vpack.c.bf16 %v7347_v60, %v7345_v56  ;;  %v6105_v62 = vpop.f32.mrb[5].mxu0 }
 0x4d3   :  { %v445_v63 = vpop.f32.mrb[6].mxu0 }
 0x4d4   :  { %v6106_v1 = vpop.f32.mrb[7].mxu0 }
 0x4d5   :  { %v493_v2 = vpop.f32.mrb[12].mxu1 }
 0x4d6   :  { %v549_v5 = vmul.f32 0.35355338, %v493_v2  ;;  %v6111_v6 = vpop.f32.mrb[13].mxu1 }
 0x4d7   :  { %v496_v8 = vpop.f32.mrb[14].mxu1 }
 0x4d8   :  { %v6112_v9 = vpop.f32.mrb[15].mxu1  ;;  %v551_v10 = vsel %vm229_vm2, %v549_v5, -inf }
 0x4d9   :  { %v543_v12 = vpop.f32.mrb[8].mxu0  ;;  %552 = vmax.xlane.f32.xlu1 %v551_v10 }
 0x4da   :  { %v550_v13 = vmul.f32 0.35355338, %v543_v12  ;;  %v6117_v14 = vpop.f32.mrb[9].mxu0 }
 0x4db   :  { %v546_v15 = vpop.f32.mrb[10].mxu0 }
 0x4dc   :  { %v6118_v16 = vpop.f32.mrb[11].mxu0  ;;  %v554_v17 = vsel %vm229_vm2, %v550_v13, -inf }
 0x4dd   :  { %555 = vmax.xlane.f32.xlu0 %v554_v17 }
 0x4f3   :  { %623 = vrot.lane.b32.xlu0 %v7293_v11, %s7059_s20 }
 0x4f7   :  { %766 = vrot.lane.b32.xlu0 %v7289_v7, %s7060_s3 }
 0x566   :  { %v553_v18 = vpop.xlane.xlu1 %552 }
 0x567   :  { %v557_v19 = vsub.f32 %v549_v5, %v553_v18 }
 0x569   :  { %v559_v20 = vmul.f32 1.442695, %v557_v19 }
 0x56a   :  { %v556_v21 = vpop.xlane.xlu0 %555 }
 0x56b   :  { %6734 = vpow2.f32 %v559_v20  ;;  %v558_v22 = vsub.f32 %v550_v13, %v556_v21 }
 0x56d   :  { %v561_v23 = vmul.f32 1.442695, %v558_v22 }
 0x56e   :  { %v624_v24 = vpop.permute.xlu0 %623 }
 0x56f   :  { %6736 = vpow2.f32 %v561_v23  ;;  %v629_v25 = vsel %vm356_vm3, %v624_v24, 0 }
 0x570   :  { %6126 = vmatpush3.bf16.msra.mxu0 %v629_v25 }
 0x571   :  { %6137 = vmatprep.subr.bf16.mxu0 %v7054_v0 }
 0x572   :  { %v767_v60 = vpop.permute.xlu0 %766 }
 0x575   :  { %v6735_v26 = vpop.eup %6734 }
 0x576   :  { %v563_v27 = vsel %vm229_vm2, %v6735_v26, 0.0 }
 0x577   :  { %564 = vadd.xlane.f32.xlu1 %v563_v27 }
 0x579   :  { %v6737_v28 = vpop.eup %6736 }
 0x57a   :  { %v566_v29 = vsel %vm229_vm2, %v6737_v28, 0.0 }
 0x57b   :  { %567 = vadd.xlane.f32.xlu1 %v566_v29 }
 0x58c   :  { %575 = vrot.lane.b32.xlu1 %v7289_v7, %s7059_s20 }
 0x590   :  { %768 = vrot.lane.b32.xlu1 %v7289_v7, %s7061_s1 }
 0x594   :  { %818 = vrot.lane.b32.xlu1 %v7293_v11, %s7061_s1 }
 0x598   :  { %816 = vrot.lane.b32.xlu1 %v7293_v11, %s7060_s3 }
 0x604   :  { %v565_v30 = vpop.xlane.xlu1 %564 }
 0x605   :  { %6738 = vrcp.f32 %v565_v30 }
 0x608   :  { %v568_v31 = vpop.xlane.xlu1 %567 }
 0x609   :  { %6740 = vrcp.f32 %v568_v31 }
 0x60c   :  { %v576_v32 = vpop.permute.xlu1 %575 }
 0x60d   :  { %v581_v33 = vsel %vm356_vm3, %v576_v32, 0 }
 0x60e   :  { %6120 = vmatpush3.bf16.msra.mxu1 %v581_v33 }
 0x60f   :  { %v6739_v34 = vpop.eup %6738  ;;  %6131 = vmatprep.subr.bf16.mxu1 %v7054_v0 }
 0x610   :  { %v571_v36 = vmul.f32 %v6739_v34, %v6735_v26  ;;  %v769_v44 = vpop.permute.xlu1 %768 }
 0x611   :  { %v774_v56 = vsel %vm229_vm2, %v769_v44, 0 }
 0x612   :  { %v573_v37 = vpack.c.bf16 %v571_v36, %v571_v36 }
 0x613   :  { %v6741_v39 = vpop.eup %6740 }
 0x614   :  { %6122 = vmatmul.mubr.msk.bf16.vlgmr.msra.gmra.mrb[16].mxu1 %vm229_vm2, %v573_v37  ;;  %v572_v41 = vmul.f32 %v6741_v39, %v6737_v28  ;;  %v819_v45 = vpop.permute.xlu1 %818 }
 0x615   :  { %6132 = vmatpush3.bf16.msra.mxu1 %v676_v38  ;;  %6133 = vmatprep.mubr.msk.bf16.mxu1 %vm7055_vm0, %v7054_v0  ;;  %v824_v46 = vsel %vm229_vm2, %v819_v45, 0 }
 0x616   :  { %v574_v42 = vpack.c.bf16 %v572_v41, %v572_v41  ;;  %6143 = vmatprep.subr.bf16.mxu1 %v7054_v0 }
 0x618   :  { %6128 = vmatmul.mubr.msk.bf16.vlgmr.msra.gmra.mrb[12].mxu0 %vm229_vm2, %v574_v42  ;;  %v817_v47 = vpop.permute.xlu1 %816 }
 0x619   :  { %6138 = vmatpush3.bf16.msra.mxu0 %v723_v43  ;;  %6139 = vmatprep.mubr.msk.bf16.mxu0 %vm7055_vm0, %v7054_v0 }
 0x61a   :  { %6149 = vmatprep.subr.bf16.mxu0 %v7054_v0 }
 0x620   :  { %6140 = vmatmul.mubr.msk.bf16.vlgmr.msra.gmra.mrb[16].mxu0 %vm229_vm2, %v448_v61 }
 0x621   :  { %6151 = vmatprep.mubr.msk.bf16.mxu0 %vm7055_vm0, %v7054_v0 }
 0x622   :  { %6150 = vmatpush3.bf16.xpose.msra.mxu0 %v824_v46 }
 0x623   :  { %6161 = vmatprep.subr.bf16.mxu0 %v7054_v0 }
 0x629   :  { %6152 = vmatmul.mubr.msk.bf16.vlgmr.msra.gmra.mrb[20].mxu0 %vm229_vm2, %v817_v47  ;;  %v221_v47 = vld [vmem:[%s8370_s30 + $0x8] sm:$0xf] }
 0x62a   :  { %6163 = vmatprep.mubr.msk.bf16.mxu0 %vm7055_vm0, %v7054_v0 }
 0x6e7   :  { %v617_v48 = vpop.f32.mrb[16].mxu1 }
 0x6e8   :  { %v6123_v49 = vpop.f32.mrb[17].mxu1 }
 0x6e9   :  { %v620_v50 = vpop.f32.mrb[18].mxu1 }
 0x6ea   :  { %v6124_v51 = vpop.f32.mrb[19].mxu1 }
 0x6eb   :  { %v665_v52 = vpop.f32.mrb[12].mxu0 }
 0x6ec   :  { %v671_v53 = vpack.c.bf16 %v665_v52, %v617_v48  ;;  %v6129_v54 = vpop.f32.mrb[13].mxu0  ;;  %v993_v48 = vsel %vm356_vm3, %v221_v47, 0 }
 0x6ed   :  { %v668_v55 = vpop.f32.mrb[14].mxu0 }
 0x6ee   :  { %v6130_v57 = vpop.f32.mrb[15].mxu0  ;;  %6134 = vmatmul.mubr.msk.bf16.vlgmr.msra.gmra.mrb[20].mxu1 %vm229_vm2, %v671_v53 }
 0x6ef   :  { %6144 = vmatpush3.bf16.xpose.msra.mxu1 %v774_v56  ;;  %6145 = vmatprep.mubr.msk.bf16.mxu1 %vm7055_vm0, %v7054_v0 }
 0x6f0   :  { %6155 = vmatprep.subr.bf16.mxu1 %v7054_v0 }
 0x6f3   :  { %v759_v58 = vpop.f32.mrb[16].mxu0 }
 0x6f4   :  { %v6141_v59 = vpop.f32.mrb[17].mxu0 }
 0x6f5   :  { %v762_v61 = vpop.f32.mrb[18].mxu0 }
 0x6f6   :  { %v6142_v62 = vpop.f32.mrb[19].mxu0  ;;  %6146 = vmatmul.mubr.msk.bf16.vlgmr.msra.gmra.mrb[24].mxu1 %vm229_vm2, %v767_v60 }
 0x6f7   :  { %6157 = vmatprep.mubr.msk.bf16.mxu1 %vm7055_vm0, %v7054_v0 }
 0x6fc   :  { %v860_v63 = vpop.f32.mrb[20].mxu0 }
 0x6fd   :  { %v867_v1 = vmul.f32 0.35355338, %v860_v63  ;;  %v6153_v2 = vpop.f32.mrb[21].mxu0 }
 0x6fe   :  { %v863_v5 = vpop.f32.mrb[22].mxu0 }
 0x6ff   :  { %v6154_v6 = vpop.f32.mrb[23].mxu0  ;;  %v871_v8 = vsel %vm229_vm2, %v867_v1, -inf }
 0x700   :  { %872 = vmax.xlane.f32.xlu1 %v871_v8 }
 0x711   :  { %892 = vrot.lane.b32.xlu1 %v7289_v7, %s7062_s13 }
 0x715   :  { %1040 = vrot.lane.b32.xlu1 %v7289_v7, %s7063_s21 }
 0x719   :  { %1090 = vrot.lane.b32.xlu1 %v7293_v11, %s7063_s21 }
 0x71d   :  { %1088 = vrot.lane.b32.xlu1 %v7293_v11, %s8354_s14 }
 0x78d   :  { %v873_v9 = vpop.xlane.xlu1 %872 }
 0x78e   :  { %v875_v13 = vsub.f32 %v867_v1, %v873_v9 }
 0x790   :  { %v878_v14 = vmul.f32 1.442695, %v875_v13 }
 0x791   :  { %v893_v10 = vpop.permute.xlu1 %892 }
 0x792   :  { %v898_v12 = vsel %vm356_vm3, %v893_v10, 0  ;;  %6742 = vpow2.f32 %v878_v14 }
 0x793   :  { %6156 = vmatpush3.bf16.msra.mxu1 %v898_v12 }
 0x794   :  { %6167 = vmatprep.subr.bf16.mxu1 %v7054_v0 }
 0x795   :  { %v1041_v42 = vpop.permute.xlu1 %1040 }
 0x796   :  { %v1046_v44 = vsel %vm229_vm2, %v1041_v42, 0 }
 0x799   :  { %v1091_v53 = vpop.permute.xlu1 %1090 }
 0x79c   :  { %v6743_v27 = vpop.eup %6742 }
 0x79d   :  { %v883_v28 = vsel %vm229_vm2, %v6743_v27, 0.0  ;;  %v1089_v5 = vpop.permute.xlu1 %1088 }
 0x7c1   :  { %v712_v15 = vpop.f32.mrb[20].mxu1 }
 0x7c2   :  { %v7417_v16 = vadd.f32 %v759_v58, %v712_v15  ;;  %v6135_v17 = vpop.f32.mrb[21].mxu1  ;;  %v1096_v58 = vsel %vm229_vm2, %v1091_v53, 0 }
 0x7c3   :  { %v715_v18 = vpop.f32.mrb[22].mxu1 }
 0x7c4   :  { %v7419_v19 = vadd.f32 %v762_v61, %v715_v18  ;;  %v6136_v20 = vpop.f32.mrb[23].mxu1 }
 0x7c9   :  { %v810_v21 = vpop.f32.mrb[24].mxu1 }
 0x7ca   :  { %v866_v22 = vmul.f32 0.35355338, %v810_v21  ;;  %v6147_v23 = vpop.f32.mrb[25].mxu1 }
 0x7cb   :  { %v813_v24 = vpop.f32.mrb[26].mxu1 }
 0x7cc   :  { %v6148_v25 = vpop.f32.mrb[27].mxu1  ;;  %v868_v26 = vsel %vm229_vm2, %v866_v22, -inf }
 0x7cd   :  { %869 = vmax.xlane.f32.xlu0 %v868_v26 }
 0x7d1   :  { %884 = vadd.xlane.f32.xlu0 %v883_v28 }
 0x85a   :  { %v870_v29 = vpop.xlane.xlu0 %869 }
 0x85b   :  { %v874_v30 = vsub.f32 %v866_v22, %v870_v29 }
 0x85d   :  { %v876_v31 = vmul.f32 1.442695, %v874_v30 }
 0x85e   :  { %v885_v34 = vpop.xlane.xlu0 %884 }
 0x85f   :  { %6744 = vpow2.f32 %v876_v31 }
 0x860   :  { %6746 = vrcp.f32 %v885_v34 }
 0x869   :  { %v6745_v32 = vpop.eup %6744 }
 0x86a   :  { %v880_v33 = vsel %vm229_vm2, %v6745_v32, 0.0  ;;  %v6747_v35 = vpop.eup %6746 }
 0x86b   :  { %881 = vadd.xlane.f32.xlu0 %v880_v33  ;;  %v889_v37 = vmul.f32 %v6747_v35, %v6743_v27  ;;  %v222_v35 = vld [vmem:[%s8370_s30 + $0xc] sm:$0xf] }
 0x86d   :  { %v891_v40 = vpack.c.bf16 %v889_v37, %v889_v37 }
 0x881   :  { %940 = vrot.lane.b32.xlu0 %v7293_v11, %s7062_s13 }
 0x885   :  { %1038 = vrot.lane.b32.xlu0 %v7289_v7, %s8354_s14 }
 0x8f8   :  { %v882_v36 = vpop.xlane.xlu0 %881 }
 0x8f9   :  { %6748 = vrcp.f32 %v882_v36  ;;  %v1265_v36 = vsel %vm356_vm3, %v222_v35, 0  ;;  %v5708_v35 = vld [vmem:[%s8323_s6] ss:$0 sm:$0xff] }
 0x8fc   :  { %v941_v38 = vpop.permute.xlu0 %940 }
 0x8fd   :  { %v946_v39 = vsel %vm356_vm3, %v941_v38, 0 }
 0x8fe   :  { %6162 = vmatpush3.bf16.msra.mxu0 %v946_v39 }
 0x8ff   :  { %6173 = vmatprep.subr.bf16.mxu0 %v7054_v0 }
 0x900   :  { %v1039_v46 = vpop.permute.xlu0 %1038 }
 0x901   :  { %6164 = vmatmul.mubr.msk.bf16.vlgmr.msra.gmra.mrb[24].mxu0 %vm229_vm2, %v891_v40 }
 0x902   :  { %6175 = vmatprep.mubr.msk.bf16.mxu0 %vm7055_vm0, %v7054_v0 }
 0x903   :  { %v6749_v41 = vpop.eup %6748 }
 0x904   :  { %v888_v43 = vmul.f32 %v6749_v41, %v6745_v32 }
 0x906   :  { %v890_v45 = vpack.c.bf16 %v888_v43, %v888_v43 }
 0x907   :  { %6174 = vmatpush3.bf16.xpose.msra.mxu0 %v1046_v44 }
 0x908   :  { %6158 = vmatmul.mubr.msk.bf16.vlgmr.msra.gmra.mrb[28].mxu1 %vm229_vm2, %v890_v45  ;;  %6185 = vmatprep.subr.bf16.mxu0 %v7054_v0 }
 0x909   :  { %6169 = vmatprep.mubr.msk.bf16.mxu1 %vm7055_vm0, %v7054_v0  ;;  %6168 = vmatpush3.bf16.msra.mxu1 %v993_v48 }
 0x90a   :  { %6179 = vmatprep.subr.bf16.mxu1 %v7054_v0 }
 0x90e   :  { %6176 = vmatmul.mubr.msk.bf16.vlgmr.msra.gmra.mrb[28].mxu0 %vm229_vm2, %v1039_v46 }
 0x90f   :  { %6187 = vmatprep.mubr.msk.bf16.mxu0 %vm7055_vm0, %v7054_v0 }
 0x9d4   :  { %v982_v49 = vpop.f32.mrb[24].mxu0 }
 0x9d5   :  { %v6165_v50 = vpop.f32.mrb[25].mxu0 }
 0x9d6   :  { %v985_v51 = vpop.f32.mrb[26].mxu0 }
 0x9d7   :  { %v6166_v52 = vpop.f32.mrb[27].mxu0  ;;  %v5706_v51 = vld [vmem:[%s8371_s22] ss:$0 sm:$0xff] }
 0x9db   :  { %v934_v54 = vpop.f32.mrb[28].mxu1 }
 0x9dc   :  { %v988_v55 = vpack.c.bf16 %v982_v49, %v934_v54  ;;  %v6159_v56 = vpop.f32.mrb[29].mxu1 }
 0x9dd   :  { %v937_v57 = vpop.f32.mrb[30].mxu1 }
 0x9de   :  { %v6160_v59 = vpop.f32.mrb[31].mxu1  ;;  %6170 = vmatmul.mubr.msk.bf16.vlgmr.msra.gmra.mrb[32].mxu1 %vm229_vm2, %v988_v55 }
 0x9df   :  { %6180 = vmatpush3.bf16.xpose.msra.mxu1 %v1096_v58  ;;  %6181 = vmatprep.mubr.msk.bf16.mxu1 %vm7055_vm0, %v7054_v0 }
 0x9e0   :  { %6191 = vmatprep.subr.bf16.mxu1 %v7054_v0 }
 0x9e1   :  { %v1082_v60 = vpop.f32.mrb[28].mxu0 }
 0x9e2   :  { %v1138_v61 = vmul.f32 0.35355338, %v1082_v60  ;;  %v6177_v62 = vpop.f32.mrb[29].mxu0 }
 0x9e3   :  { %v1085_v63 = vpop.f32.mrb[30].mxu0 }
 0x9e4   :  { %v6178_v1 = vpop.f32.mrb[31].mxu0  ;;  %v1140_v2 = vsel %vm229_vm2, %v1138_v61, -inf }
 0x9e5   :  { %1141 = vmax.xlane.f32.xlu0 %v1140_v2 }
 0x9e6   :  { %6182 = vmatmul.mubr.msk.bf16.vlgmr.msra.gmra.mrb[36].mxu1 %vm229_vm2, %v1089_v5 }
 0x9e7   :  { %6193 = vmatprep.mubr.msk.bf16.mxu1 %vm7055_vm0, %v7054_v0 }
 0xa72   :  { %v1142_v6 = vpop.xlane.xlu0 %1141 }
 0xa73   :  { %v1146_v8 = vsub.f32 %v1138_v61, %v1142_v6 }
 0xa75   :  { %v1148_v9 = vmul.f32 1.442695, %v1146_v8  ;;  %v154_v8 = vld [vmem:[#allocation5] sm:$0xff] }
 0xa77   :  { %6750 = vpow2.f32 %v1148_v9  ;;  %v155_v9 = vld [vmem:[#allocation5 + $0x8] sm:$0xff] }
 0xa81   :  { %v6751_v10 = vpop.eup %6750 }
 0xa82   :  { %v1152_v12 = vsel %vm229_vm2, %v6751_v10, 0.0 }
 0xa83   :  { %1153 = vadd.xlane.f32.xlu0 %v1152_v12  ;;  %v6696_v12 = vld [vmem:[%s8324_s7] sm:$0xff]  }
 0xab1   :  { %v1029_v13 = vpop.f32.mrb[32].mxu1 }
 0xab2   :  { %v1036_v14 = vadd.f32 %v1029_v13, %v7417_v16  ;;  %v6171_v15 = vpop.f32.mrb[33].mxu1  ;;  %v6697_v13 = vld [vmem:[%s8324_s7 + $0x8] sm:$0xff]  }
 0xab3   :  { %v1032_v17 = vpop.f32.mrb[34].mxu1 }
 0xab4   :  { %v1037_v18 = vadd.f32 %v1032_v17, %v7419_v19  ;;  %v6172_v20 = vpop.f32.mrb[35].mxu1 }
 0xab9   :  { %v1132_v21 = vpop.f32.mrb[36].mxu1 }
 0xaba   :  { %v1139_v22 = vmul.f32 0.35355338, %v1132_v21  ;;  %v6183_v23 = vpop.f32.mrb[37].mxu1 }
 0xabb   :  { %v1135_v24 = vpop.f32.mrb[38].mxu1 }
 0xabc   :  { %v6184_v25 = vpop.f32.mrb[39].mxu1  ;;  %v1143_v26 = vsel %vm229_vm2, %v1139_v22, -inf }
 0xabd   :  { %1144 = vmax.xlane.f32.xlu1 %v1143_v26 }
 0xace   :  { %1164 = vrot.lane.b32.xlu1 %v7289_v7, %s8352_s4 }
 0xb10   :  { %v1154_v27 = vpop.xlane.xlu0 %1153 }
 0xb11   :  { %6752 = vrcp.f32 %v1154_v27 }
 0xb1b   :  { %v6753_v16 = vpop.eup %6752 }
 0xb1c   :  { %v1160_v19 = vmul.f32 %v6753_v16, %v6751_v10  ;;  %v7498_v10 = vpack.c.bf16 %v155_v9, %v154_v8 }
 0xb1e   :  { %v1162_v33 = vpack.c.bf16 %v1160_v19, %v1160_v19  ;;  %v5707_v19 = vld [vmem:[#allocation7] ss:$0 sm:$0xff] }
 0xb4a   :  { %v1145_v28 = vpop.xlane.xlu1 %1144 }
 0xb4b   :  { %v1147_v29 = vsub.f32 %v1139_v22, %v1145_v28 }
 0xb4d   :  { %v1150_v30 = vmul.f32 1.442695, %v1147_v29 }
 0xb4e   :  { %v1165_v31 = vpop.permute.xlu1 %1164 }
 0xb4f   :  { %6754 = vpow2.f32 %v1150_v30  ;;  %v1170_v32 = vsel %vm356_vm3, %v1165_v31, 0 }
 0xb50   :  { %6186 = vmatpush3.bf16.msra.mxu0 %v1170_v32 }
 0xb51   :  { %6197 = vmatprep.subr.bf16.mxu0 %v7054_v0 }
 0xb53   :  { %6188 = vmatmul.mubr.msk.bf16.vlgmr.msra.gmra.mrb[32].mxu0 %vm229_vm2, %v1162_v33 }
 0xb54   :  { %6199 = vmatprep.mubr.msk.bf16.mxu0 %vm7055_vm0, %v7054_v0  ;;  %6198 = vmatpush3.bf16.msra.mxu0 %v1265_v36 }
 0xb55   :  { %6211 = vmatprep.subr.bf16.mxu0 %v7054_v0 }
 0xb59   :  { %v6755_v7 = vpop.eup %6754 }
 0xb5a   :  { %v1155_v34 = vsel %vm229_vm2, %v6755_v7, 0.0 }
 0xb5b   :  { %1156 = vadd.xlane.f32.xlu0 %v1155_v34 }
 0xb71   :  { %1212 = vrot.lane.b32.xlu0 %v7293_v11, %s8352_s4  ;;  %s8372_s4 = smov 104  }
 0xbe8   :  { %v1157_v37 = vpop.xlane.xlu0 %1156 }
 0xbe9   :  { %6756 = vrcp.f32 %v1157_v37 }
 0xbec   :  { %v1213_v38 = vpop.permute.xlu0 %1212 }
 0xbed   :  { %v1218_v39 = vsel %vm356_vm3, %v1213_v38, 0 }
 0xbee   :  { %6192 = vmatpush3.bf16.msra.mxu1 %v1218_v39 }
 0xbef   :  { %6203 = vmatprep.subr.bf16.mxu1 %v7054_v0 }
 0xbf3   :  { %v6757_v40 = vpop.eup %6756 }
 0xbf4   :  { %v1161_v41 = vmul.f32 %v6757_v40, %v6755_v7 }
 0xbf6   :  { %v1163_v11 = vpack.c.bf16 %v1161_v41, %v1161_v41 }
 0xbf8   :  { %6194 = vmatmul.mubr.msk.bf16.vlgmr.msra.gmra.mrb[40].mxu1 %vm229_vm2, %v1163_v11 }
 0xbf9   :  { %6207 = vmatprep.mubr.msk.bf16.mxu1 %vm7055_vm0, %v7054_v0  ;;  %6204 = vmatpush3.bf16.msra.mxu1 %v6696_v12 }
 0xbfa   :  { %6205 = vmatprep.subr.bf16.mxu1 %v7054_v0 }
 0xbfd   :  { %6206 = vmatpush3.bf16.msra.mxu1 %v6697_v13 }
 0xbfe   :  { %6219 = vmatprep.subr.bf16.mxu1 %v7054_v0 }
 0xc26   :  { %v1206_v42 = vpop.f32.mrb[32].mxu0 }
 0xc27   :  { %v6189_v43 = vpop.f32.mrb[33].mxu0 }
 0xc28   :  { %v1209_v44 = vpop.f32.mrb[34].mxu0 }
 0xc29   :  { %v6190_v45 = vpop.f32.mrb[35].mxu0 }
 0xccb   :  { %v1254_v46 = vpop.f32.mrb[40].mxu1 }
 0xccc   :  { %v1260_v47 = vpack.c.bf16 %v1254_v46, %v1206_v42  ;;  %v6195_v48 = vpop.f32.mrb[41].mxu1 }
 0xccd   :  { %v1257_v49 = vpop.f32.mrb[42].mxu1 }
 0xcce   :  { %v6196_v50 = vpop.f32.mrb[43].mxu1  ;;  %6200 = vmatmul.mubr.msk.bf16.vlgmr.msra.gmra.mrb[36].mxu0 %vm229_vm2, %v1260_v47 }
 0xccf   :  { %6215 = vmatprep.mubr.msk.bf16.mxu0 %vm7055_vm0, %v7054_v0 }
 0xda1   :  { %v1301_v52 = vpop.f32.mrb[36].mxu0 }
 0xda2   :  { %v1308_v53 = vadd.f32 %v1301_v52, %v1036_v14  ;;  %v6201_v54 = vpop.f32.mrb[37].mxu0 }
 0xda3   :  { %v1304_v55 = vpop.f32.mrb[38].mxu0 }
 0xda4   :  { %v1316_v56 = vadd.f32 %v5706_v51, %v1308_v53  ;;  %v1309_v57 = vadd.f32 %v1304_v55, %v1037_v18  ;;  %v6202_v58 = vpop.f32.mrb[39].mxu0 }
 0xda6   :  { %v1318_v59 = vadd.f32 %v1316_v56, %v7278_v3  ;;  %v1317_v60 = vadd.f32 %v5706_v51, %v1309_v57  ;;  %v6694_v3 = vld [vmem:[%s8325_s8] sm:$0xff]  }
 0xda7   :  { %6212 = vmatpush3.bf16.msra.mxu0 %v6694_v3 }
 0xda8   :  { %v1319_v61 = vadd.f32 %v1317_v60, %v7280_v4  ;;  %v1322_v62 = vsel %vm174_vm1, %v1318_v59, 0.0  ;;  %v1331_v63 = vmul.f32 %v1318_v59, %v1318_v59  ;;  %6213 = vmatprep.subr.bf16.mxu0 %v7054_v0  ;;  %v6695_v4 = vld [vmem:[%s8325_s8 + $0x8] sm:$0xff]  }
 0xda9   :  { %1323 = vadd.xlane.f32.xlu1 %v1322_v62 }
 0xdaa   :  { %v1325_v1 = vsel %vm174_vm1, %v1319_v61, 0.0  ;;  %v1332_v2 = vmul.f32 %v1319_v61, %v1319_v61  ;;  %v1333_v5 = vsel %vm174_vm1, %v1331_v63, 0.0 }
 0xdab   :  { %1326 = vadd.xlane.f32.xlu0 %v1325_v1  ;;  %6214 = vmatpush3.bf16.msra.mxu0 %v6695_v4 }
 0xdac   :  { %v1336_v6 = vsel %vm174_vm1, %v1332_v2, 0.0  ;;  %6225 = vmatprep.subr.bf16.mxu0 %v7054_v0 }
 0xdad   :  { %1334 = vadd.xlane.f32.xlu1 %v1333_v5 }
 0xdae   :  { %6216 = vmatmul.mubr.msk.bf16.vlgmr.msra.gmra.mrb[40].mxu0 %vm174_vm1, %v7498_v10 }
 0xdaf   :  { %1337 = vadd.xlane.f32.xlu0 %v1336_v6  ;;  %6227 = vmatprep.mubr.msk.bf16.mxu0 %vm7055_vm0, %v7054_v0 }
 0xe36   :  { %v1324_v14 = vpop.xlane.xlu1 %1323 }
 0xe37   :  { %v1329_v15 = vmul.f32 0.03125, %v1324_v14 }
 0xe38   :  { %v1327_v17 = vpop.xlane.xlu0 %1326 }
 0xe39   :  { %v1330_v18 = vmul.f32 0.03125, %v1327_v17  ;;  %v1341_v21 = vmul.f32 %v1329_v15, %v1329_v15  ;;  %v1345_v29 = vsub.f32 %v1318_v59, %v1329_v15 }
 0xe3a   :  { %v1335_v20 = vpop.xlane.xlu1 %1334 }
 0xe3b   :  { %v1339_v22 = vmul.f32 0.03125, %v1335_v20  ;;  %v1342_v24 = vmul.f32 %v1330_v18, %v1330_v18  ;;  %v1346_v31 = vsub.f32 %v1319_v61, %v1330_v18 }
 0xe3c   :  { %v1338_v23 = vpop.xlane.xlu0 %1337 }
 0xe3d   :  { %v1343_v25 = vsub.f32 %v1339_v22, %v1341_v21  ;;  %v1340_v26 = vmul.f32 0.03125, %v1338_v23 }
 0xe3f   :  { %v1347_v27 = vadd.f32 1e-05, %v1343_v25  ;;  %v1344_v16 = vsub.f32 %v1340_v26, %v1342_v24 }
 0xe41   :  { %6758 = vrsqrt.f32 %v1347_v27  ;;  %v1348_v28 = vadd.f32 1e-05, %v1344_v16 }
 0xe43   :  { %6760 = vrsqrt.f32 %v1348_v28 }
 0xe4b   :  { %v6759_v30 = vpop.eup %6758 }
 0xe4c   :  { %v1351_v32 = vmul.f32 %v6759_v30, %v1345_v29 }
 0xe4d   :  { %v6761_v33 = vpop.eup %6760 }
 0xe4e   :  { %v1352_v7 = vmul.f32 %v6761_v33, %v1346_v31  ;;  %v1359_v34 = vmul.f32 %v5707_v19, %v1351_v32 }
 0xe50   :  { %v1360_v36 = vmul.f32 %v5707_v19, %v1352_v7  ;;  %v7516_v37 = vadd.f32 %v5708_v35, %v1359_v34 }
 0xe52   :  { %v7518_v38 = vadd.f32 %v5708_v35, %v1360_v36 }
 0xe54   :  { %v1369_v39 = vpack.c.bf16 %v7518_v38, %v7516_v37 }
 0xe56   :  { %6208 = vmatmul.mubr.msk.bf16.vlgmr.msra.gmra.mrb[44].mxu1 %vm174_vm1, %v1369_v39 }
 0xe57   :  { %6221 = vmatprep.mubr.msk.bf16.mxu1 %vm7055_vm0, %v7054_v0 }
 0xe81   :  { %v1483_v40 = vpop.f32.mrb[40].mxu0 }
 0xe82   :  { %v7525_v41 = vpack.c.bf16 %v1483_v40, %v1483_v40  ;;  %v6217_v11 = vpop.f32.mrb[41].mxu0 }
 0xe83   :  { %v1486_v42 = vpop.f32.mrb[42].mxu0 }
 0xe84   :  { %v7527_v43 = vpack.c.bf16 %v1486_v42, %v1486_v42  ;;  %v6218_v44 = vpop.f32.mrb[43].mxu0  ;;  %v1503_v45 = vsel %vm229_vm2, %v7525_v41, 0 }
 0xe85   :  { %6220 = vmatpush3.bf16.xpose.msra.mxu1 %v1503_v45 }
 0xe86   :  { %v1549_v46 = vsel %vm229_vm2, %v7527_v43, 0  ;;  %6231 = vmatprep.subr.bf16.mxu1 %v7054_v0 }
 0xe87   :  { %6226 = vmatpush3.bf16.xpose.msra.mxu0 %v1549_v46 }
 0xe88   :  { %6237 = vmatprep.subr.bf16.mxu0 %v7054_v0 }
 0xf29   :  { %v1423_v47 = vpop.f32.mrb[44].mxu1 }
 0xf2a   :  { %v7535_v48 = vpack.c.bf16 %v1423_v47, %v1423_v47  ;;  %v6209_v49 = vpop.f32.mrb[45].mxu1 }
 0xf2b   :  { %v1426_v50 = vpop.f32.mrb[46].mxu1 }
 0xf2c   :  { %v7537_v51 = vpack.c.bf16 %v1426_v50, %v1426_v50  ;;  %v6210_v52 = vpop.f32.mrb[47].mxu1  ;;  %6222 = vmatmul.mubr.msk.bf16.vlgmr.msra.gmra.mrb[48].mxu1 %vm229_vm2, %v7535_v48 }
 0xf2d   :  { %6233 = vmatprep.mubr.msk.bf16.mxu1 %vm7055_vm0, %v7054_v0 }
 0xf2e   :  { %6228 = vmatmul.mubr.msk.bf16.vlgmr.msra.gmra.mrb[44].mxu0 %vm229_vm2, %v7537_v51 }
 0xf2f   :  { %6239 = vmatprep.mubr.msk.bf16.mxu0 %vm7055_vm0, %v7054_v0 }
 0xfff   :  { %v1539_v53 = vpop.f32.mrb[48].mxu1 }
0x1000   :  { %v1591_v54 = vmul.f32 0.35355338, %v1539_v53  ;;  %v6223_v55 = vpop.f32.mrb[49].mxu1 }
0x1001   :  { %v1542_v56 = vpop.f32.mrb[50].mxu1  ;;  %v1585_v57 = vpop.f32.mrb[44].mxu0 }
0x1002   :  { %v1592_v58 = vmul.f32 0.35355338, %v1585_v57  ;;  %v6224_v59 = vpop.f32.mrb[51].mxu1  ;;  %v6229_v60 = vpop.f32.mrb[45].mxu0  ;;  %v1593_v61 = vsel %vm229_vm2, %v1591_v54, -inf }
0x1003   :  { %v1588_v62 = vpop.f32.mrb[46].mxu0  ;;  %1594 = vmax.xlane.f32.xlu1 %v1593_v61 }
0x1004   :  { %v6230_v63 = vpop.f32.mrb[47].mxu0  ;;  %v1596_v1 = vsel %vm229_vm2, %v1592_v58, -inf }
0x1005   :  { %1597 = vmax.xlane.f32.xlu0 %v1596_v1 }
0x1014   :  { %1618 = vrot.lane.b32.xlu1 %v7525_v41, %s7056_s28 }
0x1090   :  { %v1595_v2 = vpop.xlane.xlu1 %1594 }
0x1091   :  { %v1599_v5 = vsub.f32 %v1591_v54, %v1595_v2 }
0x1092   :  { %v1598_v6 = vpop.xlane.xlu0 %1597 }
0x1093   :  { %v1601_v3 = vmul.f32 1.442695, %v1599_v5  ;;  %v1600_v4 = vsub.f32 %v1592_v58, %v1598_v6 }
0x1094   :  { %v1619_v8 = vpop.permute.xlu1 %1618 }
0x1095   :  { %6762 = vpow2.f32 %v1601_v3  ;;  %v1603_v9 = vmul.f32 1.442695, %v1600_v4  ;;  %v1624_v12 = vsel %vm356_vm3, %v1619_v8, 0 }
0x1096   :  { %6232 = vmatpush3.bf16.msra.mxu1 %v1624_v12 }
0x1097   :  { %6764 = vpow2.f32 %v1603_v9  ;;  %6243 = vmatprep.subr.bf16.mxu1 %v7054_v0 }
0x109f   :  { %v6763_v13 = vpop.eup %6762 }
0x10a0   :  { %v1605_v14 = vsel %vm229_vm2, %v6763_v13, 0.0 }
0x10a1   :  { %v6765_v15 = vpop.eup %6764  ;;  %1606 = vadd.xlane.f32.xlu1 %v1605_v14 }
0x10a2   :  { %v1608_v17 = vsel %vm229_vm2, %v6765_v15, 0.0 }
0x10a3   :  { %1609 = vadd.xlane.f32.xlu0 %v1608_v17 }
0x10b2   :  { %1719 = vrot.lane.b32.xlu1 %v7525_v41, %s7058_s24 }
0x10b6   :  { %1770 = vrot.lane.b32.xlu1 %v7527_v43, %s7058_s24 }
0x10b9   :  { %1667 = vrot.lane.b32.xlu0 %v7527_v43, %s7056_s28 }
0x10ba   :  { %1768 = vrot.lane.b32.xlu1 %v7537_v51, %s7058_s24 }
0x10bd   :  { %1717 = vrot.lane.b32.xlu0 %v7535_v48, %s7058_s24 }
0x112e   :  { %v1607_v18 = vpop.xlane.xlu1 %1606 }
0x112f   :  { %6766 = vrcp.f32 %v1607_v18 }
0x1130   :  { %v1610_v20 = vpop.xlane.xlu0 %1609 }
0x1131   :  { %6768 = vrcp.f32 %v1610_v20 }
0x1132   :  { %v1720_v23 = vpop.permute.xlu1 %1719 }
0x1133   :  { %v1725_v29 = vsel %vm229_vm2, %v1720_v23, 0 }
0x1134   :  { %v1668_v21 = vpop.permute.xlu0 %1667 }
0x1135   :  { %v1673_v22 = vsel %vm356_vm3, %v1668_v21, 0 }
0x1136   :  { %6238 = vmatpush3.bf16.msra.mxu0 %v1673_v22  ;;  %v1771_v28 = vpop.permute.xlu1 %1770  ;;  %v1490_v22 = vld [vmem:[%s8326_s9] sm:$0xf] }
0x1137   :  { %6249 = vmatprep.subr.bf16.mxu0 %v7054_v0  ;;  %v1776_v19 = vsel %vm229_vm2, %v1771_v28, 0 }
0x1138   :  { %v1718_v31 = vpop.permute.xlu0 %1717 }
0x1139   :  { %v6767_v24 = vpop.eup %6766 }
0x113a   :  { %v1613_v25 = vmul.f32 %v6767_v24, %v6763_v13  ;;  %v1769_v32 = vpop.permute.xlu1 %1768 }
0x113b   :  { %v6769_v26 = vpop.eup %6768 }
0x113c   :  { %v1615_v27 = vpack.c.bf16 %v1613_v25, %v1613_v25  ;;  %v1614_v16 = vmul.f32 %v6769_v26, %v6765_v15  ;;  %v1491_v15 = vld [vmem:[%s8326_s9 + $0x4] sm:$0xf]  ;;  %v1992_v25 = vsel %vm356_vm3, %v1490_v22, 0 }
0x113d   :  { %v1945_v20 = vsel %vm356_vm3, %v1491_v15, 0 }
0x113e   :  { %6234 = vmatmul.mubr.msk.bf16.vlgmr.msra.gmra.mrb[52].mxu1 %vm229_vm2, %v1615_v27  ;;  %v1616_v30 = vpack.c.bf16 %v1614_v16, %v1614_v16 }
0x113f   :  { %6244 = vmatpush3.bf16.xpose.msra.mxu1 %v1725_v29  ;;  %6245 = vmatprep.mubr.msk.bf16.mxu1 %vm7055_vm0, %v7054_v0 }
0x1140   :  { %6240 = vmatmul.mubr.msk.bf16.vlgmr.msra.gmra.mrb[48].mxu0 %vm229_vm2, %v1616_v30  ;;  %6255 = vmatprep.subr.bf16.mxu1 %v7054_v0 }
0x1141   :  { %6250 = vmatpush3.bf16.xpose.msra.mxu0 %v1776_v19  ;;  %6251 = vmatprep.mubr.msk.bf16.mxu0 %vm7055_vm0, %v7054_v0 }
0x1142   :  { %6261 = vmatprep.subr.bf16.mxu0 %v7054_v0 }
0x1146   :  { %6246 = vmatmul.mubr.msk.bf16.vlgmr.msra.gmra.mrb[56].mxu1 %vm229_vm2, %v1718_v31 }
0x1147   :  { %6257 = vmatprep.mubr.msk.bf16.mxu1 %vm7055_vm0, %v7054_v0 }
0x1148   :  { %6252 = vmatmul.mubr.msk.bf16.vlgmr.msra.gmra.mrb[52].mxu0 %vm229_vm2, %v1769_v32 }
0x1149   :  { %6263 = vmatprep.mubr.msk.bf16.mxu0 %vm7055_vm0, %v7054_v0 }
0x1211   :  { %v7583_v33 = vpop.f32.mrb[52].mxu1 }
0x1212   :  { %v6235_v7 = vpop.f32.mrb[53].mxu1 }
0x1213   :  { %v1663_v34 = vpop.f32.mrb[54].mxu1  ;;  %v7585_v35 = vpop.f32.mrb[48].mxu0 }
0x1214   :  { %v1715_v36 = vpack.c.bf16 %v7585_v35, %v7583_v33  ;;  %v6236_v39 = vpop.f32.mrb[55].mxu1  ;;  %v6241_v40 = vpop.f32.mrb[49].mxu0 }
0x1215   :  { %v1712_v11 = vpop.f32.mrb[50].mxu0 }
0x1216   :  { %v6242_v42 = vpop.f32.mrb[51].mxu0 }
0x1219   :  { %v1761_v44 = vpop.f32.mrb[56].mxu1 }
0x121a   :  { %v1818_v45 = vmul.f32 0.35355338, %v1761_v44  ;;  %v6247_v46 = vpop.f32.mrb[57].mxu1 }
0x121b   :  { %v1764_v47 = vpop.f32.mrb[58].mxu1  ;;  %v1812_v49 = vpop.f32.mrb[52].mxu0 }
0x121c   :  { %v1819_v50 = vmul.f32 0.35355338, %v1812_v49  ;;  %v6248_v52 = vpop.f32.mrb[59].mxu1  ;;  %v6253_v53 = vpop.f32.mrb[53].mxu0  ;;  %v1820_v54 = vsel %vm229_vm2, %v1818_v45, -inf }
0x121d   :  { %v1815_v55 = vpop.f32.mrb[54].mxu0  ;;  %1821 = vmax.xlane.f32.xlu0 %v1820_v54 }
0x121e   :  { %v6254_v56 = vpop.f32.mrb[55].mxu0  ;;  %v1823_v57 = vsel %vm229_vm2, %v1819_v50, -inf }
0x121f   :  { %1824 = vmax.xlane.f32.xlu1 %v1823_v57 }
0x1230   :  { %1844 = vrot.lane.b32.xlu1 %v7525_v41, %s7057_s26 }
0x1234   :  { %2037 = vrot.lane.b32.xlu1 %v7525_v41, %s7060_s3 }
0x1238   :  { %2087 = vrot.lane.b32.xlu1 %v7527_v43, %s7060_s3 }
0x123c   :  { %2085 = vrot.lane.b32.xlu1 %v7537_v51, %s7060_s3 }
0x12aa   :  { %v1822_v58 = vpop.xlane.xlu0 %1821 }
0x12ab   :  { %v1826_v59 = vsub.f32 %v1818_v45, %v1822_v58 }
0x12ac   :  { %v1825_v60 = vpop.xlane.xlu1 %1824 }
0x12ad   :  { %v1828_v61 = vmul.f32 1.442695, %v1826_v59  ;;  %v1827_v62 = vsub.f32 %v1819_v50, %v1825_v60 }
0x12af   :  { %6770 = vpow2.f32 %v1828_v61  ;;  %v1830_v63 = vmul.f32 1.442695, %v1827_v62 }
0x12b0   :  { %v1845_v1 = vpop.permute.xlu1 %1844 }
0x12b1   :  { %6772 = vpow2.f32 %v1830_v63  ;;  %v1850_v2 = vsel %vm356_vm3, %v1845_v1, 0 }
0x12b2   :  { %6256 = vmatpush3.bf16.msra.mxu1 %v1850_v2 }
0x12b3   :  { %6267 = vmatprep.subr.bf16.mxu1 %v7054_v0 }
0x12b4   :  { %v2038_v26 = vpop.permute.xlu1 %2037 }
0x12b5   :  { %v2043_v35 = vsel %vm229_vm2, %v2038_v26, 0 }
0x12b8   :  { %v2088_v27 = vpop.permute.xlu1 %2087 }
0x12b9   :  { %v6771_v5 = vpop.eup %6770  ;;  %v2093_v16 = vsel %vm229_vm2, %v2088_v27, 0 }
0x12ba   :  { %v1832_v6 = vsel %vm229_vm2, %v6771_v5, 0.0 }
0x12bb   :  { %v6773_v3 = vpop.eup %6772  ;;  %1833 = vadd.xlane.f32.xlu0 %v1832_v6 }
0x12bc   :  { %v1835_v4 = vsel %vm229_vm2, %v6773_v3, 0.0  ;;  %v2086_v28 = vpop.permute.xlu1 %2085 }
0x12bf   :  { %1836 = vadd.xlane.f32.xlu0 %v1835_v4 }
0x12d5   :  { %1892 = vrot.lane.b32.xlu0 %v7527_v43, %s7057_s26 }
0x12d9   :  { %2035 = vrot.lane.b32.xlu0 %v7535_v48, %s7060_s3 }
0x1348   :  { %v1834_v8 = vpop.xlane.xlu0 %1833 }
0x1349   :  { %6774 = vrcp.f32 %v1834_v8 }
0x134c   :  { %v1837_v9 = vpop.xlane.xlu0 %1836 }
0x134d   :  { %6776 = vrcp.f32 %v1837_v9 }
0x1350   :  { %v1893_v12 = vpop.permute.xlu0 %1892 }
0x1351   :  { %v1898_v13 = vsel %vm356_vm3, %v1893_v12, 0 }
0x1352   :  { %6262 = vmatpush3.bf16.msra.mxu0 %v1898_v13 }
0x1353   :  { %v6775_v14 = vpop.eup %6774  ;;  %6273 = vmatprep.subr.bf16.mxu0 %v7054_v0 }
0x1354   :  { %v1840_v17 = vmul.f32 %v6775_v14, %v6771_v5  ;;  %v2036_v11 = vpop.permute.xlu0 %2035 }
0x1356   :  { %v1842_v18 = vpack.c.bf16 %v1840_v17, %v1840_v17 }
0x1357   :  { %v6777_v21 = vpop.eup %6776 }
0x1358   :  { %6258 = vmatmul.mubr.msk.bf16.vlgmr.msra.gmra.mrb[60].mxu1 %vm229_vm2, %v1842_v18  ;;  %v1841_v23 = vmul.f32 %v6777_v21, %v6773_v3 }
0x1359   :  { %6268 = vmatpush3.bf16.msra.mxu1 %v1945_v20  ;;  %6269 = vmatprep.mubr.msk.bf16.mxu1 %vm7055_vm0, %v7054_v0 }
0x135a   :  { %v1843_v24 = vpack.c.bf16 %v1841_v23, %v1841_v23  ;;  %6279 = vmatprep.subr.bf16.mxu1 %v7054_v0 }
0x135c   :  { %6264 = vmatmul.mubr.msk.bf16.vlgmr.msra.gmra.mrb[56].mxu0 %vm229_vm2, %v1843_v24 }
0x135d   :  { %6274 = vmatpush3.bf16.msra.mxu0 %v1992_v25  ;;  %6275 = vmatprep.mubr.msk.bf16.mxu0 %vm7055_vm0, %v7054_v0 }
0x135e   :  { %6285 = vmatprep.subr.bf16.mxu0 %v7054_v0 }
0x1364   :  { %6276 = vmatmul.mubr.msk.bf16.vlgmr.msra.gmra.mrb[60].mxu0 %vm229_vm2, %v1715_v36 }
0x1365   :  { %6287 = vmatprep.mubr.msk.bf16.mxu0 %vm7055_vm0, %v7054_v0 }
0x1366   :  { %6286 = vmatpush3.bf16.xpose.msra.mxu0 %v2093_v16 }
0x1367   :  { %6297 = vmatprep.subr.bf16.mxu0 %v7054_v0 }
0x136d   :  { %6288 = vmatmul.mubr.msk.bf16.vlgmr.msra.gmra.mrb[64].mxu0 %vm229_vm2, %v2086_v28 }
0x136e   :  { %6299 = vmatprep.mubr.msk.bf16.mxu0 %vm7055_vm0, %v7054_v0 }
0x142b   :  { %v1886_v29 = vpop.f32.mrb[60].mxu1 }
0x142c   :  { %v6259_v30 = vpop.f32.mrb[61].mxu1 }
0x142d   :  { %v1889_v19 = vpop.f32.mrb[62].mxu1 }
0x142e   :  { %v6260_v31 = vpop.f32.mrb[63].mxu1 }
0x142f   :  { %v1934_v32 = vpop.f32.mrb[56].mxu0 }
0x1430   :  { %v1940_v33 = vpack.c.bf16 %v1934_v32, %v1886_v29  ;;  %v6265_v7 = vpop.f32.mrb[57].mxu0  ;;  %v1492_v29 = vld [vmem:[%s8326_s9 + $0x8] sm:$0xf] }
0x1431   :  { %v1937_v34 = vpop.f32.mrb[58].mxu0  ;;  %v2262_v30 = vsel %vm356_vm3, %v1492_v29, 0 }
0x1432   :  { %v6266_v36 = vpop.f32.mrb[59].mxu0  ;;  %6270 = vmatmul.mubr.msk.bf16.vlgmr.msra.gmra.mrb[64].mxu1 %vm229_vm2, %v1940_v33 }
0x1433   :  { %6280 = vmatpush3.bf16.xpose.msra.mxu1 %v2043_v35  ;;  %6281 = vmatprep.mubr.msk.bf16.mxu1 %vm7055_vm0, %v7054_v0 }
0x1434   :  { %6291 = vmatprep.subr.bf16.mxu1 %v7054_v0 }
0x1437   :  { %v2028_v39 = vpop.f32.mrb[60].mxu0 }
0x1438   :  { %v6277_v40 = vpop.f32.mrb[61].mxu0 }
0x1439   :  { %v2031_v42 = vpop.f32.mrb[62].mxu0 }
0x143a   :  { %v6278_v44 = vpop.f32.mrb[63].mxu0  ;;  %6282 = vmatmul.mubr.msk.bf16.vlgmr.msra.gmra.mrb[68].mxu1 %vm229_vm2, %v2036_v11 }
0x143b   :  { %6293 = vmatprep.mubr.msk.bf16.mxu1 %vm7055_vm0, %v7054_v0 }
0x1440   :  { %v2129_v45 = vpop.f32.mrb[64].mxu0 }
0x1441   :  { %v2136_v46 = vmul.f32 0.35355338, %v2129_v45  ;;  %v6289_v47 = vpop.f32.mrb[65].mxu0 }
0x1442   :  { %v2132_v49 = vpop.f32.mrb[66].mxu0 }
0x1443   :  { %v6290_v50 = vpop.f32.mrb[67].mxu0  ;;  %v2140_v52 = vsel %vm229_vm2, %v2136_v46, -inf }
0x1444   :  { %2141 = vmax.xlane.f32.xlu1 %v2140_v52 }
0x1455   :  { %2161 = vrot.lane.b32.xlu1 %v7525_v41, %s7061_s1 }
0x1459   :  { %2309 = vrot.lane.b32.xlu1 %v7525_v41, %s8354_s14 }
0x145d   :  { %2359 = vrot.lane.b32.xlu1 %v7527_v43, %s8354_s14 }
0x1461   :  { %2357 = vrot.lane.b32.xlu1 %v7537_v51, %s8354_s14 }
0x14d1   :  { %v2142_v53 = vpop.xlane.xlu1 %2141 }
0x14d2   :  { %v2144_v56 = vsub.f32 %v2136_v46, %v2142_v53 }
0x14d4   :  { %v2147_v57 = vmul.f32 1.442695, %v2144_v56 }
0x14d5   :  { %v2162_v54 = vpop.permute.xlu1 %2161 }
0x14d6   :  { %v2167_v55 = vsel %vm356_vm3, %v2162_v54, 0  ;;  %6778 = vpow2.f32 %v2147_v57 }
0x14d7   :  { %6292 = vmatpush3.bf16.msra.mxu1 %v2167_v55 }
0x14d8   :  { %6303 = vmatprep.subr.bf16.mxu1 %v7054_v0 }
0x14e0   :  { %v6779_v4 = vpop.eup %6778 }
0x14e1   :  { %v2152_v8 = vsel %vm229_vm2, %v6779_v4, 0.0 }
0x1505   :  { %v1981_v58 = vpop.f32.mrb[64].mxu1 }
0x1506   :  { %v7655_v59 = vadd.f32 %v2028_v39, %v1981_v58  ;;  %v6271_v60 = vpop.f32.mrb[65].mxu1 }
0x1507   :  { %v1984_v61 = vpop.f32.mrb[66].mxu1 }
0x1508   :  { %v7657_v62 = vadd.f32 %v2031_v42, %v1984_v61  ;;  %v6272_v63 = vpop.f32.mrb[67].mxu1 }
0x150d   :  { %v2079_v1 = vpop.f32.mrb[68].mxu1 }
0x150e   :  { %v2135_v51 = vmul.f32 0.35355338, %v2079_v1  ;;  %v6283_v2 = vpop.f32.mrb[69].mxu1 }
0x150f   :  { %v2082_v5 = vpop.f32.mrb[70].mxu1 }
0x1510   :  { %v6284_v6 = vpop.f32.mrb[71].mxu1  ;;  %v2137_v3 = vsel %vm229_vm2, %v2135_v51, -inf }
0x1511   :  { %2138 = vmax.xlane.f32.xlu0 %v2137_v3 }
0x1515   :  { %2153 = vadd.xlane.f32.xlu0 %v2152_v8 }
0x159e   :  { %v2139_v9 = vpop.xlane.xlu0 %2138 }
0x159f   :  { %v2143_v12 = vsub.f32 %v2135_v51, %v2139_v9 }
0x15a1   :  { %v2145_v13 = vmul.f32 1.442695, %v2143_v12 }
0x15a2   :  { %v2154_v17 = vpop.xlane.xlu0 %2153 }
0x15a3   :  { %6780 = vpow2.f32 %v2145_v13 }
0x15a4   :  { %6782 = vrcp.f32 %v2154_v17 }
0x15ad   :  { %v6781_v14 = vpop.eup %6780 }
0x15ae   :  { %v2149_v15 = vsel %vm229_vm2, %v6781_v14, 0.0  ;;  %v6783_v18 = vpop.eup %6782 }
0x15af   :  { %2150 = vadd.xlane.f32.xlu0 %v2149_v15  ;;  %v2158_v21 = vmul.f32 %v6783_v18, %v6779_v4 }
0x15b1   :  { %v2160_v24 = vpack.c.bf16 %v2158_v21, %v2158_v21 }
0x15c5   :  { %2209 = vrot.lane.b32.xlu0 %v7527_v43, %s7061_s1 }
0x15c9   :  { %2307 = vrot.lane.b32.xlu0 %v7535_v48, %s8354_s14  ;;  %v2310_v48 = vpop.permute.xlu1 %2309 }
0x15ca   :  { %v2315_v27 = vsel %vm229_vm2, %v2310_v48, 0 }
0x15cd   :  { %v2360_v7 = vpop.permute.xlu1 %2359 }
0x15ce   :  { %v2365_v40 = vsel %vm229_vm2, %v2360_v7, 0 }
0x15d1   :  { %v2358_v50 = vpop.permute.xlu1 %2357 }
0x163c   :  { %v2151_v20 = vpop.xlane.xlu0 %2150 }
0x163d   :  { %6784 = vrcp.f32 %v2151_v20  ;;  %v1493_v20 = vld [vmem:[%s8326_s9 + $0xc] sm:$0xf] }
0x163e   :  { %v2534_v21 = vsel %vm356_vm3, %v1493_v20, 0 }
0x1640   :  { %v2210_v22 = vpop.permute.xlu0 %2209 }
0x1641   :  { %v2215_v23 = vsel %vm356_vm3, %v2210_v22, 0 }
0x1642   :  { %6298 = vmatpush3.bf16.msra.mxu0 %v2215_v23 }
0x1643   :  { %6309 = vmatprep.subr.bf16.mxu0 %v7054_v0 }
0x1644   :  { %v2308_v28 = vpop.permute.xlu0 %2307 }
0x1645   :  { %6300 = vmatmul.mubr.msk.bf16.vlgmr.msra.gmra.mrb[68].mxu0 %vm229_vm2, %v2160_v24 }
0x1646   :  { %6311 = vmatprep.mubr.msk.bf16.mxu0 %vm7055_vm0, %v7054_v0 }
0x1647   :  { %v6785_v25 = vpop.eup %6784 }
0x1648   :  { %v2157_v26 = vmul.f32 %v6785_v25, %v6781_v14 }
0x164a   :  { %v2159_v16 = vpack.c.bf16 %v2157_v26, %v2157_v26 }
0x164b   :  { %6310 = vmatpush3.bf16.xpose.msra.mxu0 %v2315_v27 }
0x164c   :  { %6294 = vmatmul.mubr.msk.bf16.vlgmr.msra.gmra.mrb[72].mxu1 %vm229_vm2, %v2159_v16  ;;  %6321 = vmatprep.subr.bf16.mxu0 %v7054_v0 }
0x164d   :  { %6305 = vmatprep.mubr.msk.bf16.mxu1 %vm7055_vm0, %v7054_v0  ;;  %6304 = vmatpush3.bf16.msra.mxu1 %v2262_v30 }
0x164e   :  { %6315 = vmatprep.subr.bf16.mxu1 %v7054_v0 }
0x1652   :  { %6312 = vmatmul.mubr.msk.bf16.vlgmr.msra.gmra.mrb[72].mxu0 %vm229_vm2, %v2308_v28 }
0x1653   :  { %6323 = vmatprep.mubr.msk.bf16.mxu0 %vm7055_vm0, %v7054_v0 }
0x1718   :  { %v2251_v19 = vpop.f32.mrb[68].mxu0 }
0x1719   :  { %v6301_v31 = vpop.f32.mrb[69].mxu0 }
0x171a   :  { %v2254_v32 = vpop.f32.mrb[70].mxu0 }
0x171b   :  { %v6302_v33 = vpop.f32.mrb[71].mxu0 }
0x171c   :  { %v5735_v33 = vld [vmem:[%s8327_s10] ss:$0 sm:$0xff] }
0x171f   :  { %v2203_v34 = vpop.f32.mrb[72].mxu1 }
0x1720   :  { %v2257_v35 = vpack.c.bf16 %v2251_v19, %v2203_v34  ;;  %v6295_v36 = vpop.f32.mrb[73].mxu1 }
0x1721   :  { %v2206_v39 = vpop.f32.mrb[74].mxu1 }
0x1722   :  { %v6296_v11 = vpop.f32.mrb[75].mxu1  ;;  %6306 = vmatmul.mubr.msk.bf16.vlgmr.msra.gmra.mrb[76].mxu1 %vm229_vm2, %v2257_v35 }
0x1723   :  { %6316 = vmatpush3.bf16.xpose.msra.mxu1 %v2365_v40  ;;  %6317 = vmatprep.mubr.msk.bf16.mxu1 %vm7055_vm0, %v7054_v0 }
0x1724   :  { %6327 = vmatprep.subr.bf16.mxu1 %v7054_v0 }
0x1725   :  { %v2351_v42 = vpop.f32.mrb[72].mxu0 }
0x1726   :  { %v2407_v44 = vmul.f32 0.35355338, %v2351_v42  ;;  %v6313_v45 = vpop.f32.mrb[73].mxu0 }
0x1727   :  { %v2354_v46 = vpop.f32.mrb[74].mxu0 }
0x1728   :  { %v6314_v47 = vpop.f32.mrb[75].mxu0  ;;  %v2409_v49 = vsel %vm229_vm2, %v2407_v44, -inf }
0x1729   :  { %2410 = vmax.xlane.f32.xlu0 %v2409_v49 }
0x172a   :  { %6318 = vmatmul.mubr.msk.bf16.vlgmr.msra.gmra.mrb[80].mxu1 %vm229_vm2, %v2358_v50 }
0x172b   :  { %6329 = vmatprep.mubr.msk.bf16.mxu1 %vm7055_vm0, %v7054_v0 }
0x17b6   :  { %v2411_v52 = vpop.xlane.xlu0 %2410 }
0x17b7   :  { %v2415_v53 = vsub.f32 %v2407_v44, %v2411_v52 }
0x17b9   :  { %v2417_v54 = vmul.f32 1.442695, %v2415_v53 }
0x17bb   :  { %6786 = vpow2.f32 %v2417_v54  ;;  %v6698_v54 = vld [vmem:[#allocation10] sm:$0xff]  }
0x17c5   :  { %v6787_v55 = vpop.eup %6786 }
0x17c6   :  { %v2421_v56 = vsel %vm229_vm2, %v6787_v55, 0.0 }
0x17c7   :  { %2422 = vadd.xlane.f32.xlu0 %v2421_v56  ;;  %v6702_v56 = vld [vmem:[%s8332_s15 + $0x10] sm:$0xff]  }
0x17f5   :  { %v2298_v57 = vpop.f32.mrb[76].mxu1 }
0x17f6   :  { %v2305_v58 = vadd.f32 %v2298_v57, %v7655_v59  ;;  %v6307_v60 = vpop.f32.mrb[77].mxu1  ;;  %v6703_v57 = vld [vmem:[%s8332_s15 + $0x18] sm:$0xff]  }
0x17f7   :  { %v2301_v61 = vpop.f32.mrb[78].mxu1  ;;  %v6705_v60 = vld [vmem:[%s8332_s15 + $0x28] sm:$0xff]  }
0x17f8   :  { %v2306_v63 = vadd.f32 %v2301_v61, %v7657_v62  ;;  %v6308_v1 = vpop.f32.mrb[79].mxu1 }
0x17fd   :  { %v2401_v51 = vpop.f32.mrb[80].mxu1 }
0x17fe   :  { %v2408_v2 = vmul.f32 0.35355338, %v2401_v51  ;;  %v6319_v5 = vpop.f32.mrb[81].mxu1 }
0x17ff   :  { %v2404_v6 = vpop.f32.mrb[82].mxu1 }
0x1800   :  { %v6320_v3 = vpop.f32.mrb[83].mxu1  ;;  %v2412_v4 = vsel %vm229_vm2, %v2408_v2, -inf }
0x1801   :  { %2413 = vmax.xlane.f32.xlu1 %v2412_v4 }
0x1812   :  { %2433 = vrot.lane.b32.xlu1 %v7525_v41, %s7063_s21 }
0x1854   :  { %v2423_v8 = vpop.xlane.xlu0 %2422 }
0x1855   :  { %6788 = vrcp.f32 %v2423_v8 }
0x185f   :  { %v6789_v9 = vpop.eup %6788 }
0x1860   :  { %v2429_v14 = vmul.f32 %v6789_v9, %v6787_v55  ;;  %v6701_v55 = vld [vmem:[%s8332_s15 + $0x8] sm:$0xff]  }
0x1862   :  { %v2431_v17 = vpack.c.bf16 %v2429_v14, %v2429_v14 }
0x188e   :  { %v2414_v59 = vpop.xlane.xlu1 %2413 }
0x188f   :  { %v2416_v12 = vsub.f32 %v2408_v2, %v2414_v59 }
0x1891   :  { %v2419_v13 = vmul.f32 1.442695, %v2416_v12 }
0x1892   :  { %v2434_v62 = vpop.permute.xlu1 %2433 }
0x1893   :  { %6790 = vpow2.f32 %v2419_v13  ;;  %v2439_v15 = vsel %vm356_vm3, %v2434_v62, 0 }
0x1894   :  { %6322 = vmatpush3.bf16.msra.mxu0 %v2439_v15  ;;  %v5736_v15 = vld [vmem:[%s8328_s11] ss:$0 sm:$0xff] }
0x1895   :  { %6333 = vmatprep.subr.bf16.mxu0 %v7054_v0 }
0x1897   :  { %6324 = vmatmul.mubr.msk.bf16.vlgmr.msra.gmra.mrb[76].mxu0 %vm229_vm2, %v2431_v17 }
0x1898   :  { %6335 = vmatprep.mubr.msk.bf16.mxu0 %vm7055_vm0, %v7054_v0  ;;  %6334 = vmatpush3.bf16.msra.mxu0 %v2534_v21 }
0x1899   :  { %6347 = vmatprep.subr.bf16.mxu0 %v7054_v0 }
0x189d   :  { %v6791_v41 = vpop.eup %6790 }
0x189e   :  { %v2424_v18 = vsel %vm229_vm2, %v6791_v41, 0.0 }
0x189f   :  { %2425 = vadd.xlane.f32.xlu0 %v2424_v18 }
0x18b5   :  { %2481 = vrot.lane.b32.xlu0 %v7527_v43, %s7063_s21 }
0x192c   :  { %v2426_v22 = vpop.xlane.xlu0 %2425 }
0x192d   :  { %6792 = vrcp.f32 %v2426_v22  ;;  %v5737_v22 = vld [vmem:[#allocation8] ss:$0 sm:$0xff] }
0x1930   :  { %v2482_v23 = vpop.permute.xlu0 %2481 }
0x1931   :  { %v2487_v24 = vsel %vm356_vm3, %v2482_v23, 0 }
0x1932   :  { %6328 = vmatpush3.bf16.msra.mxu1 %v2487_v24 }
0x1933   :  { %6339 = vmatprep.subr.bf16.mxu1 %v7054_v0 }
0x1937   :  { %v6793_v25 = vpop.eup %6792 }
0x1938   :  { %v2430_v48 = vmul.f32 %v6793_v25, %v6791_v41 }
0x193a   :  { %v2432_v43 = vpack.c.bf16 %v2430_v48, %v2430_v48 }
0x193c   :  { %6330 = vmatmul.mubr.msk.bf16.vlgmr.msra.gmra.mrb[84].mxu1 %vm229_vm2, %v2432_v43  ;;  %v6706_v43 = vld [vmem:[%s8332_s15 + $0x30] sm:$0xff]  }
0x193d   :  { %6343 = vmatprep.mubr.msk.bf16.mxu1 %vm7055_vm0, %v7054_v0  ;;  %6340 = vmatpush3.bf16.msra.mxu1 %v6698_v54  ;;  %v6708_v54 = vld [vmem:[%s8369_s27 + $0x10] sm:$0xff]  }
0x193e   :  { %6341 = vmatprep.subr.bf16.mxu1 %v7054_v0 }
0x196a   :  { %v2475_v26 = vpop.f32.mrb[76].mxu0 }
0x196b   :  { %v6325_v27 = vpop.f32.mrb[77].mxu0 }
0x196c   :  { %v2478_v16 = vpop.f32.mrb[78].mxu0  ;;  %v5738_v27 = vld [vmem:[#allocation11] ss:$0 sm:$0xff] }
0x196d   :  { %v6326_v28 = vpop.f32.mrb[79].mxu0 }
0x1a0f   :  { %v2523_v29 = vpop.f32.mrb[84].mxu1 }
0x1a10   :  { %v2529_v30 = vpack.c.bf16 %v2523_v29, %v2475_v26  ;;  %v6331_v19 = vpop.f32.mrb[85].mxu1  ;;  %v6707_v26 = vld [vmem:[%s8332_s15 + $0x38] sm:$0xff]  }
0x1a11   :  { %v2526_v31 = vpop.f32.mrb[86].mxu1 }
0x1a12   :  { %v6332_v32 = vpop.f32.mrb[87].mxu1  ;;  %6336 = vmatmul.mubr.msk.bf16.vlgmr.msra.gmra.mrb[80].mxu0 %vm229_vm2, %v2529_v30 }
0x1a13   :  { %6363 = vmatprep.mubr.msk.bf16.mxu0 %vm7055_vm0, %v7054_v0 }
0x1ae5   :  { %v2570_v7 = vpop.f32.mrb[80].mxu0 }
0x1ae6   :  { %v2577_v34 = vadd.f32 %v2570_v7, %v2305_v58  ;;  %v6337_v35 = vpop.f32.mrb[81].mxu0  ;;  %v6704_v58 = vld [vmem:[%s8332_s15 + $0x20] sm:$0xff]  }
0x1ae7   :  { %v2573_v36 = vpop.f32.mrb[82].mxu0 }
0x1ae8   :  { %v2585_v39 = vadd.f32 %v5735_v33, %v2577_v34  ;;  %v2578_v40 = vadd.f32 %v2573_v36, %v2306_v63  ;;  %v6338_v11 = vpop.f32.mrb[83].mxu0  ;;  %v5742_v34 = vld [vmem:[%s8333_s16] ss:$0 sm:$0xff] }
0x1aea   :  { %v2587_v42 = vadd.f32 %v2585_v39, %v7516_v37  ;;  %v2586_v44 = vadd.f32 %v5735_v33, %v2578_v40  ;;  %v6699_v37 = vld [vmem:[#allocation10 + $0x8] sm:$0xff]  }
0x1aeb   :  { %6342 = vmatpush3.bf16.msra.mxu1 %v6699_v37  ;;  %v6709_v37 = vld [vmem:[%s8369_s27 + $0x18] sm:$0xff]   ;;  %s8374_s27 = sld [smem:[#allocation25_spill]] }
0x1aec   :  { %v2588_v45 = vadd.f32 %v2586_v44, %v7518_v38  ;;  %v2591_v46 = vsel %vm174_vm1, %v2587_v42, 0.0  ;;  %v2599_v47 = vmul.f32 %v2587_v42, %v2587_v42  ;;  %6367 = vmatprep.subr.bf16.mxu1 %v7054_v0  ;;  %v6700_v38 = vld [vmem:[%s8332_s15] sm:$0xff]  }
0x1aed   :  { %2592 = vadd.xlane.f32.xlu1 %v2591_v46  ;;  %6348 = vmatpush3.bf16.msra.mxu0 %v6700_v38 }
0x1aee   :  { %v2594_v49 = vsel %vm174_vm1, %v2588_v45, 0.0  ;;  %v2600_v50 = vmul.f32 %v2588_v45, %v2588_v45  ;;  %v2601_v52 = vsel %vm174_vm1, %v2599_v47, 0.0  ;;  %6349 = vmatprep.subr.bf16.mxu0 %v7054_v0 }
0x1aef   :  { %2595 = vadd.xlane.f32.xlu0 %v2594_v49 }
0x1af0   :  { %v2604_v53 = vsel %vm174_vm1, %v2600_v50, 0.0 }
0x1af1   :  { %2602 = vadd.xlane.f32.xlu1 %v2601_v52  ;;  %6350 = vmatpush3.bf16.msra.mxu0 %v6701_v55 }
0x1af2   :  { %6351 = vmatprep.subr.bf16.mxu0 %v7054_v0 }
0x1af3   :  { %2605 = vadd.xlane.f32.xlu0 %v2604_v53 }
0x1af5   :  { %6352 = vmatpush3.bf16.msra.mxu0 %v6702_v56 }
0x1af6   :  { %6353 = vmatprep.subr.bf16.mxu0 %v7054_v0 }
0x1af9   :  { %6354 = vmatpush3.bf16.msra.mxu0 %v6703_v57 }
0x1afa   :  { %6355 = vmatprep.subr.bf16.mxu0 %v7054_v0 }
0x1afd   :  { %6356 = vmatpush3.bf16.msra.mxu0 %v6704_v58 }
0x1afe   :  { %6357 = vmatprep.subr.bf16.mxu0 %v7054_v0 }
0x1b01   :  { %6358 = vmatpush3.bf16.msra.mxu0 %v6705_v60 }
0x1b02   :  { %6359 = vmatprep.subr.bf16.mxu0 %v7054_v0 }
0x1b05   :  { %6360 = vmatpush3.bf16.msra.mxu0 %v6706_v43 }
0x1b06   :  { %6361 = vmatprep.subr.bf16.mxu0 %v7054_v0 }
0x1b09   :  { %6362 = vmatpush3.bf16.msra.mxu0 %v6707_v26 }
0x1b0a   :  { %6393 = vmatprep.subr.bf16.mxu0 %v7054_v0 }
0x1b7a   :  { %v2593_v61 = vpop.xlane.xlu1 %2592 }
0x1b7b   :  { %v2597_v63 = vmul.f32 0.03125, %v2593_v61 }
0x1b7c   :  { %v2596_v1 = vpop.xlane.xlu0 %2595 }
0x1b7d   :  { %v2598_v51 = vmul.f32 0.03125, %v2596_v1  ;;  %v2609_v5 = vmul.f32 %v2597_v63, %v2597_v63  ;;  %v2613_v14 = vsub.f32 %v2587_v42, %v2597_v63 }
0x1b7e   :  { %v2603_v2 = vpop.xlane.xlu1 %2602 }
0x1b7f   :  { %v2607_v6 = vmul.f32 0.03125, %v2603_v2  ;;  %v2610_v4 = vmul.f32 %v2598_v51, %v2598_v51  ;;  %v2614_v17 = vsub.f32 %v2588_v45, %v2598_v51 }
0x1b80   :  { %v2606_v3 = vpop.xlane.xlu0 %2605 }
0x1b81   :  { %v2611_v8 = vsub.f32 %v2607_v6, %v2609_v5  ;;  %v2608_v9 = vmul.f32 0.03125, %v2606_v3 }
0x1b83   :  { %v2615_v59 = vadd.f32 1e-05, %v2611_v8  ;;  %v2612_v12 = vsub.f32 %v2608_v9, %v2610_v4  ;;  %v5751_v9 = vld [vmem:[%s8334_s17] ss:$0 sm:$0xff] }
0x1b85   :  { %6794 = vrsqrt.f32 %v2615_v59  ;;  %v2616_v13 = vadd.f32 1e-05, %v2612_v12 }
0x1b87   :  { %6796 = vrsqrt.f32 %v2616_v13 }
0x1b8f   :  { %v6795_v62 = vpop.eup %6794 }
0x1b90   :  { %v2619_v41 = vmul.f32 %v6795_v62, %v2613_v14 }
0x1b91   :  { %v6797_v18 = vpop.eup %6796 }
0x1b92   :  { %v2620_v20 = vmul.f32 %v6797_v18, %v2614_v17  ;;  %v2627_v21 = vmul.f32 %v5736_v15, %v2619_v41 }
0x1b94   :  { %v2628_v23 = vmul.f32 %v5736_v15, %v2620_v20  ;;  %v2635_v24 = vadd.f32 %v5737_v22, %v2627_v21  ;;  %v5752_v15 = vld [vmem:[%s8335_s18] ss:$0 sm:$0xff] }
0x1b96   :  { %v2636_v25 = vadd.f32 %v5737_v22, %v2628_v23 }
0x1b98   :  { %v2637_v48 = vpack.c.bf16 %v2636_v25, %v2635_v24 }
0x1b9a   :  { %6344 = vmatmul.mubr.msk.bf16.vlgmr.msra.gmra.mrb[88].mxu1 %vm174_vm1, %v2637_v48 }
0x1b9b   :  { %6371 = vmatprep.mubr.msk.bf16.mxu1 %vm7055_vm0, %v7054_v0  ;;  %6368 = vmatpush3.bf16.msra.mxu1 %v6708_v54 }
0x1b9c   :  { %6369 = vmatprep.subr.bf16.mxu1 %v7054_v0 }
0x1b9f   :  { %6370 = vmatpush3.bf16.msra.mxu1 %v6709_v37 }
0x1ba0   :  { %6375 = vmatprep.subr.bf16.mxu1 %v7054_v0 }
0x1c6d   :  { %v2698_v16 = vpop.f32.mrb[88].mxu1 }
0x1c6e   :  { %v2699_v28 = vadd.f32 %v5738_v27, %v2698_v16  ;;  %v6345_v29 = vpop.f32.mrb[89].mxu1 }
0x1c6f   :  { %v2701_v30 = vpop.f32.mrb[90].mxu1 }
0x1c70   :  { %v2702_v19 = vadd.f32 %v5738_v27, %v2701_v30  ;;  %v6346_v31 = vpop.f32.mrb[91].mxu1  ;;  %v2705_v32 = vmax.f32 %v2699_v28, 0.0 }
0x1c72   :  { %v2706_v33 = vmax.f32 %v2702_v19, 0.0 }
0x1c74   :  { %v2707_v7 = vpack.c.bf16 %v2706_v33, %v2705_v32 }
0x1c76   :  { %6364 = vmatmul.mubr.bf16.vlgmr.msra.gmra.mrb[84].mxu0 %v2707_v7 }
0x1c77   :  { %6395 = vmatprep.mubr.msk.bf16.mxu0 %vm7055_vm0, %v7054_v0 }
0x1d49   :  { %v2813_v35 = vpop.f32.mrb[84].mxu0 }
0x1d4a   :  { %v2814_v36 = vadd.f32 %v5742_v34, %v2813_v35  ;;  %v6365_v39 = vpop.f32.mrb[85].mxu0 }
0x1d4b   :  { %v2816_v40 = vpop.f32.mrb[86].mxu0 }
0x1d4c   :  { %v2820_v11 = vadd.f32 %v2814_v36, %v2635_v24  ;;  %v2817_v42 = vadd.f32 %v5742_v34, %v2816_v40  ;;  %v6366_v44 = vpop.f32.mrb[87].mxu0 }
0x1d4e   :  { %v2821_v45 = vadd.f32 %v2817_v42, %v2636_v25  ;;  %v2824_v46 = vsel %vm174_vm1, %v2820_v11, 0.0  ;;  %v2832_v47 = vmul.f32 %v2820_v11, %v2820_v11 }
0x1d4f   :  { %2825 = vadd.xlane.f32.xlu1 %v2824_v46 }
0x1d50   :  { %v2827_v49 = vsel %vm174_vm1, %v2821_v45, 0.0  ;;  %v2833_v50 = vmul.f32 %v2821_v45, %v2821_v45  ;;  %v2834_v52 = vsel %vm174_vm1, %v2832_v47, 0.0 }
0x1d51   :  { %2828 = vadd.xlane.f32.xlu0 %v2827_v49 }
0x1d52   :  { %v2837_v53 = vsel %vm174_vm1, %v2833_v50, 0.0 }
0x1d53   :  { %2835 = vadd.xlane.f32.xlu1 %v2834_v52 }
0x1d55   :  { %2838 = vadd.xlane.f32.xlu0 %v2837_v53 }
0x1ddc   :  { %v2826_v38 = vpop.xlane.xlu1 %2825 }
0x1ddd   :  { %v2830_v55 = vmul.f32 0.03125, %v2826_v38 }
0x1dde   :  { %v2829_v56 = vpop.xlane.xlu0 %2828 }
0x1ddf   :  { %v2831_v57 = vmul.f32 0.03125, %v2829_v56  ;;  %v2842_v60 = vmul.f32 %v2830_v55, %v2830_v55  ;;  %v2846_v4 = vsub.f32 %v2820_v11, %v2830_v55 }
0x1de0   :  { %v2836_v58 = vpop.xlane.xlu1 %2835 }
0x1de1   :  { %v2840_v61 = vmul.f32 0.03125, %v2836_v58  ;;  %v2843_v1 = vmul.f32 %v2831_v57, %v2831_v57  ;;  %v2847_v59 = vsub.f32 %v2821_v45, %v2831_v57 }
0x1de2   :  { %v2839_v63 = vpop.xlane.xlu0 %2838 }
0x1de3   :  { %v2844_v51 = vsub.f32 %v2840_v61, %v2842_v60  ;;  %v2841_v2 = vmul.f32 0.03125, %v2839_v63 }
0x1de5   :  { %v2848_v5 = vadd.f32 1e-05, %v2844_v51  ;;  %v2845_v6 = vsub.f32 %v2841_v2, %v2843_v1 }
0x1de7   :  { %6798 = vrsqrt.f32 %v2848_v5  ;;  %v2849_v3 = vadd.f32 1e-05, %v2845_v6 }
0x1de9   :  { %6800 = vrsqrt.f32 %v2849_v3 }
0x1df1   :  { %v6799_v8 = vpop.eup %6798 }
0x1df2   :  { %v2852_v12 = vmul.f32 %v6799_v8, %v2846_v4 }
0x1df3   :  { %v6801_v13 = vpop.eup %6800 }
0x1df4   :  { %v2853_v14 = vmul.f32 %v6801_v13, %v2847_v59  ;;  %v2860_v62 = vmul.f32 %v5751_v9, %v2852_v12 }
0x1df6   :  { %v2861_v17 = vmul.f32 %v5751_v9, %v2853_v14  ;;  %v7792_v41 = vadd.f32 %v5752_v15, %v2860_v62 }
0x1df8   :  { %v7794_v18 = vadd.f32 %v5752_v15, %v2861_v17 }
0x1dfa   :  { %v2870_v20 = vpack.c.bf16 %v7794_v18, %v7792_v41 }
0x1dfc   :  { %6372 = vmatmul.mubr.msk.bf16.vlgmr.msra.gmra.mrb[92].mxu1 %vm174_vm1, %v2870_v20 }
0x1dfd   :  { %6377 = vmatprep.mubr.msk.bf16.mxu1 %vm7055_vm0, %v7054_v0 }
0x1ecf   :  { %v2925_v21 = vpop.f32.mrb[92].mxu1 }
0x1ed0   :  { %v7801_v22 = vpack.c.bf16 %v2925_v21, %v2925_v21  ;;  %v6373_v23 = vpop.f32.mrb[93].mxu1 }
0x1ed1   :  { %v2928_v24 = vpop.f32.mrb[94].mxu1 }
0x1ed2   :  { %v7803_v25 = vpack.c.bf16 %v2928_v24, %v2928_v24  ;;  %2942 = vrot.lane.b32.xlu1 %v7801_v22, %s7056_s28  ;;  %v6374_v48 = vpop.f32.mrb[95].mxu1 }
0x1ed4   :  { %2991 = vrot.lane.b32.xlu0 %v7803_v25, %s7056_s28 }
0x1f44   :  { %v2943_v43 = vpop.permute.xlu1 %2942 }
0x1f45   :  { %v2948_v26 = vsel %vm229_vm2, %v2943_v43, 0 }
0x1f46   :  { %6376 = vmatpush3.bf16.xpose.msra.mxu1 %v2948_v26  ;;  %v2992_v27 = vpop.permute.xlu0 %2991 }
0x1f47   :  { %6381 = vmatprep.subr.bf16.mxu1 %v7054_v0  ;;  %v2997_v16 = vsel %vm229_vm2, %v2992_v27, 0 }
0x1f4d   :  { %6378 = vmatmul.mubr.msk.bf16.vlgmr.msra.gmra.mrb[96].mxu1 %vm229_vm2, %v7801_v22 }
0x1f4e   :  { %6382 = vmatpush3.bf16.xpose.msra.mxu1 %v2997_v16  ;;  %6383 = vmatprep.mubr.msk.bf16.mxu1 %vm7055_vm0, %v7054_v0 }
0x1f4f   :  { %6387 = vmatprep.subr.bf16.mxu1 %v7054_v0 }
0x1f55   :  { %6384 = vmatmul.mubr.msk.bf16.vlgmr.msra.gmra.mrb[100].mxu1 %vm229_vm2, %v7803_v25 }
0x1f56   :  { %6389 = vmatprep.mubr.msk.bf16.mxu1 %vm7055_vm0, %v7054_v0 }
0x2020   :  { %v2984_v28 = vpop.f32.mrb[96].mxu1 }
0x2021   :  { %v3039_v29 = vmul.f32 0.35355338, %v2984_v28  ;;  %v6379_v30 = vpop.f32.mrb[97].mxu1 }
0x2022   :  { %v2987_v19 = vpop.f32.mrb[98].mxu1 }
0x2023   :  { %v6380_v31 = vpop.f32.mrb[99].mxu1  ;;  %v3041_v32 = vsel %vm229_vm2, %v3039_v29, -inf }
0x2024   :  { %3042 = vmax.xlane.f32.xlu1 %v3041_v32 }
0x2028   :  { %v3033_v33 = vpop.f32.mrb[100].mxu1 }
0x2029   :  { %v3040_v7 = vmul.f32 0.35355338, %v3033_v33  ;;  %v6385_v34 = vpop.f32.mrb[101].mxu1 }
0x202a   :  { %v3036_v35 = vpop.f32.mrb[102].mxu1 }
0x202b   :  { %v6386_v36 = vpop.f32.mrb[103].mxu1  ;;  %v3044_v39 = vsel %vm229_vm2, %v3040_v7, -inf }
0x202c   :  { %3045 = vmax.xlane.f32.xlu0 %v3044_v39 }
0x2035   :  { %3065 = vrot.lane.b32.xlu1 %v7801_v22, %s7051_s2 }
0x20b1   :  { %v3043_v40 = vpop.xlane.xlu1 %3042 }
0x20b2   :  { %v3047_v11 = vsub.f32 %v3039_v29, %v3043_v40 }
0x20b4   :  { %v3049_v42 = vmul.f32 1.442695, %v3047_v11 }
0x20b5   :  { %v3066_v44 = vpop.permute.xlu1 %3065 }
0x20b6   :  { %6802 = vpow2.f32 %v3049_v42  ;;  %v3071_v45 = vsel %vm356_vm3, %v3066_v44, 0 }
0x20b7   :  { %6388 = vmatpush3.bf16.msra.mxu1 %v3071_v45 }
0x20b8   :  { %6399 = vmatprep.subr.bf16.mxu1 %v7054_v0 }
0x20b9   :  { %v3046_v46 = vpop.xlane.xlu0 %3045 }
0x20ba   :  { %v3048_v47 = vsub.f32 %v3040_v7, %v3046_v46 }
0x20bc   :  { %v3051_v49 = vmul.f32 1.442695, %v3048_v47 }
0x20be   :  { %6804 = vpow2.f32 %v3051_v49 }
0x20c0   :  { %v6803_v50 = vpop.eup %6802 }
0x20c1   :  { %v3053_v52 = vsel %vm229_vm2, %v6803_v50, 0.0 }
0x20c2   :  { %3054 = vadd.xlane.f32.xlu1 %v3053_v52 }
0x20c8   :  { %v6805_v53 = vpop.eup %6804 }
0x20c9   :  { %v3056_v54 = vsel %vm229_vm2, %v6805_v53, 0.0 }
0x20ca   :  { %3057 = vadd.xlane.f32.xlu0 %v3056_v54  ;;  %v5760_v54 = vld [vmem:[%s8370_s30 + $0x10] sm:$0xf] }
0x20d3   :  { %3164 = vrot.lane.b32.xlu1 %v7801_v22, %s7057_s26 }
0x20d7   :  { %3214 = vrot.lane.b32.xlu1 %v7803_v25, %s7057_s26 }
0x20db   :  { %3212 = vrot.lane.b32.xlu1 %v7803_v25, %s7058_s24 }
0x20e0   :  { %3113 = vrot.lane.b32.xlu0 %v7803_v25, %s7051_s2 }
0x20e4   :  { %3162 = vrot.lane.b32.xlu0 %v7801_v22, %s7058_s24 }
0x214f   :  { %v3055_v37 = vpop.xlane.xlu1 %3054 }
0x2150   :  { %6806 = vrcp.f32 %v3055_v37 }
0x2153   :  { %v3165_v58 = vpop.permute.xlu1 %3164 }
0x2154   :  { %v3170_v63 = vsel %vm229_vm2, %v3165_v58, 0 }
0x2157   :  { %v3058_v38 = vpop.xlane.xlu0 %3057  ;;  %v3215_v2 = vpop.permute.xlu1 %3214 }
0x2158   :  { %6808 = vrcp.f32 %v3058_v38  ;;  %v3220_v3 = vsel %vm229_vm2, %v3215_v2, 0 }
0x215a   :  { %v6807_v55 = vpop.eup %6806 }
0x215b   :  { %v3061_v56 = vmul.f32 %v6807_v55, %v6803_v50  ;;  %v3114_v57 = vpop.permute.xlu0 %3113  ;;  %v3213_v4 = vpop.permute.xlu1 %3212  ;;  %v3436_v55 = vsel %vm356_vm3, %v5760_v54, 0 }
0x215c   :  { %v3119_v60 = vsel %vm356_vm3, %v3114_v57, 0 }
0x215d   :  { %6394 = vmatpush3.bf16.msra.mxu0 %v3119_v60  ;;  %v3063_v61 = vpack.c.bf16 %v3061_v56, %v3061_v56 }
0x215e   :  { %6405 = vmatprep.subr.bf16.mxu0 %v7054_v0 }
0x215f   :  { %6390 = vmatmul.mubr.msk.bf16.vlgmr.msra.gmra.mrb[104].mxu1 %vm229_vm2, %v3063_v61  ;;  %v3163_v6 = vpop.permute.xlu0 %3162  ;;  %v5761_v61 = vld [vmem:[%s8370_s30 + $0x14] sm:$0xf] }
0x2160   :  { %6400 = vmatpush3.bf16.xpose.msra.mxu1 %v3170_v63  ;;  %6401 = vmatprep.mubr.msk.bf16.mxu1 %vm7055_vm0, %v7054_v0  ;;  %v3389_v63 = vsel %vm356_vm3, %v5761_v61, 0 }
0x2161   :  { %6411 = vmatprep.subr.bf16.mxu1 %v7054_v0 }
0x2162   :  { %v6809_v1 = vpop.eup %6808 }
0x2163   :  { %v3062_v51 = vmul.f32 %v6809_v1, %v6805_v53 }
0x2165   :  { %v3064_v5 = vpack.c.bf16 %v3062_v51, %v3062_v51 }
0x2167   :  { %6396 = vmatmul.mubr.msk.bf16.vlgmr.msra.gmra.mrb[88].mxu0 %vm229_vm2, %v3064_v5  ;;  %6402 = vmatmul.mubr.msk.bf16.vlgmr.msra.gmra.mrb[108].mxu1 %vm229_vm2, %v3163_v6 }
0x2168   :  { %6406 = vmatpush3.bf16.xpose.msra.mxu0 %v3220_v3  ;;  %6407 = vmatprep.mubr.msk.bf16.mxu0 %vm7055_vm0, %v7054_v0 }
0x2169   :  { %6417 = vmatprep.subr.bf16.mxu0 %v7054_v0  ;;  %6413 = vmatprep.mubr.msk.bf16.mxu1 %vm7055_vm0, %v7054_v0 }
0x216f   :  { %6408 = vmatmul.mubr.msk.bf16.vlgmr.msra.gmra.mrb[92].mxu0 %vm229_vm2, %v3213_v4 }
0x2170   :  { %6419 = vmatprep.mubr.msk.bf16.mxu0 %vm7055_vm0, %v7054_v0 }
0x2232   :  { %v7857_v8 = vpop.f32.mrb[104].mxu1 }
0x2233   :  { %v6391_v9 = vpop.f32.mrb[105].mxu1 }
0x2234   :  { %v3110_v59 = vpop.f32.mrb[106].mxu1 }
0x2235   :  { %v6392_v12 = vpop.f32.mrb[107].mxu1 }
0x223a   :  { %v7859_v13 = vpop.f32.mrb[88].mxu0  ;;  %v3206_v14 = vpop.f32.mrb[108].mxu1 }
0x223b   :  { %v3161_v62 = vpack.c.bf16 %v7859_v13, %v7857_v8  ;;  %v3262_v15 = vmul.f32 0.35355338, %v3206_v14  ;;  %v6397_v17 = vpop.f32.mrb[89].mxu0  ;;  %v6403_v20 = vpop.f32.mrb[109].mxu1 }
0x223c   :  { %v3158_v21 = vpop.f32.mrb[90].mxu0  ;;  %v3209_v23 = vpop.f32.mrb[110].mxu1 }
0x223d   :  { %v6398_v24 = vpop.f32.mrb[91].mxu0  ;;  %v6404_v48 = vpop.f32.mrb[111].mxu1  ;;  %v3264_v43 = vsel %vm229_vm2, %v3262_v15, -inf }
0x223e   :  { %3265 = vmax.xlane.f32.xlu0 %v3264_v43 }
0x2242   :  { %v3256_v26 = vpop.f32.mrb[92].mxu0 }
0x2243   :  { %v3263_v27 = vmul.f32 0.35355338, %v3256_v26  ;;  %v6409_v16 = vpop.f32.mrb[93].mxu0 }
0x2244   :  { %v3259_v28 = vpop.f32.mrb[94].mxu0 }
0x2245   :  { %v6410_v29 = vpop.f32.mrb[95].mxu0  ;;  %v3267_v30 = vsel %vm229_vm2, %v3263_v27, -inf }
0x2246   :  { %3268 = vmax.xlane.f32.xlu1 %v3267_v30 }
0x2257   :  { %3288 = vrot.lane.b32.xlu1 %v7801_v22, %s7059_s20 }
0x225b   :  { %3481 = vrot.lane.b32.xlu1 %v7801_v22, %s7061_s1 }
0x225f   :  { %3531 = vrot.lane.b32.xlu1 %v7803_v25, %s7061_s1 }
0x2263   :  { %3529 = vrot.lane.b32.xlu1 %v7803_v25, %s7060_s3 }
0x22cb   :  { %v3266_v19 = vpop.xlane.xlu0 %3265 }
0x22cc   :  { %v3270_v31 = vsub.f32 %v3262_v15, %v3266_v19 }
0x22ce   :  { %v3272_v32 = vmul.f32 1.442695, %v3270_v31 }
0x22d0   :  { %6810 = vpow2.f32 %v3272_v32 }
0x22d3   :  { %v3269_v33 = vpop.xlane.xlu1 %3268 }
0x22d4   :  { %v3271_v7 = vsub.f32 %v3263_v27, %v3269_v33 }
0x22d6   :  { %v3274_v34 = vmul.f32 1.442695, %v3271_v7 }
0x22d7   :  { %v3289_v35 = vpop.permute.xlu1 %3288 }
0x22d8   :  { %6812 = vpow2.f32 %v3274_v34  ;;  %v3294_v36 = vsel %vm356_vm3, %v3289_v35, 0 }
0x22d9   :  { %6412 = vmatpush3.bf16.msra.mxu1 %v3294_v36 }
0x22da   :  { %v6811_v39 = vpop.eup %6810  ;;  %6423 = vmatprep.subr.bf16.mxu1 %v7054_v0 }
0x22db   :  { %v3276_v40 = vsel %vm229_vm2, %v6811_v39, 0.0  ;;  %v3482_v56 = vpop.permute.xlu1 %3481 }
0x22dc   :  { %3277 = vadd.xlane.f32.xlu0 %v3276_v40  ;;  %v3487_v9 = vsel %vm229_vm2, %v3482_v56, 0 }
0x22df   :  { %v3532_v57 = vpop.permute.xlu1 %3531 }
0x22e0   :  { %v3537_v58 = vsel %vm229_vm2, %v3532_v57, 0 }
0x22e2   :  { %v6813_v11 = vpop.eup %6812 }
0x22e3   :  { %v3279_v42 = vsel %vm229_vm2, %v6813_v11, 0.0  ;;  %v3530_v60 = vpop.permute.xlu1 %3529 }
0x22e4   :  { %3280 = vadd.xlane.f32.xlu0 %v3279_v42 }
0x22fa   :  { %3336 = vrot.lane.b32.xlu0 %v7803_v25, %s7059_s20 }
0x22fe   :  { %3479 = vrot.lane.b32.xlu0 %v7801_v22, %s7060_s3 }
0x2369   :  { %v3278_v44 = vpop.xlane.xlu0 %3277 }
0x236a   :  { %6814 = vrcp.f32 %v3278_v44 }
0x2371   :  { %v3281_v45 = vpop.xlane.xlu0 %3280 }
0x2372   :  { %6816 = vrcp.f32 %v3281_v45 }
0x2374   :  { %v6815_v46 = vpop.eup %6814 }
0x2375   :  { %v3284_v47 = vmul.f32 %v6815_v46, %v6811_v39  ;;  %v3337_v49 = vpop.permute.xlu0 %3336 }
0x2376   :  { %v3342_v50 = vsel %vm356_vm3, %v3337_v49, 0 }
0x2377   :  { %6418 = vmatpush3.bf16.msra.mxu0 %v3342_v50  ;;  %v3286_v52 = vpack.c.bf16 %v3284_v47, %v3284_v47 }
0x2378   :  { %6429 = vmatprep.subr.bf16.mxu0 %v7054_v0 }
0x2379   :  { %6414 = vmatmul.mubr.msk.bf16.vlgmr.msra.gmra.mrb[112].mxu1 %vm229_vm2, %v3286_v52  ;;  %v3480_v14 = vpop.permute.xlu0 %3479 }
0x237a   :  { %6425 = vmatprep.mubr.msk.bf16.mxu1 %vm7055_vm0, %v7054_v0  ;;  %6424 = vmatpush3.bf16.msra.mxu1 %v3389_v63 }
0x237b   :  { %6435 = vmatprep.subr.bf16.mxu1 %v7054_v0 }
0x237c   :  { %v6817_v53 = vpop.eup %6816 }
0x237d   :  { %v3285_v37 = vmul.f32 %v6817_v53, %v6813_v11 }
0x237f   :  { %v3287_v38 = vpack.c.bf16 %v3285_v37, %v3285_v37 }
0x2381   :  { %6420 = vmatmul.mubr.msk.bf16.vlgmr.msra.gmra.mrb[96].mxu0 %vm229_vm2, %v3287_v38 }
0x2382   :  { %6430 = vmatpush3.bf16.msra.mxu0 %v3436_v55  ;;  %6431 = vmatprep.mubr.msk.bf16.mxu0 %vm7055_vm0, %v7054_v0 }
0x2383   :  { %6441 = vmatprep.subr.bf16.mxu0 %v7054_v0 }
0x2389   :  { %6432 = vmatmul.mubr.msk.bf16.vlgmr.msra.gmra.mrb[100].mxu0 %vm229_vm2, %v3161_v62 }
0x238a   :  { %6443 = vmatprep.mubr.msk.bf16.mxu0 %vm7055_vm0, %v7054_v0 }
0x238b   :  { %6442 = vmatpush3.bf16.xpose.msra.mxu0 %v3537_v58 }
0x238c   :  { %6453 = vmatprep.subr.bf16.mxu0 %v7054_v0 }
0x2392   :  { %6444 = vmatmul.mubr.msk.bf16.vlgmr.msra.gmra.mrb[104].mxu0 %vm229_vm2, %v3530_v60 }
0x2393   :  { %6455 = vmatprep.mubr.msk.bf16.mxu0 %vm7055_vm0, %v7054_v0 }
0x244c   :  { %v3330_v1 = vpop.f32.mrb[112].mxu1 }
0x244d   :  { %v6415_v51 = vpop.f32.mrb[113].mxu1 }
0x244e   :  { %v3333_v2 = vpop.f32.mrb[114].mxu1 }
0x244f   :  { %v6416_v5 = vpop.f32.mrb[115].mxu1 }
0x2454   :  { %v3378_v6 = vpop.f32.mrb[96].mxu0 }
0x2455   :  { %v3384_v3 = vpack.c.bf16 %v3378_v6, %v3330_v1  ;;  %v6421_v4 = vpop.f32.mrb[97].mxu0  ;;  %v5762_v1 = vld [vmem:[%s8370_s30 + $0x18] sm:$0xf] }
0x2456   :  { %v3381_v8 = vpop.f32.mrb[98].mxu0  ;;  %v3706_v51 = vsel %vm356_vm3, %v5762_v1, 0 }
0x2457   :  { %v6422_v59 = vpop.f32.mrb[99].mxu0  ;;  %6426 = vmatmul.mubr.msk.bf16.vlgmr.msra.gmra.mrb[116].mxu1 %vm229_vm2, %v3384_v3 }
0x2458   :  { %6436 = vmatpush3.bf16.xpose.msra.mxu1 %v3487_v9  ;;  %6437 = vmatprep.mubr.msk.bf16.mxu1 %vm7055_vm0, %v7054_v0 }
0x2459   :  { %6447 = vmatprep.subr.bf16.mxu1 %v7054_v0 }
0x245c   :  { %v3472_v12 = vpop.f32.mrb[100].mxu0 }
0x245d   :  { %v6433_v13 = vpop.f32.mrb[101].mxu0 }
0x245e   :  { %v3475_v62 = vpop.f32.mrb[102].mxu0 }
0x245f   :  { %v6434_v15 = vpop.f32.mrb[103].mxu0  ;;  %6438 = vmatmul.mubr.msk.bf16.vlgmr.msra.gmra.mrb[120].mxu1 %vm229_vm2, %v3480_v14 }
0x2460   :  { %6449 = vmatprep.mubr.msk.bf16.mxu1 %vm7055_vm0, %v7054_v0 }
0x2465   :  { %v3573_v17 = vpop.f32.mrb[104].mxu0 }
0x2466   :  { %v3580_v20 = vmul.f32 0.35355338, %v3573_v17  ;;  %v6445_v21 = vpop.f32.mrb[105].mxu0 }
0x2467   :  { %v3576_v23 = vpop.f32.mrb[106].mxu0 }
0x2468   :  { %v6446_v24 = vpop.f32.mrb[107].mxu0  ;;  %v3584_v48 = vsel %vm229_vm2, %v3580_v20, -inf }
0x2469   :  { %3585 = vmax.xlane.f32.xlu1 %v3584_v48 }
0x247a   :  { %3605 = vrot.lane.b32.xlu1 %v7801_v22, %s7062_s13 }
0x247e   :  { %3753 = vrot.lane.b32.xlu1 %v7801_v22, %s7063_s21 }
0x2482   :  { %3803 = vrot.lane.b32.xlu1 %v7803_v25, %s7063_s21 }
0x2486   :  { %3801 = vrot.lane.b32.xlu1 %v7803_v25, %s8372_s4 }
0x24f6   :  { %v3586_v43 = vpop.xlane.xlu1 %3585 }
0x24f7   :  { %v3588_v16 = vsub.f32 %v3580_v20, %v3586_v43 }
0x24f9   :  { %v3591_v28 = vmul.f32 1.442695, %v3588_v16 }
0x24fa   :  { %v3606_v26 = vpop.permute.xlu1 %3605 }
0x24fb   :  { %v3611_v27 = vsel %vm356_vm3, %v3606_v26, 0  ;;  %6818 = vpow2.f32 %v3591_v28 }
0x24fc   :  { %6448 = vmatpush3.bf16.msra.mxu1 %v3611_v27 }
0x24fd   :  { %6459 = vmatprep.subr.bf16.mxu1 %v7054_v0 }
0x24fe   :  { %v3754_v57 = vpop.permute.xlu1 %3753 }
0x24ff   :  { %v3759_v60 = vsel %vm229_vm2, %v3754_v57, 0 }
0x2502   :  { %v3804_v4 = vpop.permute.xlu1 %3803 }
0x2503   :  { %v3809_v13 = vsel %vm229_vm2, %v3804_v4, 0 }
0x2505   :  { %v6819_v11 = vpop.eup %6818 }
0x2506   :  { %v3596_v42 = vsel %vm229_vm2, %v6819_v11, 0.0  ;;  %v3802_v24 = vpop.permute.xlu1 %3801 }
0x252a   :  { %v3425_v29 = vpop.f32.mrb[116].mxu1 }
0x252b   :  { %v7929_v30 = vadd.f32 %v3472_v12, %v3425_v29  ;;  %v6427_v19 = vpop.f32.mrb[117].mxu1 }
0x252c   :  { %v3428_v31 = vpop.f32.mrb[118].mxu1 }
0x252d   :  { %v7931_v32 = vadd.f32 %v3475_v62, %v3428_v31  ;;  %v6428_v33 = vpop.f32.mrb[119].mxu1 }
0x2532   :  { %v3523_v7 = vpop.f32.mrb[120].mxu1 }
0x2533   :  { %v3579_v34 = vmul.f32 0.35355338, %v3523_v7  ;;  %v6439_v35 = vpop.f32.mrb[121].mxu1 }
0x2534   :  { %v3526_v36 = vpop.f32.mrb[122].mxu1 }
0x2535   :  { %v6440_v39 = vpop.f32.mrb[123].mxu1  ;;  %v3581_v40 = vsel %vm229_vm2, %v3579_v34, -inf }
0x2536   :  { %3582 = vmax.xlane.f32.xlu0 %v3581_v40 }
0x253a   :  { %3597 = vadd.xlane.f32.xlu0 %v3596_v42 }
0x25c3   :  { %v3583_v44 = vpop.xlane.xlu0 %3582 }
0x25c4   :  { %v3587_v45 = vsub.f32 %v3579_v34, %v3583_v44 }
0x25c6   :  { %v3589_v46 = vmul.f32 1.442695, %v3587_v45 }
0x25c7   :  { %v3598_v50 = vpop.xlane.xlu0 %3597 }
0x25c8   :  { %6820 = vpow2.f32 %v3589_v46 }
0x25c9   :  { %6822 = vrcp.f32 %v3598_v50 }
0x25d2   :  { %v6821_v47 = vpop.eup %6820 }
0x25d3   :  { %v3593_v49 = vsel %vm229_vm2, %v6821_v47, 0.0  ;;  %v6823_v52 = vpop.eup %6822 }
0x25d4   :  { %3594 = vadd.xlane.f32.xlu0 %v3593_v49  ;;  %v3602_v54 = vmul.f32 %v6823_v52, %v6819_v11 }
0x25d6   :  { %v3604_v55 = vpack.c.bf16 %v3602_v54, %v3602_v54 }
0x25ea   :  { %3653 = vrot.lane.b32.xlu0 %v7803_v25, %s7062_s13 }
0x25ee   :  { %3751 = vrot.lane.b32.xlu0 %v7801_v22, %s8372_s4 }
0x2661   :  { %v3595_v53 = vpop.xlane.xlu0 %3594 }
0x2662   :  { %6824 = vrcp.f32 %v3595_v53  ;;  %v5763_v53 = vld [vmem:[%s8370_s30 + $0x1c] sm:$0xf] }
0x2663   :  { %v3978_v54 = vsel %vm356_vm3, %v5763_v53, 0 }
0x2665   :  { %v3654_v37 = vpop.permute.xlu0 %3653 }
0x2666   :  { %v3659_v38 = vsel %vm356_vm3, %v3654_v37, 0 }
0x2667   :  { %6454 = vmatpush3.bf16.msra.mxu0 %v3659_v38 }
0x2668   :  { %6465 = vmatprep.subr.bf16.mxu0 %v7054_v0 }
0x2669   :  { %v3752_v63 = vpop.permute.xlu0 %3751 }
0x266a   :  { %6456 = vmatmul.mubr.msk.bf16.vlgmr.msra.gmra.mrb[108].mxu0 %vm229_vm2, %v3604_v55 }
0x266b   :  { %6467 = vmatprep.mubr.msk.bf16.mxu0 %vm7055_vm0, %v7054_v0 }
0x266c   :  { %v6825_v56 = vpop.eup %6824 }
0x266d   :  { %v3601_v58 = vmul.f32 %v6825_v56, %v6821_v47 }
0x266f   :  { %v3603_v61 = vpack.c.bf16 %v3601_v58, %v3601_v58 }
0x2670   :  { %6466 = vmatpush3.bf16.xpose.msra.mxu0 %v3759_v60 }
0x2671   :  { %6450 = vmatmul.mubr.msk.bf16.vlgmr.msra.gmra.mrb[124].mxu1 %vm229_vm2, %v3603_v61  ;;  %6477 = vmatprep.subr.bf16.mxu0 %v7054_v0 }
0x2672   :  { %6461 = vmatprep.mubr.msk.bf16.mxu1 %vm7055_vm0, %v7054_v0  ;;  %6460 = vmatpush3.bf16.msra.mxu1 %v3706_v51 }
0x2673   :  { %6471 = vmatprep.subr.bf16.mxu1 %v7054_v0 }
0x2677   :  { %6468 = vmatmul.mubr.msk.bf16.vlgmr.msra.gmra.mrb[112].mxu0 %vm229_vm2, %v3752_v63 }
0x2678   :  { %6479 = vmatprep.mubr.msk.bf16.mxu0 %vm7055_vm0, %v7054_v0 }
0x273d   :  { %v3695_v2 = vpop.f32.mrb[108].mxu0 }
0x273e   :  { %v6457_v5 = vpop.f32.mrb[109].mxu0 }
0x273f   :  { %v3698_v6 = vpop.f32.mrb[110].mxu0 }
0x2740   :  { %v6458_v3 = vpop.f32.mrb[111].mxu0 }
0x2741   :  { %v5785_v3 = vld [vmem:[%s8371_s22 + $0x1] ss:$0 sm:$0xff] }
0x2744   :  { %v3647_v8 = vpop.f32.mrb[124].mxu1 }
0x2745   :  { %v3701_v9 = vpack.c.bf16 %v3695_v2, %v3647_v8  ;;  %v6451_v59 = vpop.f32.mrb[125].mxu1 }
0x2746   :  { %v3650_v12 = vpop.f32.mrb[126].mxu1 }
0x2747   :  { %v6452_v14 = vpop.f32.mrb[127].mxu1  ;;  %6462 = vmatmul.mubr.msk.bf16.vlgmr.msra.gmra.mrb[128].mxu1 %vm229_vm2, %v3701_v9 }
0x2748   :  { %6472 = vmatpush3.bf16.xpose.msra.mxu1 %v3809_v13  ;;  %6473 = vmatprep.mubr.msk.bf16.mxu1 %vm7055_vm0, %v7054_v0 }
0x2749   :  { %6483 = vmatprep.subr.bf16.mxu1 %v7054_v0 }
0x274a   :  { %v3795_v62 = vpop.f32.mrb[112].mxu0 }
0x274b   :  { %v3851_v15 = vmul.f32 0.35355338, %v3795_v62  ;;  %v6469_v17 = vpop.f32.mrb[113].mxu0 }
0x274c   :  { %v3798_v20 = vpop.f32.mrb[114].mxu0 }
0x274d   :  { %v6470_v21 = vpop.f32.mrb[115].mxu0  ;;  %v3853_v23 = vsel %vm229_vm2, %v3851_v15, -inf }
0x274e   :  { %3854 = vmax.xlane.f32.xlu0 %v3853_v23 }
0x274f   :  { %6474 = vmatmul.mubr.msk.bf16.vlgmr.msra.gmra.mrb[132].mxu1 %vm229_vm2, %v3802_v24 }
0x2750   :  { %6485 = vmatprep.mubr.msk.bf16.mxu1 %vm7055_vm0, %v7054_v0 }
0x27db   :  { %v3855_v48 = vpop.xlane.xlu0 %3854 }
0x27dc   :  { %v3859_v43 = vsub.f32 %v3851_v15, %v3855_v48 }
0x27de   :  { %v3861_v26 = vmul.f32 1.442695, %v3859_v43 }
0x27e0   :  { %6826 = vpow2.f32 %v3861_v26  ;;  %v6712_v26 = vld [vmem:[%s8324_s7 + $0x10] sm:$0xff]  }
0x27ea   :  { %v6827_v27 = vpop.eup %6826 }
0x27eb   :  { %v3865_v16 = vsel %vm229_vm2, %v6827_v27, 0.0 }
0x27ec   :  { %3866 = vadd.xlane.f32.xlu0 %v3865_v16 }
0x281a   :  { %v3742_v28 = vpop.f32.mrb[128].mxu1 }
0x281b   :  { %v3749_v29 = vadd.f32 %v3742_v28, %v7929_v30  ;;  %v6463_v19 = vpop.f32.mrb[129].mxu1 }
0x281c   :  { %v3745_v31 = vpop.f32.mrb[130].mxu1 }
0x281d   :  { %v3750_v33 = vadd.f32 %v3745_v31, %v7931_v32  ;;  %v6464_v7 = vpop.f32.mrb[131].mxu1 }
0x2822   :  { %v3845_v34 = vpop.f32.mrb[132].mxu1 }
0x2823   :  { %v3852_v35 = vmul.f32 0.35355338, %v3845_v34  ;;  %v6475_v36 = vpop.f32.mrb[133].mxu1 }
0x2824   :  { %v3848_v39 = vpop.f32.mrb[134].mxu1 }
0x2825   :  { %v6476_v40 = vpop.f32.mrb[135].mxu1  ;;  %v3856_v11 = vsel %vm229_vm2, %v3852_v35, -inf }
0x2826   :  { %3857 = vmax.xlane.f32.xlu1 %v3856_v11 }
0x2837   :  { %3877 = vrot.lane.b32.xlu1 %v7801_v22, %s8373_s25 }
0x2879   :  { %v3867_v42 = vpop.xlane.xlu0 %3866 }
0x287a   :  { %6828 = vrcp.f32 %v3867_v42 }
0x2884   :  { %v6829_v44 = vpop.eup %6828 }
0x2885   :  { %v3873_v46 = vmul.f32 %v6829_v44, %v6827_v27  ;;  %v6713_v27 = vld [vmem:[%s8324_s7 + $0x18] sm:$0xff]  }
0x2887   :  { %v3875_v50 = vpack.c.bf16 %v3873_v46, %v3873_v46 }
0x28b3   :  { %v3858_v30 = vpop.xlane.xlu1 %3857 }
0x28b4   :  { %v3860_v45 = vsub.f32 %v3852_v35, %v3858_v30  ;;  %v5787_v30 = vld [vmem:[#allocation7 + $0x1] ss:$0 sm:$0xff] }
0x28b6   :  { %v3863_v47 = vmul.f32 1.442695, %v3860_v45 }
0x28b7   :  { %v3878_v32 = vpop.permute.xlu1 %3877 }
0x28b8   :  { %6830 = vpow2.f32 %v3863_v47  ;;  %v3883_v49 = vsel %vm356_vm3, %v3878_v32, 0 }
0x28b9   :  { %6478 = vmatpush3.bf16.msra.mxu0 %v3883_v49 }
0x28ba   :  { %6489 = vmatprep.subr.bf16.mxu0 %v7054_v0 }
0x28bc   :  { %6480 = vmatmul.mubr.msk.bf16.vlgmr.msra.gmra.mrb[116].mxu0 %vm229_vm2, %v3875_v50  ;;  %v5788_v50 = vld [vmem:[%s8323_s6 + $0x1] ss:$0 sm:$0xff] }
0x28bd   :  { %6491 = vmatprep.mubr.msk.bf16.mxu0 %vm7055_vm0, %v7054_v0  ;;  %6490 = vmatpush3.bf16.msra.mxu0 %v3978_v54 }
0x28be   :  { %6503 = vmatprep.subr.bf16.mxu0 %v7054_v0 }
0x28c2   :  { %v6831_v22 = vpop.eup %6830 }
0x28c3   :  { %v3868_v52 = vsel %vm229_vm2, %v6831_v22, 0.0 }
0x28c4   :  { %3869 = vadd.xlane.f32.xlu0 %v3868_v52 }
0x28da   :  { %3925 = vrot.lane.b32.xlu0 %v7803_v25, %s8373_s25 }
0x2951   :  { %v3870_v37 = vpop.xlane.xlu0 %3869 }
0x2952   :  { %6832 = vrcp.f32 %v3870_v37 }
0x2955   :  { %v3926_v38 = vpop.permute.xlu0 %3925 }
0x2956   :  { %v3931_v55 = vsel %vm356_vm3, %v3926_v38, 0 }
0x2957   :  { %6484 = vmatpush3.bf16.msra.mxu1 %v3931_v55 }
0x2958   :  { %6495 = vmatprep.subr.bf16.mxu1 %v7054_v0 }
0x295c   :  { %v6833_v56 = vpop.eup %6832 }
0x295d   :  { %v3874_v57 = vmul.f32 %v6833_v56, %v6831_v22 }
0x295f   :  { %v3876_v25 = vpack.c.bf16 %v3874_v57, %v3874_v57 }
0x2961   :  { %6486 = vmatmul.mubr.msk.bf16.vlgmr.msra.gmra.mrb[136].mxu1 %vm229_vm2, %v3876_v25 }
0x2962   :  { %6499 = vmatprep.mubr.msk.bf16.mxu1 %vm7055_vm0, %v7054_v0  ;;  %6496 = vmatpush3.bf16.msra.mxu1 %v6712_v26 }
0x2963   :  { %6497 = vmatprep.subr.bf16.mxu1 %v7054_v0 }
0x2966   :  { %6498 = vmatpush3.bf16.msra.mxu1 %v6713_v27 }
0x2967   :  { %6511 = vmatprep.subr.bf16.mxu1 %v7054_v0 }
0x298f   :  { %v3919_v58 = vpop.f32.mrb[116].mxu0 }
0x2990   :  { %v6481_v60 = vpop.f32.mrb[117].mxu0 }
0x2991   :  { %v3922_v61 = vpop.f32.mrb[118].mxu0 }
0x2992   :  { %v6482_v63 = vpop.f32.mrb[119].mxu0 }
0x2a34   :  { %v3967_v1 = vpop.f32.mrb[136].mxu1 }
0x2a35   :  { %v3973_v51 = vpack.c.bf16 %v3967_v1, %v3919_v58  ;;  %v6487_v2 = vpop.f32.mrb[137].mxu1 }
0x2a36   :  { %v3970_v5 = vpop.f32.mrb[138].mxu1 }
0x2a37   :  { %v6488_v6 = vpop.f32.mrb[139].mxu1  ;;  %6492 = vmatmul.mubr.msk.bf16.vlgmr.msra.gmra.mrb[120].mxu0 %vm229_vm2, %v3973_v51 }
0x2a38   :  { %6507 = vmatprep.mubr.msk.bf16.mxu0 %vm7055_vm0, %v7054_v0 }
0x2b0a   :  { %v4014_v4 = vpop.f32.mrb[120].mxu0 }
0x2b0b   :  { %v4021_v8 = vadd.f32 %v4014_v4, %v3749_v29  ;;  %v6493_v9 = vpop.f32.mrb[121].mxu0 }
0x2b0c   :  { %v4017_v59 = vpop.f32.mrb[122].mxu0 }
0x2b0d   :  { %v4029_v12 = vadd.f32 %v5785_v3, %v4021_v8  ;;  %v4022_v13 = vadd.f32 %v4017_v59, %v3750_v33  ;;  %v6494_v14 = vpop.f32.mrb[123].mxu0 }
0x2b0f   :  { %v4031_v62 = vadd.f32 %v4029_v12, %v7792_v41  ;;  %v4030_v15 = vadd.f32 %v5785_v3, %v4022_v13  ;;  %v6710_v41 = vld [vmem:[%s8325_s8 + $0x10] sm:$0xff]  }
0x2b10   :  { %6504 = vmatpush3.bf16.msra.mxu0 %v6710_v41 }
0x2b11   :  { %v4032_v17 = vadd.f32 %v4030_v15, %v7794_v18  ;;  %v4037_v20 = vsel %vm174_vm1, %v4031_v62, 0.0  ;;  %v4045_v21 = vmul.f32 %v4031_v62, %v4031_v62  ;;  %6505 = vmatprep.subr.bf16.mxu0 %v7054_v0  ;;  %v6711_v18 = vld [vmem:[%s8325_s8 + $0x18] sm:$0xff]  }
0x2b12   :  { %4038 = vadd.xlane.f32.xlu1 %v4037_v20 }
0x2b13   :  { %v4040_v23 = vsel %vm174_vm1, %v4032_v17, 0.0  ;;  %v4046_v24 = vmul.f32 %v4032_v17, %v4032_v17  ;;  %v4047_v48 = vsel %vm174_vm1, %v4045_v21, 0.0 }
0x2b14   :  { %4041 = vadd.xlane.f32.xlu0 %v4040_v23  ;;  %6506 = vmatpush3.bf16.msra.mxu0 %v6711_v18 }
0x2b15   :  { %v4050_v43 = vsel %vm174_vm1, %v4046_v24, 0.0  ;;  %6517 = vmatprep.subr.bf16.mxu0 %v7054_v0 }
0x2b16   :  { %4048 = vadd.xlane.f32.xlu1 %v4047_v48 }
0x2b17   :  { %6508 = vmatmul.mubr.msk.bf16.vlgmr.msra.gmra.mrb[124].mxu0 %vm174_vm1, %v7498_v10 }
0x2b18   :  { %4051 = vadd.xlane.f32.xlu0 %v4050_v43  ;;  %6519 = vmatprep.mubr.msk.bf16.mxu0 %vm7055_vm0, %v7054_v0 }
0x2b9f   :  { %v4039_v16 = vpop.xlane.xlu1 %4038 }
0x2ba0   :  { %v4043_v28 = vmul.f32 0.03125, %v4039_v16 }
0x2ba1   :  { %v4042_v10 = vpop.xlane.xlu0 %4041 }
0x2ba2   :  { %v4044_v29 = vmul.f32 0.03125, %v4042_v10  ;;  %v4055_v31 = vmul.f32 %v4043_v28, %v4043_v28  ;;  %v4059_v42 = vsub.f32 %v4031_v62, %v4043_v28 }
0x2ba3   :  { %v4049_v19 = vpop.xlane.xlu1 %4048 }
0x2ba4   :  { %v4053_v33 = vmul.f32 0.03125, %v4049_v19  ;;  %v4056_v34 = vmul.f32 %v4044_v29, %v4044_v29  ;;  %v4060_v45 = vsub.f32 %v4032_v17, %v4044_v29 }
0x2ba5   :  { %v4052_v7 = vpop.xlane.xlu0 %4051 }
0x2ba6   :  { %v4057_v35 = vsub.f32 %v4053_v33, %v4055_v31  ;;  %v4054_v36 = vmul.f32 0.03125, %v4052_v7 }
0x2ba8   :  { %v4061_v39 = vadd.f32 1e-05, %v4057_v35  ;;  %v4058_v40 = vsub.f32 %v4054_v36, %v4056_v34 }
0x2baa   :  { %6834 = vrsqrt.f32 %v4061_v39  ;;  %v4062_v11 = vadd.f32 1e-05, %v4058_v40 }
0x2bac   :  { %6836 = vrsqrt.f32 %v4062_v11 }
0x2bb4   :  { %v6835_v44 = vpop.eup %6834 }
0x2bb5   :  { %v4065_v46 = vmul.f32 %v6835_v44, %v4059_v42 }
0x2bb6   :  { %v6837_v47 = vpop.eup %6836 }
0x2bb7   :  { %v4066_v32 = vmul.f32 %v6837_v47, %v4060_v45  ;;  %v4073_v49 = vmul.f32 %v5787_v30, %v4065_v46 }
0x2bb9   :  { %v4074_v22 = vmul.f32 %v5787_v30, %v4066_v32  ;;  %v8026_v52 = vadd.f32 %v5788_v50, %v4073_v49 }
0x2bbb   :  { %v8028_v53 = vadd.f32 %v5788_v50, %v4074_v22 }
0x2bbd   :  { %v4083_v54 = vpack.c.bf16 %v8028_v53, %v8026_v52 }
0x2bbf   :  { %6500 = vmatmul.mubr.msk.bf16.vlgmr.msra.gmra.mrb[140].mxu1 %vm174_vm1, %v4083_v54 }
0x2bc0   :  { %6513 = vmatprep.mubr.msk.bf16.mxu1 %vm7055_vm0, %v7054_v0 }
0x2bea   :  { %v4196_v37 = vpop.f32.mrb[124].mxu0 }
0x2beb   :  { %v8035_v38 = vpack.c.bf16 %v4196_v37, %v4196_v37  ;;  %v6509_v55 = vpop.f32.mrb[125].mxu0 }
0x2bec   :  { %v4199_v56 = vpop.f32.mrb[126].mxu0 }
0x2bed   :  { %v8037_v57 = vpack.c.bf16 %v4199_v56, %v4199_v56  ;;  %v6510_v25 = vpop.f32.mrb[127].mxu0  ;;  %v4218_v58 = vsel %vm229_vm2, %v8035_v38, 0 }
0x2bee   :  { %6512 = vmatpush3.bf16.xpose.msra.mxu1 %v4218_v58 }
0x2bef   :  { %v4264_v60 = vsel %vm229_vm2, %v8037_v57, 0  ;;  %6523 = vmatprep.subr.bf16.mxu1 %v7054_v0 }
0x2bf0   :  { %6518 = vmatpush3.bf16.xpose.msra.mxu0 %v4264_v60 }
0x2bf1   :  { %6529 = vmatprep.subr.bf16.mxu0 %v7054_v0 }
0x2c92   :  { %v4138_v61 = vpop.f32.mrb[140].mxu1 }
0x2c93   :  { %v8045_v63 = vpack.c.bf16 %v4138_v61, %v4138_v61  ;;  %v6501_v1 = vpop.f32.mrb[141].mxu1 }
0x2c94   :  { %v4141_v51 = vpop.f32.mrb[142].mxu1 }
0x2c95   :  { %v8047_v2 = vpack.c.bf16 %v4141_v51, %v4141_v51  ;;  %v6502_v5 = vpop.f32.mrb[143].mxu1  ;;  %6514 = vmatmul.mubr.msk.bf16.vlgmr.msra.gmra.mrb[144].mxu1 %vm229_vm2, %v8045_v63 }
0x2c96   :  { %6525 = vmatprep.mubr.msk.bf16.mxu1 %vm7055_vm0, %v7054_v0 }
0x2c97   :  { %6520 = vmatmul.mubr.msk.bf16.vlgmr.msra.gmra.mrb[128].mxu0 %vm229_vm2, %v8047_v2 }
0x2c98   :  { %6531 = vmatprep.mubr.msk.bf16.mxu0 %vm7055_vm0, %v7054_v0 }
0x2d68   :  { %v4254_v6 = vpop.f32.mrb[144].mxu1 }
0x2d69   :  { %v4306_v3 = vmul.f32 0.35355338, %v4254_v6  ;;  %v6515_v4 = vpop.f32.mrb[145].mxu1 }
0x2d6a   :  { %v4257_v8 = vpop.f32.mrb[146].mxu1  ;;  %v4300_v9 = vpop.f32.mrb[128].mxu0 }
0x2d6b   :  { %v4307_v59 = vmul.f32 0.35355338, %v4300_v9  ;;  %v6516_v12 = vpop.f32.mrb[147].mxu1  ;;  %v6521_v13 = vpop.f32.mrb[129].mxu0  ;;  %v4308_v14 = vsel %vm229_vm2, %v4306_v3, -inf }
0x2d6c   :  { %v4303_v62 = vpop.f32.mrb[130].mxu0  ;;  %4309 = vmax.xlane.f32.xlu1 %v4308_v14 }
0x2d6d   :  { %v6522_v15 = vpop.f32.mrb[131].mxu0  ;;  %v4311_v17 = vsel %vm229_vm2, %v4307_v59, -inf }
0x2d6e   :  { %4312 = vmax.xlane.f32.xlu0 %v4311_v17 }
0x2d7d   :  { %4333 = vrot.lane.b32.xlu1 %v8035_v38, %s7056_s28 }
0x2df9   :  { %v4310_v20 = vpop.xlane.xlu1 %4309 }
0x2dfa   :  { %v4314_v21 = vsub.f32 %v4306_v3, %v4310_v20 }
0x2dfb   :  { %v4313_v23 = vpop.xlane.xlu0 %4312 }
0x2dfc   :  { %v4316_v24 = vmul.f32 1.442695, %v4314_v21  ;;  %v4315_v48 = vsub.f32 %v4307_v59, %v4313_v23 }
0x2dfd   :  { %v4334_v43 = vpop.permute.xlu1 %4333 }
0x2dfe   :  { %6838 = vpow2.f32 %v4316_v24  ;;  %v4318_v41 = vmul.f32 1.442695, %v4315_v48  ;;  %v4339_v18 = vsel %vm356_vm3, %v4334_v43, 0 }
0x2dff   :  { %6524 = vmatpush3.bf16.msra.mxu1 %v4339_v18 }
0x2e00   :  { %6840 = vpow2.f32 %v4318_v41  ;;  %6535 = vmatprep.subr.bf16.mxu1 %v7054_v0 }
0x2e08   :  { %v6839_v26 = vpop.eup %6838 }
0x2e09   :  { %v4320_v27 = vsel %vm229_vm2, %v6839_v26, 0.0 }
0x2e0a   :  { %v6841_v16 = vpop.eup %6840  ;;  %4321 = vadd.xlane.f32.xlu1 %v4320_v27  ;;  %v5804_v27 = vld [vmem:[%s8326_s9 + $0x14] sm:$0xf] }
0x2e0b   :  { %v4323_v28 = vsel %vm229_vm2, %v6841_v16, 0.0 }
0x2e0c   :  { %4324 = vadd.xlane.f32.xlu0 %v4323_v28 }
0x2e1b   :  { %4434 = vrot.lane.b32.xlu1 %v8035_v38, %s7058_s24 }
0x2e1f   :  { %4485 = vrot.lane.b32.xlu1 %v8037_v57, %s7058_s24 }
0x2e22   :  { %4382 = vrot.lane.b32.xlu0 %v8037_v57, %s7056_s28 }
0x2e23   :  { %4483 = vrot.lane.b32.xlu1 %v8047_v2, %s7058_s24 }
0x2e26   :  { %4432 = vrot.lane.b32.xlu0 %v8045_v63, %s7058_s24 }
0x2e97   :  { %v4322_v10 = vpop.xlane.xlu1 %4321 }
0x2e98   :  { %6842 = vrcp.f32 %v4322_v10  ;;  %v4660_v10 = vsel %vm356_vm3, %v5804_v27, 0 }
0x2e99   :  { %v4325_v29 = vpop.xlane.xlu0 %4324 }
0x2e9a   :  { %6844 = vrcp.f32 %v4325_v29 }
0x2e9b   :  { %v4435_v33 = vpop.permute.xlu1 %4434 }
0x2e9c   :  { %v4440_v11 = vsel %vm229_vm2, %v4435_v33, 0 }
0x2e9d   :  { %v4383_v19 = vpop.permute.xlu0 %4382 }
0x2e9e   :  { %v4388_v31 = vsel %vm356_vm3, %v4383_v19, 0  ;;  %v5803_v19 = vld [vmem:[%s8326_s9 + $0x10] sm:$0xf] }
0x2e9f   :  { %6530 = vmatpush3.bf16.msra.mxu0 %v4388_v31  ;;  %v4486_v40 = vpop.permute.xlu1 %4485 }
0x2ea0   :  { %6541 = vmatprep.subr.bf16.mxu0 %v7054_v0  ;;  %v4491_v44 = vsel %vm229_vm2, %v4486_v40, 0 }
0x2ea1   :  { %v4433_v30 = vpop.permute.xlu0 %4432 }
0x2ea2   :  { %v6843_v7 = vpop.eup %6842 }
0x2ea3   :  { %v4328_v34 = vmul.f32 %v6843_v7, %v6839_v26  ;;  %v4484_v45 = vpop.permute.xlu1 %4483  ;;  %v4707_v7 = vsel %vm356_vm3, %v5803_v19, 0 }
0x2ea4   :  { %v6845_v35 = vpop.eup %6844 }
0x2ea5   :  { %v4329_v36 = vmul.f32 %v6845_v35, %v6841_v16  ;;  %v4330_v39 = vpack.c.bf16 %v4328_v34, %v4328_v34 }
0x2ea7   :  { %6526 = vmatmul.mubr.msk.bf16.vlgmr.msra.gmra.mrb[148].mxu1 %vm229_vm2, %v4330_v39  ;;  %v4331_v42 = vpack.c.bf16 %v4329_v36, %v4329_v36 }
0x2ea8   :  { %6536 = vmatpush3.bf16.xpose.msra.mxu1 %v4440_v11  ;;  %6537 = vmatprep.mubr.msk.bf16.mxu1 %vm7055_vm0, %v7054_v0 }
0x2ea9   :  { %6532 = vmatmul.mubr.msk.bf16.vlgmr.msra.gmra.mrb[132].mxu0 %vm229_vm2, %v4331_v42  ;;  %6547 = vmatprep.subr.bf16.mxu1 %v7054_v0 }
0x2eaa   :  { %6542 = vmatpush3.bf16.xpose.msra.mxu0 %v4491_v44  ;;  %6543 = vmatprep.mubr.msk.bf16.mxu0 %vm7055_vm0, %v7054_v0 }
0x2eab   :  { %6553 = vmatprep.subr.bf16.mxu0 %v7054_v0 }
0x2eaf   :  { %6538 = vmatmul.mubr.msk.bf16.vlgmr.msra.gmra.mrb[152].mxu1 %vm229_vm2, %v4433_v30 }
0x2eb0   :  { %6549 = vmatprep.mubr.msk.bf16.mxu1 %vm7055_vm0, %v7054_v0 }
0x2eb1   :  { %6544 = vmatmul.mubr.msk.bf16.vlgmr.msra.gmra.mrb[136].mxu0 %vm229_vm2, %v4484_v45 }
0x2eb2   :  { %6555 = vmatprep.mubr.msk.bf16.mxu0 %vm7055_vm0, %v7054_v0 }
0x2f7a   :  { %v8093_v46 = vpop.f32.mrb[148].mxu1 }
0x2f7b   :  { %v6527_v47 = vpop.f32.mrb[149].mxu1 }
0x2f7c   :  { %v4378_v32 = vpop.f32.mrb[150].mxu1  ;;  %v8095_v49 = vpop.f32.mrb[132].mxu0 }
0x2f7d   :  { %v4430_v50 = vpack.c.bf16 %v8095_v49, %v8093_v46  ;;  %v6528_v22 = vpop.f32.mrb[151].mxu1  ;;  %v6533_v54 = vpop.f32.mrb[133].mxu0 }
0x2f7e   :  { %v4427_v37 = vpop.f32.mrb[134].mxu0 }
0x2f7f   :  { %v6534_v55 = vpop.f32.mrb[135].mxu0 }
0x2f82   :  { %v4476_v56 = vpop.f32.mrb[152].mxu1 }
0x2f83   :  { %v4533_v25 = vmul.f32 0.35355338, %v4476_v56  ;;  %v6539_v58 = vpop.f32.mrb[153].mxu1 }
0x2f84   :  { %v4479_v60 = vpop.f32.mrb[154].mxu1  ;;  %v4527_v61 = vpop.f32.mrb[136].mxu0 }
0x2f85   :  { %v4534_v1 = vmul.f32 0.35355338, %v4527_v61  ;;  %v6540_v51 = vpop.f32.mrb[155].mxu1  ;;  %v6545_v5 = vpop.f32.mrb[137].mxu0  ;;  %v4535_v6 = vsel %vm229_vm2, %v4533_v25, -inf }
0x2f86   :  { %v4530_v3 = vpop.f32.mrb[138].mxu0  ;;  %4536 = vmax.xlane.f32.xlu0 %v4535_v6 }
0x2f87   :  { %v6546_v4 = vpop.f32.mrb[139].mxu0  ;;  %v4538_v8 = vsel %vm229_vm2, %v4534_v1, -inf }
0x2f88   :  { %4539 = vmax.xlane.f32.xlu1 %v4538_v8 }
0x2f99   :  { %4559 = vrot.lane.b32.xlu1 %v8035_v38, %s7057_s26 }
0x2f9d   :  { %4752 = vrot.lane.b32.xlu1 %v8035_v38, %s7060_s3 }
0x2fa1   :  { %4802 = vrot.lane.b32.xlu1 %v8037_v57, %s7060_s3 }
0x2fa5   :  { %4800 = vrot.lane.b32.xlu1 %v8047_v2, %s7060_s3 }
0x3013   :  { %v4537_v9 = vpop.xlane.xlu0 %4536 }
0x3014   :  { %v4541_v59 = vsub.f32 %v4533_v25, %v4537_v9 }
0x3015   :  { %v4540_v12 = vpop.xlane.xlu1 %4539 }
0x3016   :  { %v4543_v13 = vmul.f32 1.442695, %v4541_v59  ;;  %v4542_v14 = vsub.f32 %v4534_v1, %v4540_v12 }
0x3018   :  { %6846 = vpow2.f32 %v4543_v13  ;;  %v4545_v62 = vmul.f32 1.442695, %v4542_v14 }
0x3019   :  { %v4560_v15 = vpop.permute.xlu1 %4559 }
0x301a   :  { %6848 = vpow2.f32 %v4545_v62  ;;  %v4565_v17 = vsel %vm356_vm3, %v4560_v15, 0 }
0x301b   :  { %6548 = vmatpush3.bf16.msra.mxu1 %v4565_v17 }
0x301c   :  { %6559 = vmatprep.subr.bf16.mxu1 %v7054_v0 }
0x301d   :  { %v4753_v34 = vpop.permute.xlu1 %4752 }
0x301e   :  { %v4758_v32 = vsel %vm229_vm2, %v4753_v34, 0 }
0x3021   :  { %v4803_v35 = vpop.permute.xlu1 %4802 }
0x3022   :  { %v6847_v20 = vpop.eup %6846  ;;  %v4808_v36 = vsel %vm229_vm2, %v4803_v35, 0 }
0x3023   :  { %v4547_v21 = vsel %vm229_vm2, %v6847_v20, 0.0 }
0x3024   :  { %v6849_v23 = vpop.eup %6848  ;;  %4548 = vadd.xlane.f32.xlu0 %v4547_v21 }
0x3025   :  { %v4550_v24 = vsel %vm229_vm2, %v6849_v23, 0.0  ;;  %v4801_v39 = vpop.permute.xlu1 %4800 }
0x3028   :  { %4551 = vadd.xlane.f32.xlu0 %v4550_v24 }
0x303e   :  { %4607 = vrot.lane.b32.xlu0 %v8037_v57, %s7057_s26 }
0x3042   :  { %4750 = vrot.lane.b32.xlu0 %v8045_v63, %s7060_s3 }
0x30b1   :  { %v4549_v48 = vpop.xlane.xlu0 %4548 }
0x30b2   :  { %6850 = vrcp.f32 %v4549_v48 }
0x30b5   :  { %v4552_v43 = vpop.xlane.xlu0 %4551 }
0x30b6   :  { %6852 = vrcp.f32 %v4552_v43 }
0x30b9   :  { %v4608_v41 = vpop.permute.xlu0 %4607 }
0x30ba   :  { %v4613_v18 = vsel %vm356_vm3, %v4608_v41, 0 }
0x30bb   :  { %6554 = vmatpush3.bf16.msra.mxu0 %v4613_v18 }
0x30bc   :  { %v6851_v26 = vpop.eup %6850  ;;  %6565 = vmatprep.subr.bf16.mxu0 %v7054_v0 }
0x30bd   :  { %v4555_v16 = vmul.f32 %v6851_v26, %v6847_v20  ;;  %v4751_v54 = vpop.permute.xlu0 %4750 }
0x30bf   :  { %v4557_v28 = vpack.c.bf16 %v4555_v16, %v4555_v16 }
0x30c0   :  { %v6853_v29 = vpop.eup %6852 }
0x30c1   :  { %v4556_v31 = vmul.f32 %v6853_v29, %v6849_v23  ;;  %6550 = vmatmul.mubr.msk.bf16.vlgmr.msra.gmra.mrb[156].mxu1 %vm229_vm2, %v4557_v28 }
0x30c2   :  { %6560 = vmatpush3.bf16.msra.mxu1 %v4660_v10  ;;  %6561 = vmatprep.mubr.msk.bf16.mxu1 %vm7055_vm0, %v7054_v0 }
0x30c3   :  { %v4558_v33 = vpack.c.bf16 %v4556_v31, %v4556_v31  ;;  %6571 = vmatprep.subr.bf16.mxu1 %v7054_v0 }
0x30c5   :  { %6556 = vmatmul.mubr.msk.bf16.vlgmr.msra.gmra.mrb[140].mxu0 %vm229_vm2, %v4558_v33 }
0x30c6   :  { %6566 = vmatpush3.bf16.msra.mxu0 %v4707_v7  ;;  %6567 = vmatprep.mubr.msk.bf16.mxu0 %vm7055_vm0, %v7054_v0 }
0x30c7   :  { %6577 = vmatprep.subr.bf16.mxu0 %v7054_v0 }
0x30cd   :  { %6568 = vmatmul.mubr.msk.bf16.vlgmr.msra.gmra.mrb[144].mxu0 %vm229_vm2, %v4430_v50 }
0x30ce   :  { %6579 = vmatprep.mubr.msk.bf16.mxu0 %vm7055_vm0, %v7054_v0 }
0x30cf   :  { %6578 = vmatpush3.bf16.xpose.msra.mxu0 %v4808_v36 }
0x30d0   :  { %6589 = vmatprep.subr.bf16.mxu0 %v7054_v0 }
0x30d6   :  { %6580 = vmatmul.mubr.msk.bf16.vlgmr.msra.gmra.mrb[148].mxu0 %vm229_vm2, %v4801_v39  ;;  %v5805_v39 = vld [vmem:[%s8326_s9 + $0x18] sm:$0xf] }
0x30d7   :  { %6591 = vmatprep.mubr.msk.bf16.mxu0 %vm7055_vm0, %v7054_v0 }
0x3194   :  { %v4601_v40 = vpop.f32.mrb[156].mxu1 }
0x3195   :  { %v6551_v11 = vpop.f32.mrb[157].mxu1 }
0x3196   :  { %v4604_v42 = vpop.f32.mrb[158].mxu1 }
0x3197   :  { %v6552_v44 = vpop.f32.mrb[159].mxu1 }
0x3198   :  { %v4649_v30 = vpop.f32.mrb[140].mxu0 }
0x3199   :  { %v4655_v45 = vpack.c.bf16 %v4649_v30, %v4601_v40  ;;  %v6557_v46 = vpop.f32.mrb[141].mxu0  ;;  %v4977_v40 = vsel %vm356_vm3, %v5805_v39, 0 }
0x319a   :  { %v4652_v47 = vpop.f32.mrb[142].mxu0 }
0x319b   :  { %v6558_v49 = vpop.f32.mrb[143].mxu0  ;;  %6562 = vmatmul.mubr.msk.bf16.vlgmr.msra.gmra.mrb[160].mxu1 %vm229_vm2, %v4655_v45 }
0x319c   :  { %6572 = vmatpush3.bf16.xpose.msra.mxu1 %v4758_v32  ;;  %6573 = vmatprep.mubr.msk.bf16.mxu1 %vm7055_vm0, %v7054_v0 }
0x319d   :  { %6583 = vmatprep.subr.bf16.mxu1 %v7054_v0 }
0x31a0   :  { %v4743_v50 = vpop.f32.mrb[144].mxu0 }
0x31a1   :  { %v6569_v22 = vpop.f32.mrb[145].mxu0 }
0x31a2   :  { %v4746_v37 = vpop.f32.mrb[146].mxu0 }
0x31a3   :  { %v6570_v55 = vpop.f32.mrb[147].mxu0  ;;  %6574 = vmatmul.mubr.msk.bf16.vlgmr.msra.gmra.mrb[164].mxu1 %vm229_vm2, %v4751_v54 }
0x31a4   :  { %6585 = vmatprep.mubr.msk.bf16.mxu1 %vm7055_vm0, %v7054_v0 }
0x31a9   :  { %v4844_v56 = vpop.f32.mrb[148].mxu0 }
0x31aa   :  { %v4851_v25 = vmul.f32 0.35355338, %v4844_v56  ;;  %v6581_v58 = vpop.f32.mrb[149].mxu0 }
0x31ab   :  { %v4847_v60 = vpop.f32.mrb[150].mxu0 }
0x31ac   :  { %v6582_v61 = vpop.f32.mrb[151].mxu0  ;;  %v4855_v1 = vsel %vm229_vm2, %v4851_v25, -inf }
0x31ad   :  { %4856 = vmax.xlane.f32.xlu1 %v4855_v1 }
0x31be   :  { %4876 = vrot.lane.b32.xlu1 %v8035_v38, %s7061_s1 }
0x31c2   :  { %5024 = vrot.lane.b32.xlu1 %v8035_v38, %s8372_s4 }
0x31c6   :  { %5074 = vrot.lane.b32.xlu1 %v8037_v57, %s8372_s4 }
0x31ca   :  { %5072 = vrot.lane.b32.xlu1 %v8047_v2, %s8372_s4 }
0x323a   :  { %v4857_v51 = vpop.xlane.xlu1 %4856 }
0x323b   :  { %v4859_v3 = vsub.f32 %v4851_v25, %v4857_v51 }
0x323d   :  { %v4862_v4 = vmul.f32 1.442695, %v4859_v3 }
0x323e   :  { %v4877_v5 = vpop.permute.xlu1 %4876 }
0x323f   :  { %v4882_v6 = vsel %vm356_vm3, %v4877_v5, 0  ;;  %6854 = vpow2.f32 %v4862_v4 }
0x3240   :  { %6584 = vmatpush3.bf16.msra.mxu1 %v4882_v6 }
0x3241   :  { %6595 = vmatprep.subr.bf16.mxu1 %v7054_v0 }
0x3249   :  { %v6855_v23 = vpop.eup %6854 }
0x324a   :  { %v4867_v24 = vsel %vm229_vm2, %v6855_v23, 0.0 }
0x326e   :  { %v4696_v8 = vpop.f32.mrb[160].mxu1 }
0x326f   :  { %v8165_v9 = vadd.f32 %v4743_v50, %v4696_v8  ;;  %v6563_v59 = vpop.f32.mrb[161].mxu1 }
0x3270   :  { %v4699_v12 = vpop.f32.mrb[162].mxu1 }
0x3271   :  { %v8167_v13 = vadd.f32 %v4746_v37, %v4699_v12  ;;  %v6564_v14 = vpop.f32.mrb[163].mxu1 }
0x3276   :  { %v4794_v62 = vpop.f32.mrb[164].mxu1 }
0x3277   :  { %v4850_v2 = vmul.f32 0.35355338, %v4794_v62  ;;  %v6575_v15 = vpop.f32.mrb[165].mxu1 }
0x3278   :  { %v4797_v17 = vpop.f32.mrb[166].mxu1 }
0x3279   :  { %v6576_v20 = vpop.f32.mrb[167].mxu1  ;;  %v4852_v21 = vsel %vm229_vm2, %v4850_v2, -inf }
0x327a   :  { %4853 = vmax.xlane.f32.xlu0 %v4852_v21 }
0x327e   :  { %4868 = vadd.xlane.f32.xlu0 %v4867_v24 }
0x3307   :  { %v4854_v48 = vpop.xlane.xlu0 %4853 }
0x3308   :  { %v4858_v43 = vsub.f32 %v4850_v2, %v4854_v48 }
0x330a   :  { %v4860_v41 = vmul.f32 1.442695, %v4858_v43 }
0x330b   :  { %v4869_v27 = vpop.xlane.xlu0 %4868 }
0x330c   :  { %6856 = vpow2.f32 %v4860_v41 }
0x330d   :  { %6858 = vrcp.f32 %v4869_v27 }
0x3316   :  { %v6857_v18 = vpop.eup %6856 }
0x3317   :  { %v4864_v26 = vsel %vm229_vm2, %v6857_v18, 0.0  ;;  %v6859_v16 = vpop.eup %6858 }
0x3318   :  { %4865 = vadd.xlane.f32.xlu0 %v4864_v26  ;;  %v4873_v10 = vmul.f32 %v6859_v16, %v6855_v23  ;;  %v5806_v16 = vld [vmem:[%s8326_s9 + $0x1c] sm:$0xf] }
0x331a   :  { %v4875_v31 = vpack.c.bf16 %v4873_v10, %v4873_v10 }
0x332e   :  { %4924 = vrot.lane.b32.xlu0 %v8037_v57, %s7061_s1 }
0x3332   :  { %5022 = vrot.lane.b32.xlu0 %v8045_v63, %s8372_s4  ;;  %v5025_v63 = vpop.permute.xlu1 %5024 }
0x3333   :  { %v5030_v34 = vsel %vm229_vm2, %v5025_v63, 0 }
0x3336   :  { %v5075_v45 = vpop.permute.xlu1 %5074 }
0x3337   :  { %v5080_v50 = vsel %vm229_vm2, %v5075_v45, 0 }
0x333a   :  { %v5073_v60 = vpop.permute.xlu1 %5072 }
0x33a5   :  { %v4866_v28 = vpop.xlane.xlu0 %4865 }
0x33a6   :  { %6860 = vrcp.f32 %v4866_v28  ;;  %v5249_v28 = vsel %vm356_vm3, %v5806_v16, 0 }
0x33a9   :  { %v4925_v29 = vpop.permute.xlu0 %4924 }
0x33aa   :  { %v4930_v19 = vsel %vm356_vm3, %v4925_v29, 0 }
0x33ab   :  { %6590 = vmatpush3.bf16.msra.mxu0 %v4930_v19 }
0x33ac   :  { %6601 = vmatprep.subr.bf16.mxu0 %v7054_v0 }
0x33ad   :  { %v5023_v36 = vpop.permute.xlu0 %5022 }
0x33ae   :  { %6592 = vmatmul.mubr.msk.bf16.vlgmr.msra.gmra.mrb[152].mxu0 %vm229_vm2, %v4875_v31 }
0x33af   :  { %6603 = vmatprep.mubr.msk.bf16.mxu0 %vm7055_vm0, %v7054_v0 }
0x33b0   :  { %v6861_v33 = vpop.eup %6860 }
0x33b1   :  { %v4872_v7 = vmul.f32 %v6861_v33, %v6857_v18 }
0x33b3   :  { %v4874_v35 = vpack.c.bf16 %v4872_v7, %v4872_v7 }
0x33b4   :  { %6602 = vmatpush3.bf16.xpose.msra.mxu0 %v5030_v34 }
0x33b5   :  { %6586 = vmatmul.mubr.msk.bf16.vlgmr.msra.gmra.mrb[168].mxu1 %vm229_vm2, %v4874_v35  ;;  %6613 = vmatprep.subr.bf16.mxu0 %v7054_v0 }
0x33b6   :  { %6597 = vmatprep.mubr.msk.bf16.mxu1 %vm7055_vm0, %v7054_v0  ;;  %6596 = vmatpush3.bf16.msra.mxu1 %v4977_v40 }
0x33b7   :  { %6607 = vmatprep.subr.bf16.mxu1 %v7054_v0 }
0x33bb   :  { %6604 = vmatmul.mubr.msk.bf16.vlgmr.msra.gmra.mrb[156].mxu0 %vm229_vm2, %v5023_v36 }
0x33bc   :  { %6615 = vmatprep.mubr.msk.bf16.mxu0 %vm7055_vm0, %v7054_v0 }
0x3481   :  { %v4966_v11 = vpop.f32.mrb[152].mxu0 }
0x3482   :  { %v6593_v42 = vpop.f32.mrb[153].mxu0 }
0x3483   :  { %v4969_v44 = vpop.f32.mrb[154].mxu0 }
0x3484   :  { %v6594_v30 = vpop.f32.mrb[155].mxu0  ;;  %v5828_v44 = vld [vmem:[%s8327_s10 + $0x1] ss:$0 sm:$0xff] }
0x3488   :  { %v4918_v46 = vpop.f32.mrb[168].mxu1 }
0x3489   :  { %v4972_v47 = vpack.c.bf16 %v4966_v11, %v4918_v46  ;;  %v6587_v32 = vpop.f32.mrb[169].mxu1 }
0x348a   :  { %v4921_v49 = vpop.f32.mrb[170].mxu1 }
0x348b   :  { %v6588_v22 = vpop.f32.mrb[171].mxu1  ;;  %6598 = vmatmul.mubr.msk.bf16.vlgmr.msra.gmra.mrb[172].mxu1 %vm229_vm2, %v4972_v47 }
0x348c   :  { %6608 = vmatpush3.bf16.xpose.msra.mxu1 %v5080_v50  ;;  %6609 = vmatprep.mubr.msk.bf16.mxu1 %vm7055_vm0, %v7054_v0 }
0x348d   :  { %6619 = vmatprep.subr.bf16.mxu1 %v7054_v0 }
0x348e   :  { %v5066_v54 = vpop.f32.mrb[156].mxu0 }
0x348f   :  { %v5122_v37 = vmul.f32 0.35355338, %v5066_v54  ;;  %v6605_v55 = vpop.f32.mrb[157].mxu0 }
0x3490   :  { %v5069_v56 = vpop.f32.mrb[158].mxu0 }
0x3491   :  { %v6606_v25 = vpop.f32.mrb[159].mxu0  ;;  %v5124_v58 = vsel %vm229_vm2, %v5122_v37, -inf }
0x3492   :  { %5125 = vmax.xlane.f32.xlu0 %v5124_v58 }
0x3493   :  { %6610 = vmatmul.mubr.msk.bf16.vlgmr.msra.gmra.mrb[176].mxu1 %vm229_vm2, %v5073_v60 }
0x3494   :  { %6621 = vmatprep.mubr.msk.bf16.mxu1 %vm7055_vm0, %v7054_v0 }
0x351f   :  { %v5126_v61 = vpop.xlane.xlu0 %5125 }
0x3520   :  { %v5130_v1 = vsub.f32 %v5122_v37, %v5126_v61 }
0x3522   :  { %v5132_v51 = vmul.f32 1.442695, %v5130_v1  ;;  %v6714_v1 = vld [vmem:[#allocation10 + $0x10] sm:$0xff]  }
0x3524   :  { %6862 = vpow2.f32 %v5132_v51  ;;  %v6717_v51 = vld [vmem:[%s8332_s15 + $0x48] sm:$0xff]  }
0x352e   :  { %v6863_v5 = vpop.eup %6862 }
0x352f   :  { %v5136_v6 = vsel %vm229_vm2, %v6863_v5, 0.0 }
0x3530   :  { %5137 = vadd.xlane.f32.xlu0 %v5136_v6  ;;  %v6719_v6 = vld [vmem:[%s8332_s15 + $0x58] sm:$0xff]  }
0x355e   :  { %v5013_v3 = vpop.f32.mrb[172].mxu1 }
0x355f   :  { %v5020_v4 = vadd.f32 %v5013_v3, %v8165_v9  ;;  %v6599_v8 = vpop.f32.mrb[173].mxu1  ;;  %v6720_v3 = vld [vmem:[%s8332_s15 + $0x60] sm:$0xff]  }
0x3560   :  { %v5016_v59 = vpop.f32.mrb[174].mxu1 }
0x3561   :  { %v5021_v12 = vadd.f32 %v5016_v59, %v8167_v13  ;;  %v6600_v14 = vpop.f32.mrb[175].mxu1 }
0x3566   :  { %v5116_v62 = vpop.f32.mrb[176].mxu1 }
0x3567   :  { %v5123_v2 = vmul.f32 0.35355338, %v5116_v62  ;;  %v6611_v15 = vpop.f32.mrb[177].mxu1 }
0x3568   :  { %v5119_v17 = vpop.f32.mrb[178].mxu1 }
0x3569   :  { %v6612_v20 = vpop.f32.mrb[179].mxu1  ;;  %v5127_v21 = vsel %vm229_vm2, %v5123_v2, -inf }
0x356a   :  { %5128 = vmax.xlane.f32.xlu1 %v5127_v21 }
0x357b   :  { %5148 = vrot.lane.b32.xlu1 %v8035_v38, %s7063_s21 }
0x35bd   :  { %v5138_v23 = vpop.xlane.xlu0 %5137 }
0x35be   :  { %6864 = vrcp.f32 %v5138_v23 }
0x35c8   :  { %v6865_v24 = vpop.eup %6864 }
0x35c9   :  { %v5144_v43 = vmul.f32 %v6865_v24, %v6863_v5  ;;  %v6718_v5 = vld [vmem:[%s8332_s15 + $0x50] sm:$0xff]  }
0x35cb   :  { %v5146_v26 = vpack.c.bf16 %v5144_v43, %v5144_v43 }
0x35f7   :  { %v5129_v9 = vpop.xlane.xlu1 %5128 }
0x35f8   :  { %v5131_v48 = vsub.f32 %v5123_v2, %v5129_v9 }
0x35fa   :  { %v5134_v41 = vmul.f32 1.442695, %v5131_v48 }
0x35fb   :  { %v5149_v13 = vpop.permute.xlu1 %5148 }
0x35fc   :  { %6866 = vpow2.f32 %v5134_v41  ;;  %v5154_v18 = vsel %vm356_vm3, %v5149_v13, 0  ;;  %v5830_v13 = vld [vmem:[%s8328_s11 + $0x1] ss:$0 sm:$0xff] }
0x35fd   :  { %6614 = vmatpush3.bf16.msra.mxu0 %v5154_v18 }
0x35fe   :  { %6625 = vmatprep.subr.bf16.mxu0 %v7054_v0 }
0x3600   :  { %6616 = vmatmul.mubr.msk.bf16.vlgmr.msra.gmra.mrb[160].mxu0 %vm229_vm2, %v5146_v26 }
0x3601   :  { %6627 = vmatprep.mubr.msk.bf16.mxu0 %vm7055_vm0, %v7054_v0  ;;  %6626 = vmatpush3.bf16.msra.mxu0 %v5249_v28  ;;  %v5831_v28 = vld [vmem:[#allocation8 + $0x1] ss:$0 sm:$0xff] }
0x3602   :  { %6639 = vmatprep.subr.bf16.mxu0 %v7054_v0 }
0x3606   :  { %v6867_v38 = vpop.eup %6866 }
0x3607   :  { %v5139_v27 = vsel %vm229_vm2, %v6867_v38, 0.0 }
0x3608   :  { %5140 = vadd.xlane.f32.xlu0 %v5139_v27 }
0x361e   :  { %5196 = vrot.lane.b32.xlu0 %v8037_v57, %s7063_s21 }
0x3695   :  { %v5141_v10 = vpop.xlane.xlu0 %5140 }
0x3696   :  { %6868 = vrcp.f32 %v5141_v10 }
0x3699   :  { %v5197_v29 = vpop.permute.xlu0 %5196 }
0x369a   :  { %v5202_v19 = vsel %vm356_vm3, %v5197_v29, 0 }
0x369b   :  { %6620 = vmatpush3.bf16.msra.mxu1 %v5202_v19 }
0x369c   :  { %6631 = vmatprep.subr.bf16.mxu1 %v7054_v0 }
0x36a0   :  { %v6869_v31 = vpop.eup %6868 }
0x36a1   :  { %v5145_v33 = vmul.f32 %v6869_v31, %v6867_v38 }
0x36a3   :  { %v5147_v57 = vpack.c.bf16 %v5145_v33, %v5145_v33  ;;  %v6722_v33 = vld [vmem:[%s8332_s15 + $0x70] sm:$0xff]  }
0x36a5   :  { %6622 = vmatmul.mubr.msk.bf16.vlgmr.msra.gmra.mrb[180].mxu1 %vm229_vm2, %v5147_v57  ;;  %v6723_v57 = vld [vmem:[%s8332_s15 + $0x78] sm:$0xff]  }
0x36a6   :  { %6635 = vmatprep.mubr.msk.bf16.mxu1 %vm7055_vm0, %v7054_v0  ;;  %6632 = vmatpush3.bf16.msra.mxu1 %v6714_v1  ;;  %v6725_v1 = vld [vmem:[%s8336_s19 + $0x8] sm:$0xff]  }
0x36a7   :  { %6633 = vmatprep.subr.bf16.mxu1 %v7054_v0 }
0x36d3   :  { %v5190_v63 = vpop.f32.mrb[160].mxu0 }
0x36d4   :  { %v6617_v7 = vpop.f32.mrb[161].mxu0 }
0x36d5   :  { %v5193_v34 = vpop.f32.mrb[162].mxu0 }
0x36d6   :  { %v6618_v35 = vpop.f32.mrb[163].mxu0 }
0x3778   :  { %v5238_v36 = vpop.f32.mrb[180].mxu1 }
0x3779   :  { %v5244_v39 = vpack.c.bf16 %v5238_v36, %v5190_v63  ;;  %v6623_v40 = vpop.f32.mrb[181].mxu1  ;;  %v5832_v63 = vld [vmem:[#allocation11 + $0x1] ss:$0 sm:$0xff] }
0x377a   :  { %v5241_v11 = vpop.f32.mrb[182].mxu1 }
0x377b   :  { %v6624_v42 = vpop.f32.mrb[183].mxu1  ;;  %6628 = vmatmul.mubr.msk.bf16.vlgmr.msra.gmra.mrb[164].mxu0 %vm229_vm2, %v5244_v39 }
0x377c   :  { %6655 = vmatprep.mubr.msk.bf16.mxu0 %vm7055_vm0, %v7054_v0 }
0x384e   :  { %v5285_v30 = vpop.f32.mrb[164].mxu0 }
0x384f   :  { %v5292_v45 = vadd.f32 %v5285_v30, %v5020_v4  ;;  %v6629_v46 = vpop.f32.mrb[165].mxu0  ;;  %v6721_v4 = vld [vmem:[%s8332_s15 + $0x68] sm:$0xff]   ;;  %v5853_v30 = vld [vmem:[%s8333_s16 + $0x1] ss:$0 sm:$0xff] }
0x3850   :  { %v5288_v47 = vpop.f32.mrb[166].mxu0 }
0x3851   :  { %v5300_v32 = vadd.f32 %v5828_v44, %v5292_v45  ;;  %v5293_v49 = vadd.f32 %v5288_v47, %v5021_v12  ;;  %v6630_v50 = vpop.f32.mrb[167].mxu0 }
0x3853   :  { %v5302_v22 = vadd.f32 %v5300_v32, %v8026_v52  ;;  %v5301_v54 = vadd.f32 %v5828_v44, %v5293_v49  ;;  %v6715_v52 = vld [vmem:[#allocation10 + $0x18] sm:$0xff]  }
0x3854   :  { %6634 = vmatpush3.bf16.msra.mxu1 %v6715_v52 }
0x3855   :  { %v5303_v37 = vadd.f32 %v5301_v54, %v8028_v53  ;;  %v5308_v55 = vsel %vm174_vm1, %v5302_v22, 0.0  ;;  %v5316_v56 = vmul.f32 %v5302_v22, %v5302_v22  ;;  %6659 = vmatprep.subr.bf16.mxu1 %v7054_v0  ;;  %v6716_v53 = vld [vmem:[%s8332_s15 + $0x40] sm:$0xff]  }
0x3856   :  { %5309 = vadd.xlane.f32.xlu1 %v5308_v55  ;;  %6640 = vmatpush3.bf16.msra.mxu0 %v6716_v53 }
0x3857   :  { %v5311_v25 = vsel %vm174_vm1, %v5303_v37, 0.0  ;;  %v5317_v58 = vmul.f32 %v5303_v37, %v5303_v37  ;;  %v5318_v60 = vsel %vm174_vm1, %v5316_v56, 0.0  ;;  %6641 = vmatprep.subr.bf16.mxu0 %v7054_v0 }
0x3858   :  { %5312 = vadd.xlane.f32.xlu0 %v5311_v25 }
0x3859   :  { %v5321_v61 = vsel %vm174_vm1, %v5317_v58, 0.0 }
0x385a   :  { %5319 = vadd.xlane.f32.xlu1 %v5318_v60  ;;  %6642 = vmatpush3.bf16.msra.mxu0 %v6717_v51 }
0x385b   :  { %6643 = vmatprep.subr.bf16.mxu0 %v7054_v0 }
0x385c   :  { %5322 = vadd.xlane.f32.xlu0 %v5321_v61  ;;  %v6724_v61 = vld [vmem:[%s8336_s19] sm:$0xff]  }
0x385e   :  { %6644 = vmatpush3.bf16.msra.mxu0 %v6718_v5 }
0x385f   :  { %6645 = vmatprep.subr.bf16.mxu0 %v7054_v0 }
0x3862   :  { %6646 = vmatpush3.bf16.msra.mxu0 %v6719_v6 }
0x3863   :  { %6647 = vmatprep.subr.bf16.mxu0 %v7054_v0 }
0x3866   :  { %6648 = vmatpush3.bf16.msra.mxu0 %v6720_v3 }
0x3867   :  { %6649 = vmatprep.subr.bf16.mxu0 %v7054_v0 }
0x386a   :  { %6650 = vmatpush3.bf16.msra.mxu0 %v6721_v4 }
0x386b   :  { %6651 = vmatprep.subr.bf16.mxu0 %v7054_v0 }
0x386e   :  { %6652 = vmatpush3.bf16.msra.mxu0 %v6722_v33 }
0x386f   :  { %6653 = vmatprep.subr.bf16.mxu0 %v7054_v0 }
0x3872   :  { %6654 = vmatpush3.bf16.msra.mxu0 %v6723_v57 }
0x38e3   :  { %v5310_v8 = vpop.xlane.xlu1 %5309 }
0x38e4   :  { %v5314_v59 = vmul.f32 0.03125, %v5310_v8 }
0x38e5   :  { %v5313_v12 = vpop.xlane.xlu0 %5312 }
0x38e6   :  { %v5315_v14 = vmul.f32 0.03125, %v5313_v12  ;;  %v5326_v2 = vmul.f32 %v5314_v59, %v5314_v59  ;;  %v5330_v43 = vsub.f32 %v5302_v22, %v5314_v59 }
0x38e7   :  { %v5320_v62 = vpop.xlane.xlu1 %5319 }
0x38e8   :  { %v5324_v15 = vmul.f32 0.03125, %v5320_v62  ;;  %v5327_v20 = vmul.f32 %v5315_v14, %v5315_v14  ;;  %v5331_v18 = vsub.f32 %v5303_v37, %v5315_v14 }
0x38e9   :  { %v5323_v17 = vpop.xlane.xlu0 %5322 }
0x38ea   :  { %v5328_v21 = vsub.f32 %v5324_v15, %v5326_v2  ;;  %v5325_v23 = vmul.f32 0.03125, %v5323_v17 }
0x38ec   :  { %v5332_v24 = vadd.f32 1e-05, %v5328_v21  ;;  %v5329_v9 = vsub.f32 %v5325_v23, %v5327_v20 }
0x38ee   :  { %6870 = vrsqrt.f32 %v5332_v24  ;;  %v5333_v48 = vadd.f32 1e-05, %v5329_v9 }
0x38f0   :  { %6872 = vrsqrt.f32 %v5333_v48 }
0x38f8   :  { %v6871_v41 = vpop.eup %6870 }
0x38f9   :  { %v5336_v26 = vmul.f32 %v6871_v41, %v5330_v43  ;;  %v5865_v43 = vld [vmem:[%s8335_s18 + $0x1] ss:$0 sm:$0xff] }
0x38fa   :  { %v6873_v38 = vpop.eup %6872 }
0x38fb   :  { %v5337_v27 = vmul.f32 %v6873_v38, %v5331_v18  ;;  %v5344_v16 = vmul.f32 %v5830_v13, %v5336_v26  ;;  %v5866_v38 = vld [vmem:[%s8374_s27] ss:$0 sm:$0xff] }
0x38fd   :  { %v5345_v10 = vmul.f32 %v5830_v13, %v5337_v27  ;;  %v5352_v29 = vadd.f32 %v5831_v28, %v5344_v16 }
0x38ff   :  { %v5353_v19 = vadd.f32 %v5831_v28, %v5345_v10 }
0x3901   :  { %v5354_v31 = vpack.c.bf16 %v5353_v19, %v5352_v29 }
0x3903   :  { %6636 = vmatmul.mubr.msk.bf16.vlgmr.msra.gmra.mrb[184].mxu1 %vm174_vm1, %v5354_v31 }
0x3904   :  { %6663 = vmatprep.mubr.msk.bf16.mxu1 %vm7055_vm0, %v7054_v0  ;;  %6660 = vmatpush3.bf16.msra.mxu1 %v6724_v61 }
0x3905   :  { %6661 = vmatprep.subr.bf16.mxu1 %v7054_v0  ;;  %v5864_v0 = vld [vmem:[%s8334_s17 + $0x1] ss:$0 sm:$0xff]  ;;  %s7066_s17 = smov [#allocation13]  }
0x3906   :  { %s5668_s12 = sshll.u32 %s7066_s17, 4  ;;  %s5669_s12 = int_to_ptr.vmem [resolvable:$true] %s5668_s12 }
0x3907   :  { %s7010_s18 = scalar_lea.vmem %s5669_s12, 256  ;;  %p7015_p7 = scmp.lt.s32.totalorder %s5669_s12, %s5669_s12 }
0x3908   :  { %6662 = vmatpush3.bf16.msra.mxu1 %v6725_v1  ;;  %p7011_p6 = scmp.ne.s32.totalorder %s5669_s12, %s7010_s18  ;;  %p7016_p8 = scmp.lt.s32.totalorder %s7010_s18, %s7010_s18 }
0x390a   :  { %p7017_p9 = por %p7016_p8, %p7015_p7 }
0x390c   :  { %p7018_p10 = pnand %p7017_p9, %p7011_p6 }
0x39d6   :  { %v5417_v7 = vpop.f32.mrb[184].mxu1 }
0x39d7   :  { %v5418_v34 = vadd.f32 %v5832_v63, %v5417_v7  ;;  %v6637_v35 = vpop.f32.mrb[185].mxu1 }
0x39d8   :  { %v5420_v36 = vpop.f32.mrb[186].mxu1 }
0x39d9   :  { %v5421_v39 = vadd.f32 %v5832_v63, %v5420_v36  ;;  %v6638_v40 = vpop.f32.mrb[187].mxu1  ;;  %v5424_v11 = vmax.f32 %v5418_v34, 0.0 }
0x39db   :  { %v5425_v42 = vmax.f32 %v5421_v39, 0.0 }
0x39dd   :  { %v5426_v44 = vpack.c.bf16 %v5425_v42, %v5424_v11 }
0x39df   :  { %6656 = vmatmul.mubr.bf16.vlgmr.msra.gmra.mrb[168].mxu0 %v5426_v44 }
0x3ab2   :  { %v5534_v45 = vpop.f32.mrb[168].mxu0 }
0x3ab3   :  { %v5535_v46 = vadd.f32 %v5853_v30, %v5534_v45  ;;  %v6657_v47 = vpop.f32.mrb[169].mxu0 }
0x3ab4   :  { %v5537_v32 = vpop.f32.mrb[170].mxu0 }
0x3ab5   :  { %v5541_v49 = vadd.f32 %v5535_v46, %v5352_v29  ;;  %v5538_v50 = vadd.f32 %v5853_v30, %v5537_v32  ;;  %v6658_v22 = vpop.f32.mrb[171].mxu0 }
0x3ab7   :  { %v5542_v54 = vadd.f32 %v5538_v50, %v5353_v19  ;;  %v5547_v37 = vsel %vm174_vm1, %v5541_v49, 0.0  ;;  %v5555_v55 = vmul.f32 %v5541_v49, %v5541_v49 }
0x3ab8   :  { %5548 = vadd.xlane.f32.xlu1 %v5547_v37 }
0x3ab9   :  { %v5550_v56 = vsel %vm174_vm1, %v5542_v54, 0.0  ;;  %v5556_v25 = vmul.f32 %v5542_v54, %v5542_v54  ;;  %v5557_v58 = vsel %vm174_vm1, %v5555_v55, 0.0 }
0x3aba   :  { %5551 = vadd.xlane.f32.xlu0 %v5550_v56 }
0x3abb   :  { %v5560_v60 = vsel %vm174_vm1, %v5556_v25, 0.0 }
0x3abc   :  { %5558 = vadd.xlane.f32.xlu1 %v5557_v58 }
0x3abe   :  { %5561 = vadd.xlane.f32.xlu0 %v5560_v60 }
0x3b45   :  { %v5549_v52 = vpop.xlane.xlu1 %5548 }
0x3b46   :  { %v5553_v53 = vmul.f32 0.03125, %v5549_v52 }
0x3b47   :  { %v5552_v51 = vpop.xlane.xlu0 %5551 }
0x3b48   :  { %v5554_v5 = vmul.f32 0.03125, %v5552_v51  ;;  %v5565_v3 = vmul.f32 %v5553_v53, %v5553_v53  ;;  %v5569_v17 = vsub.f32 %v5541_v49, %v5553_v53 }
0x3b49   :  { %v5559_v6 = vpop.xlane.xlu1 %5558 }
0x3b4a   :  { %v5563_v4 = vmul.f32 0.03125, %v5559_v6  ;;  %v5566_v59 = vmul.f32 %v5554_v5, %v5554_v5  ;;  %v5570_v21 = vsub.f32 %v5542_v54, %v5554_v5 }
0x3b4b   :  { %v5562_v8 = vpop.xlane.xlu0 %5561 }
0x3b4c   :  { %v5567_v12 = vsub.f32 %v5563_v4, %v5565_v3  ;;  %v5564_v14 = vmul.f32 0.03125, %v5562_v8 }
0x3b4e   :  { %v5571_v62 = vadd.f32 1e-05, %v5567_v12  ;;  %v5568_v2 = vsub.f32 %v5564_v14, %v5566_v59 }
0x3b50   :  { %6874 = vrsqrt.f32 %v5571_v62  ;;  %v5572_v15 = vadd.f32 1e-05, %v5568_v2 }
0x3b52   :  { %6876 = vrsqrt.f32 %v5572_v15 }
0x3b5a   :  { %v6875_v20 = vpop.eup %6874 }
0x3b5b   :  { %v5575_v23 = vmul.f32 %v6875_v20, %v5569_v17 }
0x3b5c   :  { %v6877_v24 = vpop.eup %6876 }
0x3b5d   :  { %v5583_v9 = vmul.f32 %v5864_v0, %v5575_v23  ;;  %v5576_v48 = vmul.f32 %v6877_v24, %v5570_v21 }
0x3b5f   :  { %v5584_v41 = vmul.f32 %v5864_v0, %v5576_v48  ;;  %v5591_v13 = vadd.f32 %v5865_v43, %v5583_v9 }
0x3b61   :  { %v5592_v18 = vadd.f32 %v5865_v43, %v5584_v41 }
0x3b63   :  { %v5593_v26 = vpack.c.bf16 %v5592_v18, %v5591_v13 }
0x3b65   :  { %6664 = vmatmul.mubr.msk.bf16.vlgmr.msra.gmra.mrb[188].mxu1 %vm174_vm1, %v5593_v26 }
0x3c38   :  { %v5654_v27 = vpop.f32.mrb[188].mxu1 }
0x3c39   :  { %v5655_v16 = vadd.f32 %v5866_v38, %v5654_v27  ;;  %v6665_v28 = vpop.f32.mrb[189].mxu1 }
0x3c3a   :  { %v5657_v10 = vpop.f32.mrb[190].mxu1 }
0x3c3b   :  { %5661 = vst [vmem:[#allocation13] sm:$0xff] %v5655_v16  ;;  %v5658_v29 = vadd.f32 %v5866_v38, %v5657_v10  ;;  %v6666_v19 = vpop.f32.mrb[191].mxu1 }
0x3c3d   :  { %5662 = vst [vmem:[#allocation13 + $0x8] sm:$0xff] %v5658_v29 }
0x3c3e   :  { %7021 = shalt.err (!%p7018_p10)
}
0x3c3f   :  { %s8375_s22 = sld [smem:[#allocation26_spill]] }
0x3c45   :  { %s7022_s0 = scalar_lea.hbm %s8375_s22, 256 }
0x3c46   :  { %p7023_p11 = scmp.ne.s32.totalorder %s8375_s22, %s7022_s0  ;;  %p7026_p12 = scmp.lt.u32.totalorder %s7022_s0, %s8375_s22 }
0x3c48   :  { %p7028_p13 = pnand %p7026_p12, %p7023_p11 }
0x3c4a   :  { %7031 = shalt.err (!%p7028_p13)
}
0x3c4b   :  { %s8376_s13 = smov 8   ;;  %s8377_s5 = smov 128  }
0x3c4c   :  { %5674 = dma.vmem_to_hbm [thread:$0]  %s5669_s12, 256, %s8375_s22, [#allocation4], %s8377_s5, %s8377_s5, %s8376_s13  }
0x3c4d   :  { %7040 = dma.done.wait [#allocation4], 256  }
0x3c4e   :  { %7041 = vsyncadd [#allocation4], 4294967040 }
0x3c4f   :  { %5678 = vsyncpa [#allocation3], 1 }
0x3c50   :  { %5679 = vsyncpa [#allocation6], 1 }
0x3c51   :  { %5680 = vsyncpa [#allocation9], 1 }
0x3c52   :  { %5681 = vsyncpa [#allocation12], 1 }
0x3c53   :  { %5682 = vsyncpa [#allocation4], 1 }

</bundles_post_ra>
